<compile_context>
chip_gen: v5e
topology: v5e:2x2
jax: 0.10.0
libtpu: 0.0.40
codegen_flags: <defaults>
</compile_context>

<pallas_src>
import functools

import jax
import jax.numpy as jnp
import numpy as np
from jax.experimental import pallas as pl
from jax.experimental.pallas import tpu as pltpu

LN_EPS = 1e-5  # PyTorch nn.LayerNorm default


def attention_kernel(x_ref, lng_ref, lnb_ref, wqkv_ref, wo_ref, bo_ref, o_ref,
                     *, heads, dim_head):
    """Full attention block for one batch tile (grid iterates over batch tiles)."""
    b_tile, seq, D = x_ref.shape
    inner = heads * dim_head
    dh = dim_head
    M = b_tile * seq                      # rows per MXU pass (>= 128 by design)

    # ---------------- LayerNorm (f32, VPU) on a 2-D (M, D) slab ----------------
    x = x_ref[...].reshape(M, D)
    mu = jnp.mean(x, axis=-1, keepdims=True)
    var = jnp.mean((x - mu) ** 2, axis=-1, keepdims=True)
    xn = (x - mu) * jax.lax.rsqrt(var + LN_EPS) * lng_ref[...] + lnb_ref[...]

    # ---------------- fused QKV projection: ONE (M,D)@(D,3*inner) matmul -------
    # bf16 in / f32 acc; the dh^-0.5 scale is pre-folded into the Wq columns.
    qkv = jnp.dot(xn.astype(jnp.bfloat16), wqkv_ref[...],
                  preferred_element_type=jnp.float32)            # (M, 3*inner)

    q = qkv[:, 0 * inner:1 * inner]
    k = qkv[:, 1 * inner:2 * inner]
    v = qkv[:, 2 * inner:3 * inner]

    # (M, inner) -> (heads*b_tile, N, dh) head-batched layout, built only from
    # static lane slices + leading-dim reshapes + leading-axis concatenation
    # (no major-dim transposes, no lane-dim-splitting reshapes).
    def split_heads(t):
        return jnp.concatenate(
            [t[:, h * dh:(h + 1) * dh].reshape(b_tile, seq, dh)
             for h in range(heads)], axis=0).astype(jnp.bfloat16)

    qh, kh, vh = split_heads(q), split_heads(k), split_heads(v)

    # ---------------- head-batched scores + softmax ----------------------------
    dots = jnp.einsum('bnd,bmd->bnm', qh, kh,
                      preferred_element_type=jnp.float32)        # (h*bt, N, N)
    mx = jnp.max(dots, axis=-1, keepdims=True)
    e = jnp.exp(dots - mx)
    # approx reciprocal -> EUP slot; attention rows sum to 1 only approximately,
    # which (together with the bf16 cast of p) is well inside the 2e-2 tolerance.
    p = e * pl.reciprocal(jnp.sum(e, axis=-1, keepdims=True), approx=True)

    outh = jnp.einsum('bnm,bmd->bnd', p.astype(jnp.bfloat16), vh,
                      preferred_element_type=jnp.float32)        # (h*bt, N, dh)

    # (heads*b_tile, N, dh) -> (M, inner): leading-axis slices + lane concat.
    out2 = jnp.concatenate(
        [outh[h * b_tile:(h + 1) * b_tile].reshape(M, dh) for h in range(heads)],
        axis=-1)                                                 # (M, inner)

    # ---------------- fused output projection: ONE (M,inner)@(inner,D) ---------
    y = jnp.dot(out2.astype(jnp.bfloat16), wo_ref[...],
                preferred_element_type=jnp.float32) + bo_ref[...]
    o_ref[...] = y.reshape(b_tile, seq, D).astype(o_ref.dtype)


def _choose_batch_tile(B, N):
    """Rows per grid step (B_TILE*N) should fill the MXU (>=128 rows on v5e,
    >=256 on v6e/v7x) while keeping >=2 grid steps when B allows, so both v7x
    TensorCores get work (v5e/v6e have 1 TC, so the extra steps are harmless)."""
    divs = [d for d in range(1, B + 1) if B % d == 0]
    for target in (256, 128):                  # prefer deeper fill when possible
        ok = [d for d in divs if d * N >= target and B // d >= 2]
        if ok:
            return min(ok)
    ok = [d for d in divs if d * N >= 128]     # can't keep 2 steps: take the rows
    if ok:
        return min(ok)
    two_step = [d for d in divs if B // d >= 2]
    return max(two_step) if two_step else B


def _vmem_limit_bytes(b_tile, N, D, inner, heads):
    """Generation-aware VMEM request: real block + intermediate footprint,
    capped at ~70% of the chip's physical VMEM."""
    M = b_tile * N
    io_block = M * D * 4                       # x or out block (f32)
    weights = (D * 3 * inner + inner * D) * 2  # bf16 Wqkv + Wo
    small = 3 * D * 4 + 64                     # LN gamma/beta + bias
    inter = (M * 3 * inner * 4                 # qkv f32
             + 3 * M * inner * 2               # qh / kh / vh bf16
             + 3 * heads * b_tile * N * N * 4  # dots / e / p f32
             + 2 * M * inner * 4               # outh + out2 f32
             + M * D * 4)                      # y f32
    # inputs/outputs (and, for now, weights) are double-buffered by the pipeline.
    needed = 2 * (2 * io_block + weights + small) + inter
    try:
        cap = int(getattr(pltpu.get_tpu_info(), "vmem_capacity_bytes", 64 << 20))
    except Exception:  # pragma: no cover - conservative fallback (v7x size)
        cap = 64 << 20
    return int(min(max(needed, 16 << 20), int(0.7 * cap)))


def attention_forward(x, kparams, *, heads, dim_head, batch_tile=None):
    B, N, D = x.shape
    inner = heads * dim_head
    b_tile = batch_tile if batch_tile is not None else _choose_batch_tile(B, N)
    assert B % b_tile == 0, (B, b_tile)
    kernel = functools.partial(attention_kernel, heads=heads, dim_head=dim_head)

    def _const(shape):
        # Whole-array block, same block every grid step (weights / LN params).
        return pl.BlockSpec(shape, lambda b: (0,) * len(shape))

    return pl.pallas_call(
        kernel,
        out_shape=jax.ShapeDtypeStruct((B, N, D), x.dtype),
        grid=(B // b_tile,),
        in_specs=[
            pl.BlockSpec((b_tile, N, D), lambda b: (b, 0, 0)),   # x
            _const((1, D)), _const((1, D)),                      # LN gamma / beta
            _const((D, 3 * inner)),                              # Wqkv (bf16, q pre-scaled)
            _const((inner, D)),                                  # Wo   (bf16)
            _const((1, D)),                                      # bo
        ],
        out_specs=pl.BlockSpec((b_tile, N, D), lambda b: (b, 0, 0)),
        compiler_params=pltpu.CompilerParams(
            dimension_semantics=("parallel",),        # batch-tile axis -> both v7x TCs
            vmem_limit_bytes=_vmem_limit_bytes(b_tile, N, D, inner, heads)),
    )(x, kparams["ln_g"], kparams["ln_b"], kparams["wqkv"],
      kparams["wo"], kparams["bo"])


def init_params(key, dim, heads, dim_head):
    """Raw f32 parameters matching the PyTorch module (to_qkv has no bias)."""
    inner = heads * dim_head
    k0, k1, k2 = jax.random.split(key, 3)
    return dict(
        ln_g=jnp.ones((1, dim), jnp.float32),
        ln_b=jnp.zeros((1, dim), jnp.float32),
        wqkv=0.02 * jax.random.normal(k0, (dim, 3 * inner), jnp.float32),
        wo=0.02 * jax.random.normal(k1, (inner, dim), jnp.float32),
        bo=0.02 * jax.random.normal(k2, (1, dim), jnp.float32),
    )


def prepare_kernel_params(params, *, heads, dim_head):
    """One-time host-side prep for the kernel: fold the dh^-0.5 softmax scale
    into the Wq columns (removes an (M, inner) VPU multiply per grid step) and
    store the MXU weights in bf16 (halves HBM->VMEM traffic, MXU-native)."""
    inner = heads * dim_head
    scale = dim_head ** -0.5
    wqkv = params["wqkv"].astype(jnp.float32)
    wqkv = wqkv.at[:, :inner].multiply(scale)
    return dict(
        ln_g=params["ln_g"], ln_b=params["ln_b"], bo=params["bo"],
        wqkv=wqkv.astype(jnp.bfloat16),
        wo=params["wo"].astype(jnp.bfloat16),
    )


def reference_attention(x, p, *, heads, dim_head):
    """Pure-JAX f32 reference matching the PyTorch Attention module (dropout=0)."""
    lng, lnb, bo = p["ln_g"][0], p["ln_b"][0], p["bo"][0]
    wqkv = p["wqkv"].astype(jnp.float32)
    wo = p["wo"].astype(jnp.float32)
    B, N, D = x.shape
    inner = heads * dim_head

    mu = jnp.mean(x, -1, keepdims=True)
    var = jnp.mean((x - mu) ** 2, -1, keepdims=True)
    xn = (x - mu) * jax.lax.rsqrt(var + LN_EPS) * lng + lnb

    qkv = xn @ wqkv
    q, k, v = jnp.split(qkv, 3, axis=-1)
    q = q.reshape(B, N, heads, dim_head).transpose(0, 2, 1, 3)
    k = k.reshape(B, N, heads, dim_head).transpose(0, 2, 1, 3)
    v = v.reshape(B, N, heads, dim_head).transpose(0, 2, 1, 3)
    dots = jnp.einsum('bhqd,bhkd->bhqk', q, k) * dim_head ** -0.5
    attn = jax.nn.softmax(dots, axis=-1)
    out = jnp.einsum('bhqk,bhkd->bhqd', attn, v)
    out = out.transpose(0, 2, 1, 3).reshape(B, N, inner)
    return out @ wo + bo


if __name__ == "__main__":
    # Small ViT-style attention config.  B=16, N=16 -> B_TILE=8, so each grid
    # step feeds M = 128 rows to the MXU and the grid keeps 2 parallel steps
    # (one per v7x TensorCore).
    DIM, HEADS, DIM_HEAD = 128, 4, 32
    B, N = 16, 16

    key = jax.random.PRNGKey(0)
    kx, kp = jax.random.split(key)
    x = jax.random.normal(kx, (B, N, DIM), jnp.float32)
    params = init_params(kp, DIM, HEADS, DIM_HEAD)
    kparams = prepare_kernel_params(params, heads=HEADS, dim_head=DIM_HEAD)

    out = jax.block_until_ready(
        attention_forward(x, kparams, heads=HEADS, dim_head=DIM_HEAD))
    ref = jax.block_until_ready(
        reference_attention(x, params, heads=HEADS, dim_head=DIM_HEAD))

    assert out.shape == (B, N, DIM)
    assert np.allclose(np.asarray(out), np.asarray(ref), atol=2e-2, rtol=2e-2)

    print("KERNEL_OK")
</pallas_src>

<mosaic_0001>
module attributes {stable_mosaic.version = 11 : i64} {
  func.func @attention_kernel(%arg0: i32, %arg1: memref<8x16x128xf32, #tpu.memory_space<vmem>>, %arg2: memref<1x128xf32, #tpu.memory_space<vmem>>, %arg3: memref<1x128xf32, #tpu.memory_space<vmem>>, %arg4: memref<128x384xbf16, #tpu.memory_space<vmem>>, %arg5: memref<128x128xbf16, #tpu.memory_space<vmem>>, %arg6: memref<1x128xf32, #tpu.memory_space<vmem>>, %arg7: memref<8x16x128xf32, #tpu.memory_space<vmem>>) attributes {dimension_semantics = [#tpu.dimension_semantics<parallel>], iteration_bounds = array<i64: 2>, scalar_prefetch = 0 : i64, scratch_operands = 0 : i64, tpu.core_type = #tpu.core_type<tc>, window_params = [{transform_indices = @transform_0, window_bounds = array<i64: 8, 16, 128>}, {pipeline_mode = #tpu.pipeline_mode<synchronous>, transform_indices = @transform_1, window_bounds = array<i64: 1, 128>}, {pipeline_mode = #tpu.pipeline_mode<synchronous>, transform_indices = @transform_2, window_bounds = array<i64: 1, 128>}, {pipeline_mode = #tpu.pipeline_mode<synchronous>, transform_indices = @transform_3, window_bounds = array<i64: 128, 384>}, {pipeline_mode = #tpu.pipeline_mode<synchronous>, transform_indices = @transform_4, window_bounds = array<i64: 128, 128>}, {pipeline_mode = #tpu.pipeline_mode<synchronous>, transform_indices = @transform_5, window_bounds = array<i64: 1, 128>}, {transform_indices = @transform_6, window_bounds = array<i64: 8, 16, 128>}]} {
    %c0 = arith.constant 0 : index
    %c0_0 = arith.constant 0 : index
    %c0_1 = arith.constant 0 : index
    %0 = vector.load %arg1[%c0, %c0_0, %c0_1] : memref<8x16x128xf32, #tpu.memory_space<vmem>>, vector<8x16x128xf32>
    %1 = vector.shape_cast %0 : vector<8x16x128xf32> to vector<128x128xf32>
    %cst = arith.constant dense<0.000000e+00> : vector<128xf32>
    %2 = vector.multi_reduction <add>, %1, %cst [1] : vector<128x128xf32> to vector<128xf32>
    %3 = vector.shape_cast %2 : vector<128xf32> to vector<128x1xf32>
    %cst_2 = arith.constant 1.280000e+02 : f32
    %4 = vector.broadcast %cst_2 : f32 to vector<128x1xf32>
    %5 = arith.divf %3, %4 : vector<128x1xf32>
    %6 = vector.broadcast %5 : vector<128x1xf32> to vector<128x128xf32>
    %7 = arith.subf %1, %6 : vector<128x128xf32>
    %8 = arith.mulf %7, %7 : vector<128x128xf32>
    %cst_3 = arith.constant dense<0.000000e+00> : vector<128xf32>
    %9 = vector.multi_reduction <add>, %8, %cst_3 [1] : vector<128x128xf32> to vector<128xf32>
    %10 = vector.shape_cast %9 : vector<128xf32> to vector<128x1xf32>
    %cst_4 = arith.constant 1.280000e+02 : f32
    %11 = vector.broadcast %cst_4 : f32 to vector<128x1xf32>
    %12 = arith.divf %10, %11 : vector<128x1xf32>
    %13 = vector.broadcast %5 : vector<128x1xf32> to vector<128x128xf32>
    %14 = arith.subf %1, %13 : vector<128x128xf32>
    %cst_5 = arith.constant 9.99999974E-6 : f32
    %15 = vector.broadcast %cst_5 : f32 to vector<128x1xf32>
    %16 = arith.addf %12, %15 : vector<128x1xf32>
    %17 = math.rsqrt %16 : vector<128x1xf32>
    %18 = vector.broadcast %17 : vector<128x1xf32> to vector<128x128xf32>
    %19 = arith.mulf %14, %18 : vector<128x128xf32>
    %c0_6 = arith.constant 0 : index
    %c0_7 = arith.constant 0 : index
    %20 = vector.load %arg2[%c0_6, %c0_7] : memref<1x128xf32, #tpu.memory_space<vmem>>, vector<1x128xf32>
    %21 = vector.broadcast %20 : vector<1x128xf32> to vector<128x128xf32>
    %22 = arith.mulf %19, %21 : vector<128x128xf32>
    %c0_8 = arith.constant 0 : index
    %c0_9 = arith.constant 0 : index
    %23 = vector.load %arg3[%c0_8, %c0_9] : memref<1x128xf32, #tpu.memory_space<vmem>>, vector<1x128xf32>
    %24 = vector.broadcast %23 : vector<1x128xf32> to vector<128x128xf32>
    %25 = arith.addf %22, %24 : vector<128x128xf32>
    %26 = arith.truncf %25 : vector<128x128xf32> to vector<128x128xbf16>
    %c0_10 = arith.constant 0 : index
    %c0_11 = arith.constant 0 : index
    %27 = vector.load %arg4[%c0_10, %c0_11] : memref<128x384xbf16, #tpu.memory_space<vmem>>, vector<128x384xbf16>
    %cst_12 = arith.constant dense<0.000000e+00> : vector<128x384xf32>
    %28 = tpu.matmul %26, %27, %cst_12 {dimension_numbers = #tpu.dot_dimension_numbers<[1], [0], [0], [1], [0, 0, 1, 1], [], []>} : vector<128x128xbf16>, vector<128x384xbf16>, vector<128x384xf32> -> vector<128x384xf32>
    %29 = vector.extract_strided_slice %28 {offsets = [0, 0], sizes = [128, 128], strides = [1, 1]} : vector<128x384xf32> to vector<128x128xf32>
    %30 = vector.extract_strided_slice %28 {offsets = [0, 128], sizes = [128, 128], strides = [1, 1]} : vector<128x384xf32> to vector<128x128xf32>
    %31 = vector.extract_strided_slice %28 {offsets = [0, 256], sizes = [128, 128], strides = [1, 1]} : vector<128x384xf32> to vector<128x128xf32>
    %32 = vector.extract_strided_slice %29 {offsets = [0, 0], sizes = [128, 32], strides = [1, 1]} : vector<128x128xf32> to vector<128x32xf32>
    %33 = vector.shape_cast %32 : vector<128x32xf32> to vector<8x16x32xf32>
    %34 = vector.extract_strided_slice %29 {offsets = [0, 32], sizes = [128, 32], strides = [1, 1]} : vector<128x128xf32> to vector<128x32xf32>
    %35 = vector.shape_cast %34 : vector<128x32xf32> to vector<8x16x32xf32>
    %36 = vector.extract_strided_slice %29 {offsets = [0, 64], sizes = [128, 32], strides = [1, 1]} : vector<128x128xf32> to vector<128x32xf32>
    %37 = vector.shape_cast %36 : vector<128x32xf32> to vector<8x16x32xf32>
    %38 = vector.extract_strided_slice %29 {offsets = [0, 96], sizes = [128, 32], strides = [1, 1]} : vector<128x128xf32> to vector<128x32xf32>
    %39 = vector.shape_cast %38 : vector<128x32xf32> to vector<8x16x32xf32>
    %40 = tpu.concatenate %33, %35, %37, %39 in 0 : vector<8x16x32xf32>, vector<8x16x32xf32>, vector<8x16x32xf32>, vector<8x16x32xf32> -> vector<32x16x32xf32>
    %41 = arith.truncf %40 : vector<32x16x32xf32> to vector<32x16x32xbf16>
    %42 = vector.extract_strided_slice %30 {offsets = [0, 0], sizes = [128, 32], strides = [1, 1]} : vector<128x128xf32> to vector<128x32xf32>
    %43 = vector.shape_cast %42 : vector<128x32xf32> to vector<8x16x32xf32>
    %44 = vector.extract_strided_slice %30 {offsets = [0, 32], sizes = [128, 32], strides = [1, 1]} : vector<128x128xf32> to vector<128x32xf32>
    %45 = vector.shape_cast %44 : vector<128x32xf32> to vector<8x16x32xf32>
    %46 = vector.extract_strided_slice %30 {offsets = [0, 64], sizes = [128, 32], strides = [1, 1]} : vector<128x128xf32> to vector<128x32xf32>
    %47 = vector.shape_cast %46 : vector<128x32xf32> to vector<8x16x32xf32>
    %48 = vector.extract_strided_slice %30 {offsets = [0, 96], sizes = [128, 32], strides = [1, 1]} : vector<128x128xf32> to vector<128x32xf32>
    %49 = vector.shape_cast %48 : vector<128x32xf32> to vector<8x16x32xf32>
    %50 = tpu.concatenate %43, %45, %47, %49 in 0 : vector<8x16x32xf32>, vector<8x16x32xf32>, vector<8x16x32xf32>, vector<8x16x32xf32> -> vector<32x16x32xf32>
    %51 = arith.truncf %50 : vector<32x16x32xf32> to vector<32x16x32xbf16>
    %52 = vector.extract_strided_slice %31 {offsets = [0, 0], sizes = [128, 32], strides = [1, 1]} : vector<128x128xf32> to vector<128x32xf32>
    %53 = vector.shape_cast %52 : vector<128x32xf32> to vector<8x16x32xf32>
    %54 = vector.extract_strided_slice %31 {offsets = [0, 32], sizes = [128, 32], strides = [1, 1]} : vector<128x128xf32> to vector<128x32xf32>
    %55 = vector.shape_cast %54 : vector<128x32xf32> to vector<8x16x32xf32>
    %56 = vector.extract_strided_slice %31 {offsets = [0, 64], sizes = [128, 32], strides = [1, 1]} : vector<128x128xf32> to vector<128x32xf32>
    %57 = vector.shape_cast %56 : vector<128x32xf32> to vector<8x16x32xf32>
    %58 = vector.extract_strided_slice %31 {offsets = [0, 96], sizes = [128, 32], strides = [1, 1]} : vector<128x128xf32> to vector<128x32xf32>
    %59 = vector.shape_cast %58 : vector<128x32xf32> to vector<8x16x32xf32>
    %60 = tpu.concatenate %53, %55, %57, %59 in 0 : vector<8x16x32xf32>, vector<8x16x32xf32>, vector<8x16x32xf32>, vector<8x16x32xf32> -> vector<32x16x32xf32>
    %61 = arith.truncf %60 : vector<32x16x32xf32> to vector<32x16x32xbf16>
    "tpu.trace_start"() <{level = 10 : i32, message = "bnd,bmd->bnm"}> : () -> ()
    %cst_13 = arith.constant dense<0.000000e+00> : vector<32x16x16xf32>
    %62 = tpu.matmul %41, %51, %cst_13 {dimension_numbers = #tpu.dot_dimension_numbers<[2], [2], [1], [1], [0, 0, 0, 1, 1, 1], [0], [0]>} : vector<32x16x32xbf16>, vector<32x16x32xbf16>, vector<32x16x16xf32> -> vector<32x16x16xf32>
    "tpu.trace_stop"() : () -> ()
    %cst_14 = arith.constant dense<0xFF800000> : vector<32x16xf32>
    %63 = vector.multi_reduction <maximumf>, %62, %cst_14 [2] : vector<32x16x16xf32> to vector<32x16xf32>
    %64 = vector.shape_cast %63 : vector<32x16xf32> to vector<32x16x1xf32>
    %65 = vector.broadcast %64 : vector<32x16x1xf32> to vector<32x16x16xf32>
    %66 = arith.subf %62, %65 : vector<32x16x16xf32>
    %67 = math.exp %66 : vector<32x16x16xf32>
    %cst_15 = arith.constant dense<0.000000e+00> : vector<32x16xf32>
    %68 = vector.multi_reduction <add>, %67, %cst_15 [2] : vector<32x16x16xf32> to vector<32x16xf32>
    %69 = vector.shape_cast %68 : vector<32x16xf32> to vector<32x16x1xf32>
    %70 = tpu.reciprocal %69 {approx = true} : vector<32x16x1xf32> -> vector<32x16x1xf32>
    %71 = vector.broadcast %70 : vector<32x16x1xf32> to vector<32x16x16xf32>
    %72 = arith.mulf %67, %71 : vector<32x16x16xf32>
    %73 = arith.truncf %72 : vector<32x16x16xf32> to vector<32x16x16xbf16>
    "tpu.trace_start"() <{level = 10 : i32, message = "bnm,bmd->bnd"}> : () -> ()
    %cst_16 = arith.constant dense<0.000000e+00> : vector<32x16x32xf32>
    %74 = tpu.matmul %73, %61, %cst_16 {dimension_numbers = #tpu.dot_dimension_numbers<[2], [1], [1], [2], [0, 0, 0, 1, 1, 2], [0], [0]>} : vector<32x16x16xbf16>, vector<32x16x32xbf16>, vector<32x16x32xf32> -> vector<32x16x32xf32>
    "tpu.trace_stop"() : () -> ()
    %75 = vector.extract_strided_slice %74 {offsets = [0, 0, 0], sizes = [8, 16, 32], strides = [1, 1, 1]} : vector<32x16x32xf32> to vector<8x16x32xf32>
    %76 = vector.shape_cast %75 : vector<8x16x32xf32> to vector<128x32xf32>
    %77 = vector.extract_strided_slice %74 {offsets = [8, 0, 0], sizes = [8, 16, 32], strides = [1, 1, 1]} : vector<32x16x32xf32> to vector<8x16x32xf32>
    %78 = vector.shape_cast %77 : vector<8x16x32xf32> to vector<128x32xf32>
    %79 = vector.extract_strided_slice %74 {offsets = [16, 0, 0], sizes = [8, 16, 32], strides = [1, 1, 1]} : vector<32x16x32xf32> to vector<8x16x32xf32>
    %80 = vector.shape_cast %79 : vector<8x16x32xf32> to vector<128x32xf32>
    %81 = vector.extract_strided_slice %74 {offsets = [24, 0, 0], sizes = [8, 16, 32], strides = [1, 1, 1]} : vector<32x16x32xf32> to vector<8x16x32xf32>
    %82 = vector.shape_cast %81 : vector<8x16x32xf32> to vector<128x32xf32>
    %83 = tpu.concatenate %76, %78, %80, %82 in 1 : vector<128x32xf32>, vector<128x32xf32>, vector<128x32xf32>, vector<128x32xf32> -> vector<128x128xf32>
    %84 = arith.truncf %83 : vector<128x128xf32> to vector<128x128xbf16>
    %c0_17 = arith.constant 0 : index
    %c0_18 = arith.constant 0 : index
    %85 = vector.load %arg5[%c0_17, %c0_18] : memref<128x128xbf16, #tpu.memory_space<vmem>>, vector<128x128xbf16>
    %cst_19 = arith.constant dense<0.000000e+00> : vector<128x128xf32>
    %86 = tpu.matmul %84, %85, %cst_19 {dimension_numbers = #tpu.dot_dimension_numbers<[1], [0], [0], [1], [0, 0, 1, 1], [], []>} : vector<128x128xbf16>, vector<128x128xbf16>, vector<128x128xf32> -> vector<128x128xf32>
    %c0_20 = arith.constant 0 : index
    %c0_21 = arith.constant 0 : index
    %87 = vector.load %arg6[%c0_20, %c0_21] : memref<1x128xf32, #tpu.memory_space<vmem>>, vector<1x128xf32>
    %88 = vector.broadcast %87 : vector<1x128xf32> to vector<128x128xf32>
    %89 = arith.addf %86, %88 : vector<128x128xf32>
    %90 = vector.shape_cast %89 : vector<128x128xf32> to vector<8x16x128xf32>
    %c0_22 = arith.constant 0 : index
    %c0_23 = arith.constant 0 : index
    %c0_24 = arith.constant 0 : index
    %91 = vector.load %arg7[%c0_22, %c0_23, %c0_24] : memref<8x16x128xf32, #tpu.memory_space<vmem>>, vector<8x16x128xf32>
    tpu.vector_store %arg7[%c0_22, %c0_23, %c0_24], %90 {strides = array<i32>} : memref<8x16x128xf32, #tpu.memory_space<vmem>>, vector<8x16x128xf32>,
    return
  }
  func.func @transform_0(%arg0: i32) -> (i32, i32, i32) {
    %c0_i32 = arith.constant 0 : i32
    %c0_i32_0 = arith.constant 0 : i32
    %c0_i32_1 = arith.constant 0 : i32
    return %arg0, %c0_i32, %c0_i32_0 : i32, i32, i32
  }
  func.func @transform_1(%arg0: i32) -> (i32, i32) {
    %c0_i32 = arith.constant 0 : i32
    %c0_i32_0 = arith.constant 0 : i32
    %c0_i32_1 = arith.constant 0 : i32
    return %c0_i32, %c0_i32_0 : i32, i32
  }
  func.func @transform_2(%arg0: i32) -> (i32, i32) {
    %c0_i32 = arith.constant 0 : i32
    %c0_i32_0 = arith.constant 0 : i32
    %c0_i32_1 = arith.constant 0 : i32
    return %c0_i32, %c0_i32_0 : i32, i32
  }
  func.func @transform_3(%arg0: i32) -> (i32, i32) {
    %c0_i32 = arith.constant 0 : i32
    %c0_i32_0 = arith.constant 0 : i32
    %c0_i32_1 = arith.constant 0 : i32
    return %c0_i32, %c0_i32_0 : i32, i32
  }
  func.func @transform_4(%arg0: i32) -> (i32, i32) {
    %c0_i32 = arith.constant 0 : i32
    %c0_i32_0 = arith.constant 0 : i32
    %c0_i32_1 = arith.constant 0 : i32
    return %c0_i32, %c0_i32_0 : i32, i32
  }
  func.func @transform_5(%arg0: i32) -> (i32, i32) {
    %c0_i32 = arith.constant 0 : i32
    %c0_i32_0 = arith.constant 0 : i32
    %c0_i32_1 = arith.constant 0 : i32
    return %c0_i32, %c0_i32_0 : i32, i32
  }
  func.func @transform_6(%arg0: i32) -> (i32, i32, i32) {
    %c0_i32 = arith.constant 0 : i32
    %c0_i32_0 = arith.constant 0 : i32
    %c0_i32_1 = arith.constant 0 : i32
    return %arg0, %c0_i32, %c0_i32_0 : i32, i32, i32
  }
}

</mosaic_0001>

<bundles_post_ra>
// kernel: tpu_custom_call.1
= control target key start
LH: loop header
LB: loop body
LE: loop exit
PB: predicated region body
PF: predicated region fallthrough
CT: control target
= control target key end

     0   :  { %11 = vsyncpa [#allocation3], 0  ;;  %s8263_s0 = inlined_call_operand.hbm [shape: f32[16,16,128], index: 0, kind: input, shape index: {}]   ;;  %s8264_s1 = inlined_call_operand.hbm [shape: f32[1,128], index: 1, kind: input, shape index: {}]   ;;  %s8265_s2 = inlined_call_operand.vmem [shape: f32[1,128], index: 2, kind: input, shape index: {}]   ;;  %s8266_s3 = inlined_call_operand.hbm [shape: bf16[128,384], index: 3, kind: input, shape index: {}]   ;;  %s8267_s4 = inlined_call_operand.hbm [shape: bf16[128,128], index: 4, kind: input, shape index: {}]   ;;  %s8268_s5 = inlined_call_operand.vmem [shape: f32[1,128], index: 5, kind: input, shape index: {}]   ;;  %s8269_s6 = inlined_call_operand.hbm [shape: f32[16,16,128], index: 6, kind: output, shape index: {}]  }
   0x1   :  { %13 = vsyncpa [#allocation3 + $0x1], 0 }
   0x2   :  { %14 = vsyncpa [#allocation6], 0 }
   0x3   :  { %15 = vsyncpa [#allocation9], 0 }
   0x4   :  { %16 = vsyncpa [#allocation4], 0 }
   0x5   :  { %18 = vsyncpa [#allocation4 + $0x1], 0  ;;  %s6191_s21 = smov 0   ;;  %s6193_s22 = smov 0  }
   0x6   :  { %s6195_s23 = smov 0   ;;  %s6197_s24 = smov 0  }
   0x7 LB: > { %s6212_s25 = sadd.s32 4294967295, %s6139_s24   ;;  %s4822_s26 = sadd.s32 4294967294, %s6139_s24   ;;  %s6139_s24 = sphi %s6197_s24, %s8477_s24   ;;  %s6135_s23 = sphi %s6195_s23, %s8476_s23   ;;  %s6131_s22 = sphi %s6193_s22, %s8475_s22   ;;  %s6127_s21 = sphi %s6191_s21, %s8474_s21  }
   0x8   : > { %p44_p0 = scmp.ne.s32.totalorder %s6131_s22, %s6127_s21  ;;  %p45_p1 = scmp.eq.s32.totalorder %s6212_s25, 0 }
   0x9   : > { %p173_p2 = scmp.eq.s32.totalorder %s6212_s25, 1  ;;  %p179_p3 = scmp.eq.s32.totalorder %s4822_s26, 1 }
   0xa   : > { %p6221_p4 = por %p45_p1, %p44_p0  ;;  %p4823_p5 = scmp.ge.s32.totalorder %s6139_s24, 1 }
   0xb   : > { %p6226_p6 = por %p179_p3, %p44_p0  ;;  %p186_p7 = scmp.lt.s32.totalorder %s6139_s24, 3 }
   0xc   : > { %s198_s7 = sshll.u32 %s8264_s1, 4  ;;  %s6141_s9 = smov [#allocation5]   ;;  %s199_s7 = int_to_ptr.hbm [resolvable:$true] %s198_s7 }
   0xd   : > { %p6234_p8 = pnand %p4823_p5, %p186_p7  ;;  %s200_s10 = sshll.u32 %s6141_s9, 4  ;;  %s201_s10 = int_to_ptr.vmem [resolvable:$true] %s200_s10 }
   0xe   : > { %s212_s13 = sshll.u32 %s8266_s3, 4  ;;  %s6142_s15 = smov [#allocation7]   ;;  %s213_s13 = int_to_ptr.hbm [resolvable:$true] %s212_s13 }
   0xf   : > { %p5104_p10 = pneg %p6234_p8  ;;  %s214_s16 = sshll.u32 %s6142_s15, 4  ;;  %s215_s16 = int_to_ptr.vmem [resolvable:$true] %s214_s16 }
  0x10   : > { %s6143_s17 = smov 192   ;;  %s6144_s18 = smov 12  }
  0x11   : > { %p6246_p11 = pnand %p5104_p10, %p45_p1  ;;  %s226_s26 = sshll.u32 %s8267_s4, 4  ;;  %s227_s26 = int_to_ptr.hbm [resolvable:$true] %s226_s26 }
  0x12   : > { %s6145_s29 = smov [#allocation8]   ;;  %s6147_s9 = smov 4  }
  0x13   : > { %5107 = dma.hbm_to_vmem [thread:$0]  (!%p6246_p11), %s199_s7, 16, %s201_s10, [#allocation6]  }
  0x14   : > { %5110 = dma.hbm_to_vmem [thread:$0]  (!%p6246_p11), %s213_s13, 3072, %s215_s16, [#allocation6], %s6143_s17, %s6143_s17, %s6144_s18  }
  0x15   : > { %s228_s30 = sshll.u32 %s6145_s29, 4  ;;  %s6146_s7 = smov 64   ;;  %s229_s30 = int_to_ptr.vmem [resolvable:$true] %s228_s30 }
  0x16   : > { %5113 = dma.hbm_to_vmem [thread:$0]  (!%p6246_p11), %s227_s26, 1024, %s229_s30, [#allocation9], %s6146_s7, %s6146_s7, %s6147_s9  }
  0x17   : > { %s6260_s10 = sadd.s32 1, %s6139_s24   ;;  %s31_s12 = sadd.s32 1, %s6135_s23 }
  0x18   : > { %s28_s11 = ssub.s32 %s6139_s24, %s6260_s10  ;;  %p38_p13 = scmp.ne.s32.totalorder %s6135_s23, %s6131_s22 }
  0x19   : > { %p29_p12 = scmp.eq.s32.totalorder %s28_s11, 0  ;;  %p39_p0 = scmp.eq.s32.totalorder %s6139_s24, 0 }
  0x1a   : > { %p5125_p3 = scmp.lt.s32.totalorder %s6139_s24, 2  ;;  %p6274_p7 = por %p173_p2, %p38_p13 }
  0x1b   : > { %s6270_s13 = scalar_select %p29_p12, %s6135_s23, %s31_s12  }
  0x1c   : > { %p40_p5 = por %p39_p0, %p38_p13  ;;  %s245_s14 = sand.u32 1, %s6135_s23  }
  0x1d   : > { %s5037_s16 = sshll.u32 %s6139_s24, 7  ;;  %s4828_s17 = sshll.u32 %s245_s14, 7 }
  0x1e   : > { %s255_s20 = scalar_lea.hbm %s8263_s0, %s5037_s16  ;;  %s249_s29 = scalar_lea.vmem [#allocation2], %s4828_s17 }
  0x1f   : > { %s256_s26 = sshll.u32 %s255_s20, 4  ;;  %s258_s30 = sshll.u32 %s249_s29, 4  ;;  %s257_s26 = int_to_ptr.hbm [resolvable:$true] %s256_s26  ;;  %s259_s30 = int_to_ptr.vmem [resolvable:$true] %s258_s30 }
  0x20   : > { %p6285_p10 = pnand %p5125_p3, %p40_p5  ;;  %s246_s9 = scalar_lea.sflag [#allocation3], %s245_s14 }
  0x21   : > { %s6035_s11 = sshra.s32 %s257_s26, 4  ;;  %s6042_s18 = scalar_lea.hbm %s8263_s0, 256  ;;  %s6036_s11 = int_to_ptr.hbm [resolvable:$true] %s6035_s11 }
  0x22   : > { %s6037_s12 = scalar_lea.hbm %s6036_s11, 128  ;;  %p6039_p11 = pneg %p6285_p10 }
  0x23   : > { %p6038_p2 = scmp.ne.s32.totalorder %s6036_s11, %s6037_s12  ;;  %p6043_p0 = scmp.lt.s32.totalorder %s6036_s11, %s8263_s0 }
  0x24   : > { %p6044_p3 = scmp.lt.s32.totalorder %s6042_s18, %s6037_s12 }
  0x25   : > { %p6040_p12 = pnand %p6039_p11, %p6038_p2 }
  0x26   : > { %p6045_p5 = por %p6044_p3, %p6043_p0 }
  0x27   : > { %p6041_p13 = pneg %p6040_p12 }
  0x29   : > { %p6046_p9 = pnand %p6045_p5, %p6041_p13 }
  0x2b   : > { %6049 = shalt.err (!%p6046_p9)
}
  0x2c   : > { %s6148_s14 = smov 128   ;;  %s6149_s29 = smov 8  }
  0x2d   : > { %5117 = dma.hbm_to_vmem [thread:$0]  (!%p6285_p10), %s257_s26, 2048, %s259_s30, %s246_s9, %s6148_s14, %s6148_s14, %s6149_s29  }
  0x2e   : > { %270 = sbr.rel (%p6234_p8) target bundleno = 1700 (0x6a4), region = 44 }
  0x33   : > { %s6302_s16 = sand.u32 1, %s6131_s22  }
  0x34   : > { %s4833_s11 = sshll.u32 %s6302_s16, 7  ;;  %s273_s12 = scalar_lea.sflag [#allocation3], %s6302_s16 }
  0x35   : > { %s6308_s17 = scalar_lea.vmem [#allocation2], %s4833_s11 }
  0x36   : > { %6110 = dma.done.wait (%p6221_p4), %s273_s12, 2048  }
  0x37   : > { %6112 = vsyncadd (%p6221_p4), %s273_s12, 4294965248 }
  0x38   : > { %6114 = dma.done.wait (%p45_p1), [#allocation6], 3088  }
  0x39   : > { %6116 = vsyncadd (%p45_p1), [#allocation6], 4294964208 }
  0x3a   : > { %6118 = dma.done.wait (%p45_p1), [#allocation9], 1024  }
  0x3b   : > { %6120 = vsyncadd (%p45_p1), [#allocation9], 4294966272  ;;  %v6323_v0 = vld [vmem:[%s6308_s17 + $0x20] sm:$0xff]  ;;  %v326_v1 = vld [vmem:[%s6308_s17 + $0x10] sm:$0xff]  ;;  %v6150_v16 = vmov 128.0   ;;  %s6151_s26 = smov 32  }
  0x3c   : > { %v324_v2 = vld [vmem:[%s6308_s17] sm:$0xff]  ;;  %348 = vadd.xlane.f32.xlu2 %v6323_v0  ;;  %344 = vadd.xlane.f32.xlu1 %v326_v1  ;;  %v329_v3 = vld [vmem:[%s6308_s17 + $0x28] sm:$0xff]  ;;  %v327_v4 = vld [vmem:[%s6308_s17 + $0x18] sm:$0xff]  ;;  %5655 = vrcp.f32 %v6150_v16  ;;  %s6152_s30 = smov 96   ;;  %s6153_s7 = smov 64  }
  0x3d   : > { %340 = vadd.xlane.f32.xlu0 %v324_v2  ;;  %v325_v5 = vld [vmem:[%s6308_s17 + $0x8] sm:$0xff]  ;;  %v332_v6 = vld [vmem:[%s6308_s17 + $0x40] sm:$0xff]  ;;  %v6333_v7 = vld [vmem:[%s6308_s17 + $0x38] sm:$0xff]  ;;  %s8211_s19 = scalar_lea.vmem [#allocation10], %s4833_s11  ;;  %s5071_s20 = sshll.u32 %s6212_s25, 7 }
  0x3e   : > { %v330_v8 = vld [vmem:[%s6308_s17 + $0x30] sm:$0xff]  ;;  %v6338_v9 = vld [vmem:[%s6308_s17 + $0x58] sm:$0xff]  ;;  %v6344_v11 = vld [vmem:[%s6308_s17 + $0x48] sm:$0xff]  ;;  %s4716_s11 = scalar_lea.hbm %s8269_s6, %s5071_s20  ;;  %s4717_s12 = sshll.u32 %s8211_s19, 4  ;;  %s4718_s12 = int_to_ptr.vmem [resolvable:$true] %s4717_s12 }
  0x3f   : > { %v6341_v10 = vld [vmem:[%s6308_s17 + $0x50] sm:$0xff]  ;;  %v6353_v13 = vld [vmem:[%s6308_s17 + $0x68] sm:$0xff]  ;;  %v6356_v14 = vld [vmem:[%s6308_s17 + $0x60] sm:$0xff]  ;;  %s4704_s25 = scalar_lea.sflag [#allocation4], %s6302_s16 }
  0x40   : > { %v6350_v12 = vld [vmem:[%s6308_s17 + $0x70] sm:$0xff]  ;;  %v6362_v15 = vld [vmem:[%s6308_s17 + $0x78] sm:$0xff]  ;;  %s4719_s17 = sshll.u32 %s4716_s11, 4  ;;  %s4720_s17 = int_to_ptr.hbm [resolvable:$true] %s4719_s17 }
  0x41   : > { %s6079_s27 = sshra.s32 %s4720_s17, 4  ;;  %s6080_s27 = int_to_ptr.hbm [resolvable:$true] %s6079_s27 }
  0x42   : > { %v5656_v17 = vpop.eup %5655  ;;  %s6081_s8 = scalar_lea.hbm %s6080_s27, 128  ;;  %p6086_p9 = scmp.lt.s32.totalorder %s6080_s27, %s8269_s6 }
  0x43   : > { %v373_v18 = vmul.f32 128.0, %v5656_v17  ;;  %vm377_vm0 = vweird.f32 %v5656_v17  ;;  %p6082_p1 = scmp.ne.s32.totalorder %s6080_s27, %s6081_s8 }
  0x44   : > { %350 = vadd.xlane.f32.xlu2 %v329_v3  ;;  %346 = vadd.xlane.f32.xlu1 %v327_v4 }
  0x45   : > { %342 = vadd.xlane.f32.xlu0 %v325_v5  ;;  %v374_v19 = vsub.f32 1.0, %v373_v18  ;;  %p6083_p4 = pnand %p6082_p1, %p6274_p7 }
  0x47   : > { %v375_v20 = vmul.f32 %v5656_v17, %v374_v19  ;;  %p6084_p8 = pneg %p6083_p4 }
  0x49   : > { %v376_v21 = vadd.f32 %v5656_v17, %v375_v20 }
  0x4b   : > { %v6365_v22 = vsel %vm377_vm0, %v5656_v17, %v376_v21 }
  0x4c   : > { %356 = vadd.xlane.f32.xlu2 %v332_v6  ;;  %354 = vadd.xlane.f32.xlu1 %v6333_v7 }
  0x4d   : > { %352 = vadd.xlane.f32.xlu0 %v330_v8 }
  0x54   : > { %362 = vadd.xlane.f32.xlu2 %v6338_v9  ;;  %360 = vadd.xlane.f32.xlu1 %v6341_v10 }
  0x55   : > { %358 = vadd.xlane.f32.xlu0 %v6344_v11 }
  0x5c   : > { %368 = vadd.xlane.f32.xlu2 %v6350_v12  ;;  %366 = vadd.xlane.f32.xlu1 %v6353_v13 }
  0x5d   : > { %364 = vadd.xlane.f32.xlu0 %v6356_v14 }
  0x65   : > { %370 = vadd.xlane.f32.xlu0 %v6362_v15 }
  0xaf   : > { %v349_v23 = vpop.xlane.xlu2 %348  ;;  %v345_v24 = vpop.xlane.xlu1 %344 }
  0xb0   : > { %v381_v25 = vmul.f32 %v6365_v22, %v345_v24  ;;  %v341_v26 = vpop.xlane.xlu0 %340  ;;  %v383_v40 = vmul.f32 %v6365_v22, %v349_v23 }
  0xb1   : > { %v379_v27 = vmul.f32 %v6365_v22, %v341_v26  ;;  %v4924_v26 = vld [vmem:[#allocation7 + $0xa8] sm:$0xf] }
  0xb2   : > { %v6369_v28 = vsub.f32 %v326_v1, %v381_v25  ;;  %v6394_v46 = vsub.f32 %v6323_v0, %v383_v40 }
  0xb3   : > { %v6371_v29 = vsub.f32 %v324_v2, %v379_v27  ;;  %v5060_v27 = vld [vmem:[#allocation7 + $0xb0] sm:$0xf0] }
  0xb4   : > { %v413_v30 = vmul.f32 %v6369_v28, %v6369_v28  ;;  %v415_v52 = vmul.f32 %v6394_v46, %v6394_v46 }
  0xb5   : > { %v411_v31 = vmul.f32 %v6371_v29, %v6371_v29 }
  0xb6   : > { %431 = vadd.xlane.f32.xlu0 %v413_v30  ;;  %v5059_v30 = vld [vmem:[#allocation7 + $0xac] sm:$0xf] }
  0xb7   : > { %427 = vadd.xlane.f32.xlu1 %v411_v31  ;;  %v351_v32 = vpop.xlane.xlu2 %350  ;;  %v347_v33 = vpop.xlane.xlu1 %346  ;;  %v4925_v31 = vor.u32 %v5060_v27, %v4924_v26  ;;  %v5044_v26 = vld [vmem:[#allocation7 + $0x34] sm:$0xf] }
  0xb8   : > { %v384_v34 = vmul.f32 %v6365_v22, %v351_v32  ;;  %v382_v35 = vmul.f32 %v6365_v22, %v347_v33  ;;  %v343_v36 = vpop.xlane.xlu0 %342  ;;  %v4932_v32 = vld [vmem:[#allocation7 + $0xb0] sm:$0xf]  ;;  %v5061_v33 = vld [vmem:[#allocation7 + $0xb8] sm:$0xf0] }
  0xb9   : > { %v380_v37 = vmul.f32 %v6365_v22, %v343_v36  ;;  %875 = vmatpush.bf16.msra.mxu0 %v4925_v31  ;;  %v4912_v36 = vld [vmem:[#allocation7 + $0x90] sm:$0xf]  ;;  %v4872_v31 = vld [vmem:[#allocation7 + $0x38] sm:$0xf] }
  0xba   : > { %v6380_v38 = vsub.f32 %v329_v3, %v384_v34  ;;  %v6382_v39 = vsub.f32 %v327_v4, %v382_v35  ;;  %v4933_v35 = vor.u32 %v5061_v33, %v4932_v32 }
  0xbb   : > { %v6385_v41 = vsub.f32 %v325_v5, %v380_v37  ;;  %v5056_v37 = vld [vmem:[#allocation7 + $0x94] sm:$0xf] }
  0xbc   : > { %v416_v42 = vmul.f32 %v6380_v38, %v6380_v38  ;;  %v414_v43 = vmul.f32 %v6382_v39, %v6382_v39  ;;  %973 = vmatpush.bf16.msra.mxu2 %v4933_v35 }
  0xbd   : > { %v412_v44 = vmul.f32 %v6385_v41, %v6385_v41 }
  0xbe   : > { %437 = vadd.xlane.f32.xlu0 %v416_v42  ;;  %v4914_v42 = vld [vmem:[#allocation7 + $0x9c] sm:$0xf0] }
  0xbf   : > { %433 = vadd.xlane.f32.xlu1 %v414_v43  ;;  %429 = vadd.xlane.f32.xlu2 %v412_v44  ;;  %v357_v45 = vpop.xlane.xlu2 %356  ;;  %v355_v47 = vpop.xlane.xlu1 %354  ;;  %v4920_v43 = vld [vmem:[#allocation7 + $0x98] sm:$0xf]  ;;  %v5058_v44 = vld [vmem:[#allocation7 + $0xa0] sm:$0xf0] }
  0xc0   : > { %v387_v48 = vmul.f32 %v6365_v22, %v357_v45  ;;  %v353_v49 = vpop.xlane.xlu0 %352  ;;  %v386_v54 = vmul.f32 %v6365_v22, %v355_v47  ;;  %v4917_v45 = vor.u32 %v5056_v37, %v4914_v42  ;;  %v4921_v47 = vor.u32 %v5058_v44, %v4920_v43  ;;  %v5042_v37 = vld [vmem:[#allocation7 + $0x20] sm:$0xf0]  ;;  %v4854_v44 = vld [vmem:[#allocation7 + $0x24] sm:$0xf0] }
  0xc1   : > { %v385_v50 = vmul.f32 %v6365_v22, %v353_v49  ;;  %v5054_v49 = vld [vmem:[#allocation7 + $0x80] sm:$0xf0] }
  0xc2   : > { %v6398_v51 = vsub.f32 %v332_v6, %v387_v48  ;;  %v6410_v58 = vsub.f32 %v6333_v7, %v386_v54  ;;  %974 = vmatpush.bf16.msra.mxu2 %v4921_v47  ;;  %v4900_v48 = vld [vmem:[#allocation7 + $0x78] sm:$0xf]  ;;  %v4902_v54 = vld [vmem:[#allocation7 + $0x84] sm:$0xf0]  ;;  %v5043_v47 = vld [vmem:[#allocation7 + $0x28] sm:$0xf0] }
  0xc3   : > { %v6402_v53 = vsub.f32 %v330_v8, %v385_v50  ;;  %v5053_v50 = vld [vmem:[#allocation7 + $0x7c] sm:$0xf] }
  0xc4   : > { %v419_v55 = vmul.f32 %v6398_v51, %v6398_v51  ;;  %v418_v0 = vmul.f32 %v6410_v58, %v6410_v58 }
  0xc5   : > { %v417_v56 = vmul.f32 %v6402_v53, %v6402_v53 }
  0xc6   : > { %443 = vadd.xlane.f32.xlu0 %v419_v55  ;;  %v4908_v55 = vld [vmem:[#allocation7 + $0x80] sm:$0xf] }
  0xc7   : > { %435 = vadd.xlane.f32.xlu2 %v415_v52  ;;  %439 = vadd.xlane.f32.xlu1 %v417_v56  ;;  %v363_v57 = vpop.xlane.xlu2 %362  ;;  %v361_v59 = vpop.xlane.xlu1 %360  ;;  %v4901_v52 = vor.u32 %v5054_v49, %v4900_v48  ;;  %v5055_v56 = vld [vmem:[#allocation7 + $0x88] sm:$0xf0] }
  0xc8   : > { %v390_v60 = vmul.f32 %v6365_v22, %v363_v57  ;;  %v359_v61 = vpop.xlane.xlu0 %358  ;;  %v389_v2 = vmul.f32 %v6365_v22, %v361_v59  ;;  %v4905_v57 = vor.u32 %v5053_v50, %v4902_v54  ;;  %v4909_v59 = vor.u32 %v5055_v56, %v4908_v55 }
  0xc9   : > { %v388_v62 = vmul.f32 %v6365_v22, %v359_v61  ;;  %v5051_v61 = vld [vmem:[#allocation7 + $0x68] sm:$0xf0] }
  0xca   : > { %v6415_v63 = vsub.f32 %v6338_v9, %v390_v60  ;;  %v6428_v6 = vsub.f32 %v6341_v10, %v389_v2  ;;  %975 = vmatpush.bf16.msra.mxu2 %v4909_v59  ;;  %v4888_v60 = vld [vmem:[#allocation7 + $0x60] sm:$0xf]  ;;  %v4890_v2 = vld [vmem:[#allocation7 + $0x6c] sm:$0xf0] }
  0xcb   : > { %v6420_v1 = vsub.f32 %v6344_v11, %v388_v62  ;;  %v5050_v62 = vld [vmem:[#allocation7 + $0x64] sm:$0xf]  ;;  %v4840_v59 = vld [vmem:[#allocation7] sm:$0xf] }
  0xcc   : > { %v422_v3 = vmul.f32 %v6415_v63, %v6415_v63  ;;  %v421_v17 = vmul.f32 %v6428_v6, %v6428_v6 }
  0xcd   : > { %v420_v4 = vmul.f32 %v6420_v1, %v6420_v1 }
  0xce   : > { %449 = vadd.xlane.f32.xlu0 %v422_v3  ;;  %v4896_v3 = vld [vmem:[#allocation7 + $0x68] sm:$0xf] }
  0xcf   : > { %441 = vadd.xlane.f32.xlu2 %v418_v0  ;;  %445 = vadd.xlane.f32.xlu1 %v420_v4  ;;  %v369_v5 = vpop.xlane.xlu2 %368  ;;  %v367_v9 = vpop.xlane.xlu1 %366  ;;  %v4889_v0 = vor.u32 %v5051_v61, %v4888_v60  ;;  %v5052_v4 = vld [vmem:[#allocation7 + $0x70] sm:$0xf0]  ;;  %v5039_v60 = vld [vmem:[#allocation7 + $0x8] sm:$0xf0]  ;;  %v5038_v61 = vld [vmem:[#allocation7 + $0x4] sm:$0xf] }
  0xd0   : > { %v393_v7 = vmul.f32 %v6365_v22, %v369_v5  ;;  %v365_v8 = vpop.xlane.xlu0 %364  ;;  %v392_v19 = vmul.f32 %v6365_v22, %v367_v9  ;;  %v4893_v5 = vor.u32 %v5050_v62, %v4890_v2  ;;  %v5048_v9 = vld [vmem:[#allocation7 + $0x50] sm:$0xf0]  ;;  %v4841_v2 = vor.u32 %v5039_v60, %v4840_v59 }
  0xd1   : > { %v391_v11 = vmul.f32 %v6365_v22, %v365_v8  ;;  %v4876_v8 = vld [vmem:[#allocation7 + $0x48] sm:$0xf] }
  0xd2   : > { %v6433_v16 = vsub.f32 %v6350_v12, %v393_v7  ;;  %v6446_v12 = vsub.f32 %v6353_v13, %v392_v19  ;;  %v4926_v13 = vld [vmem:[#allocation7 + $0xb4] sm:$0xf0]  ;;  %v4897_v7 = vor.u32 %v5052_v4, %v4896_v3  ;;  %v4842_v3 = vld [vmem:[#allocation7 + $0xc] sm:$0xf0]  ;;  %v4848_v4 = vld [vmem:[#allocation7 + $0x8] sm:$0xf] }
  0xd3   : > { %v6438_v18 = vsub.f32 %v6356_v14, %v391_v11  ;;  %v4929_v34 = vor.u32 %v5059_v30, %v4926_v13  ;;  %v5047_v11 = vld [vmem:[#allocation7 + $0x4c] sm:$0xf]  ;;  %v4878_v19 = vld [vmem:[#allocation7 + $0x54] sm:$0xf0]  ;;  %v4866_v30 = vld [vmem:[#allocation7 + $0x3c] sm:$0xf0] }
  0xd4   : > { %v425_v10 = vmul.f32 %v6433_v16, %v6433_v16  ;;  %v424_v14 = vmul.f32 %v6446_v12, %v6446_v12  ;;  %976 = vmatpush.bf16.msra.mxu2 %v4897_v7  ;;  %v5046_v13 = vld [vmem:[#allocation7 + $0x40] sm:$0xf0]  ;;  %v4869_v32 = vor.u32 %v5044_v26, %v4866_v30 }
  0xd5   : > { %v423_v20 = vmul.f32 %v6438_v18, %v6438_v18  ;;  %924 = vmatpush.bf16.msra.mxu1 %v4929_v34  ;;  %v4873_v33 = vor.u32 %v5046_v13, %v4872_v31 }
  0xd6   : > { %455 = vadd.xlane.f32.xlu0 %v425_v10  ;;  %v4884_v10 = vld [vmem:[#allocation7 + $0x50] sm:$0xf] }
  0xd7   : > { %447 = vadd.xlane.f32.xlu2 %v421_v17  ;;  %451 = vadd.xlane.f32.xlu1 %v423_v20  ;;  %v4877_v17 = vor.u32 %v5048_v9, %v4876_v8  ;;  %v5049_v20 = vld [vmem:[#allocation7 + $0x58] sm:$0xf0]  ;;  %v4845_v9 = vor.u32 %v5038_v61, %v4842_v3 }
  0xd8   : > { %v371_v21 = vpop.xlane.xlu0 %370 }
  0xd9   : > { %v394_v23 = vmul.f32 %v6365_v22, %v371_v21  ;;  %925 = vmatpush.bf16.msra.mxu1 %v4917_v45  ;;  %v4881_v21 = vor.u32 %v5047_v11, %v4878_v19  ;;  %v4860_v45 = vld [vmem:[#allocation7 + $0x20] sm:$0xf] }
  0xda   : > { %v4861_v50 = vor.u32 %v5043_v47, %v4860_v45 }
  0xdb   : > { %v6452_v24 = vsub.f32 %v6362_v15, %v394_v23  ;;  %v5057_v15 = vld [vmem:[#allocation7 + $0x98] sm:$0xf0]  ;;  %v4885_v23 = vor.u32 %v5049_v20, %v4884_v10 }
  0xdc   : > { %v4913_v40 = vor.u32 %v5057_v15, %v4912_v36  ;;  %v4852_v15 = vld [vmem:[#allocation7 + $0x18] sm:$0xf] }
  0xdd   : > { %v426_v25 = vmul.f32 %v6452_v24, %v6452_v24  ;;  %926 = vmatpush.bf16.msra.mxu1 %v4905_v57  ;;  %977 = vmatpush.bf16.msra.mxu2 %v4885_v23  ;;  %v4853_v43 = vor.u32 %v5042_v37, %v4852_v15 }
  0xde   : > { %876 = vmatpush.bf16.msra.mxu0 %v4913_v40  ;;  %v5041_v40 = vld [vmem:[#allocation7 + $0x1c] sm:$0xf] }
  0xdf   : > { %453 = vadd.xlane.f32.xlu2 %v424_v14  ;;  %457 = vadd.xlane.f32.xlu1 %v426_v25  ;;  %v4864_v14 = vld [vmem:[#allocation7 + $0x30] sm:$0xf]  ;;  %v5045_v25 = vld [vmem:[#allocation7 + $0x38] sm:$0xf0]  ;;  %v4857_v49 = vor.u32 %v5041_v40, %v4854_v44 }
  0xe0   : > { %v4865_v27 = vor.u32 %v5045_v25, %v4864_v14 }
  0xe1   : > { %927 = vmatpush.bf16.msra.mxu1 %v4893_v5  ;;  %978 = vmatpush.bf16.msra.mxu2 %v4873_v33  ;;  %v5040_v5 = vld [vmem:[#allocation7 + $0x10] sm:$0xf0] }
  0xe2   : > { %877 = vmatpush.bf16.msra.mxu0 %v4901_v52  ;;  %v4849_v11 = vor.u32 %v5040_v5, %v4848_v4 }
  0xe5   : > { %928 = vmatpush.bf16.msra.mxu1 %v4881_v21  ;;  %979 = vmatpush.bf16.msra.mxu2 %v4861_v50 }
  0xe6   : > { %878 = vmatpush.bf16.msra.mxu0 %v4889_v0 }
  0xe9   : > { %929 = vmatpush.bf16.msra.mxu1 %v4869_v32  ;;  %980 = vmatpush.bf16.msra.mxu2 %v4849_v11 }
  0xea   : > { %879 = vmatpush.bf16.msra.mxu0 %v4877_v17 }
  0xed   : > { %930 = vmatpush.bf16.msra.mxu1 %v4857_v49 }
  0xee   : > { %880 = vmatpush.bf16.msra.mxu0 %v4865_v27 }
  0xf1   : > { %931 = vmatpush.bf16.msra.mxu1 %v4845_v9 }
  0xf2   : > { %881 = vmatpush.bf16.msra.mxu0 %v4853_v43 }
  0xf6   : > { %882 = vmatpush.bf16.msra.mxu0 %v4841_v2 }
 0x129   : > { %v432_v34 = vpop.xlane.xlu0 %431 }
 0x12a   : > { %v428_v35 = vpop.xlane.xlu1 %427  ;;  %v461_v36 = vmul.f32 %v432_v34, %v6365_v22 }
 0x12b   : > { %v459_v42 = vmul.f32 %v428_v35, %v6365_v22 }
 0x12c   : > { %v6458_v48 = vadd.f32 1e-05, %v461_v36 }
 0x12d   : > { %v6460_v52 = vadd.f32 1e-05, %v459_v42 }
 0x12e   : > { %5657 = vrsqrt.f32 %v6458_v48  ;;  %vm517_vm2 = vweird.f32 %v6458_v48 }
 0x12f   : > { %5659 = vrsqrt.f32 %v6460_v52  ;;  %vm497_vm1 = vweird.f32 %v6460_v52 }
 0x131   : > { %v438_v54 = vpop.xlane.xlu0 %437 }
 0x132   : > { %v434_v55 = vpop.xlane.xlu1 %433  ;;  %v430_v56 = vpop.xlane.xlu2 %429  ;;  %v464_v57 = vmul.f32 %v438_v54, %v6365_v22 }
 0x133   : > { %v462_v62 = vmul.f32 %v434_v55, %v6365_v22  ;;  %v460_v0 = vmul.f32 %v430_v56, %v6365_v22 }
 0x134   : > { %v6467_v7 = vpop.eup %5657  ;;  %v6469_v8 = vadd.f32 1e-05, %v464_v57 }
 0x135   : > { %v6471_v17 = vpop.eup %5659  ;;  %v6473_v19 = vadd.f32 1e-05, %v462_v62  ;;  %v476_v10 = vadd.f32 1e-05, %v460_v0  ;;  %v512_v23 = vmul.f32 %v6467_v7, %v6458_v48  ;;  %vm518_vm5 = vweird.f32 %v6467_v7 }
 0x136   : > { %v492_v20 = vmul.f32 %v6471_v17, %v6460_v52  ;;  %5661 = vrsqrt.f32 %v6469_v8  ;;  %vm498_vm3 = vweird.f32 %v6471_v17  ;;  %vm6536_vm9 = vmor %vm517_vm2, %vm518_vm5  ;;  %vm547_vm10 = vweird.f32 %v6469_v8 }
 0x137   : > { %5663 = vrsqrt.f32 %v6473_v19  ;;  %v513_v32 = vmul.f32 %v6467_v7, %v512_v23  ;;  %vm6520_vm6 = vmor %vm497_vm1, %vm498_vm3  ;;  %vm507_vm7 = vweird.f32 %v476_v10  ;;  %vm527_vm11 = vweird.f32 %v6473_v19 }
 0x138   : > { %v493_v21 = vmul.f32 %v6471_v17, %v492_v20  ;;  %5665 = vrsqrt.f32 %v476_v10 }
 0x139   : > { %v444_v14 = vpop.xlane.xlu0 %443  ;;  %v514_v42 = vmul.f32 0.5, %v513_v32 }
 0x13a   : > { %v436_v25 = vpop.xlane.xlu2 %435  ;;  %v440_v26 = vpop.xlane.xlu1 %439  ;;  %v467_v27 = vmul.f32 %v444_v14, %v6365_v22  ;;  %v494_v13 = vmul.f32 0.5, %v493_v21 }
 0x13b   : > { %v463_v30 = vmul.f32 %v436_v25, %v6365_v22  ;;  %v465_v45 = vmul.f32 %v440_v26, %v6365_v22  ;;  %v515_v60 = vsub.f32 1.5, %v514_v42 }
 0x13c   : > { %v6484_v31 = vpop.eup %5661  ;;  %v6493_v15 = vadd.f32 1e-05, %v467_v27  ;;  %v495_v40 = vsub.f32 1.5, %v494_v13 }
 0x13d   : > { %v6487_v33 = vpop.eup %5663  ;;  %v6489_v34 = vadd.f32 1e-05, %v463_v30  ;;  %v542_v36 = vmul.f32 %v6484_v31, %v6469_v8  ;;  %v6510_v2 = vadd.f32 1e-05, %v465_v45  ;;  %v516_v23 = vmul.f32 %v6467_v7, %v515_v60 }
 0x13e   : > { %v5666_v35 = vpop.eup %5665  ;;  %v522_v43 = vmul.f32 %v6487_v33, %v6473_v19  ;;  %v496_v59 = vmul.f32 %v6471_v17, %v495_v40  ;;  %vm548_vm12 = vweird.f32 %v6484_v31  ;;  %vm528_vm13 = vweird.f32 %v6487_v33 }
 0x13f   : > { %v502_v37 = vmul.f32 %v5666_v35, %v476_v10  ;;  %5667 = vrsqrt.f32 %v6489_v34  ;;  %v543_v49 = vmul.f32 %v6484_v31, %v542_v36  ;;  %vm508_vm4 = vweird.f32 %v5666_v35  ;;  %vm6579_vm14 = vmor %vm547_vm10, %vm548_vm12 }
 0x140   : > { %5669 = vrsqrt.f32 %v6493_v15  ;;  %v523_v62 = vmul.f32 %v6487_v33, %v522_v43  ;;  %v500_v21 = vsel %vm6520_vm6, %v6471_v17, %v496_v59  ;;  %vm6530_vm8 = vmor %vm507_vm7, %vm508_vm4  ;;  %v520_v42 = vsel %vm6536_vm9, %v6467_v7, %v516_v23 }
 0x141   : > { %v503_v44 = vmul.f32 %v5666_v35, %v502_v37  ;;  %v450_v47 = vpop.xlane.xlu0 %449  ;;  %v544_v4 = vmul.f32 0.5, %v543_v49  ;;  %v651_v36 = vmul.f32 %v500_v21, %v6371_v29  ;;  %v6553_v37 = vld [vmem:[#allocation5] ss:$0 sm:$0xff]  ;;  %vm537_vm15 = vweird.f32 %v6489_v34  ;;  %vm6610_vm2 = vmor %vm527_vm11, %vm528_vm13 }
 0x142   : > { %v442_v50 = vpop.xlane.xlu2 %441  ;;  %v446_v54 = vpop.xlane.xlu1 %445  ;;  %v470_v55 = vmul.f32 %v450_v47, %v6365_v22  ;;  %v524_v25 = vmul.f32 0.5, %v523_v62  ;;  %v6588_v59 = vmul.f32 %v520_v42, %v6369_v28  ;;  %vm577_vm0 = vweird.f32 %v6493_v15 }
 0x143   : > { %v504_v56 = vmul.f32 0.5, %v503_v44  ;;  %v468_v57 = vmul.f32 %v446_v54, %v6365_v22  ;;  %v545_v17 = vsub.f32 1.5, %v544_v4  ;;  %v466_v13 = vmul.f32 %v442_v50, %v6365_v22  ;;  %v6600_v4 = vld [vmem:[%s8265_s2] ss:$0 sm:$0xff] }
 0x144   : > { %v6507_v61 = vadd.f32 1e-05, %v470_v55  ;;  %v525_v44 = vsub.f32 1.5, %v524_v25 }
 0x145   : > { %v505_v0 = vsub.f32 1.5, %v504_v56  ;;  %v6512_v3 = vpop.eup %5667  ;;  %v6515_v5 = vadd.f32 1e-05, %v468_v57  ;;  %v6568_v49 = vmul.f32 %v6484_v31, %v545_v17  ;;  %v6584_v56 = vadd.f32 1e-05, %v466_v13 }
 0x146   : > { %5671 = vrsqrt.f32 %v6507_v61  ;;  %v6524_v20 = vpop.eup %5669  ;;  %v532_v26 = vmul.f32 %v6512_v3, %v6489_v34  ;;  %v671_v57 = vmul.f32 %v6553_v37, %v651_v36  ;;  %v526_v28 = vmul.f32 %v6487_v33, %v525_v44 }
 0x147   : > { %v506_v11 = vmul.f32 %v5666_v35, %v505_v0  ;;  %5673 = vrsqrt.f32 %v6510_v2  ;;  %v572_v27 = vmul.f32 %v6524_v20, %v6493_v15  ;;  %vm607_vm1 = vweird.f32 %v6507_v61 }
 0x148   : > { %5675 = vrsqrt.f32 %v6515_v5  ;;  %v533_v45 = vmul.f32 %v6512_v3, %v532_v26  ;;  %v550_v23 = vsel %vm6579_vm14, %v6484_v31, %v6568_v49  ;;  %vm538_vm3 = vweird.f32 %v6512_v3 }
 0x149   : > { %v510_v10 = vsel %vm6530_vm8, %v5666_v35, %v506_v11  ;;  %v456_v47 = vpop.xlane.xlu0 %455  ;;  %v573_v7 = vmul.f32 %v6524_v20, %v572_v27  ;;  %v691_v27 = vadd.f32 %v6600_v4, %v671_v57  ;;  %v530_v13 = vsel %vm6610_vm2, %v6487_v33, %v526_v28  ;;  %vm6663_vm7 = vmor %vm537_vm15, %vm538_vm3 }
 0x14a   : > { %v448_v48 = vpop.xlane.xlu2 %447  ;;  %v452_v30 = vpop.xlane.xlu1 %451  ;;  %v652_v43 = vmul.f32 %v510_v10, %v6385_v41  ;;  %v473_v8 = vmul.f32 %v456_v47, %v6365_v22  ;;  %v534_v9 = vmul.f32 0.5, %v533_v45  ;;  %vm578_vm4 = vweird.f32 %v6524_v20 }
 0x14b   : > { %v469_v32 = vmul.f32 %v448_v48, %v6365_v22  ;;  %v471_v35 = vmul.f32 %v452_v30, %v6365_v22  ;;  %v574_v14 = vmul.f32 0.5, %v573_v7  ;;  %vm587_vm5 = vweird.f32 %v6515_v5  ;;  %vm6675_vm10 = vmor %vm577_vm0, %vm578_vm4 }
 0x14c   : > { %v6555_v40 = vpop.eup %5671  ;;  %v672_v0 = vmul.f32 %v6553_v37, %v652_v43  ;;  %v6624_v17 = vadd.f32 1e-05, %v473_v8  ;;  %vm567_vm14 = vweird.f32 %v6584_v56 }
 0x14d   : > { %v602_v29 = vmul.f32 %v6555_v40, %v6507_v61  ;;  %v6571_v50 = vadd.f32 1e-05, %v469_v32  ;;  %v6573_v54 = vadd.f32 1e-05, %v471_v35  ;;  %v6575_v55 = vpop.eup %5673  ;;  %v535_v32 = vsub.f32 1.5, %v534_v9 }
 0x14e   : > { %v6590_v60 = vpop.eup %5675  ;;  %v552_v10 = vmul.f32 %v6575_v55, %v6510_v2  ;;  %v692_v48 = vadd.f32 %v6600_v4, %v672_v0  ;;  %v575_v43 = vsub.f32 1.5, %v574_v14  ;;  %vm608_vm6 = vweird.f32 %v6555_v40 }
 0x14f   : > { %v603_v62 = vmul.f32 %v6555_v40, %v602_v29  ;;  %5677 = vrsqrt.f32 %v6571_v50  ;;  %v582_v11 = vmul.f32 %v6590_v60, %v6515_v5  ;;  %v6653_v0 = vmul.f32 %v6512_v3, %v535_v32  ;;  %vm6689_vm11 = vmor %vm607_vm1, %vm608_vm6 }
 0x150   : > { %5679 = vrsqrt.f32 %v6573_v54  ;;  %v707_v44 = vpack.c.bf16 %v692_v48, %v691_v27  ;;  %v6638_v45 = vmul.f32 %v6575_v55, %v552_v10  ;;  %vm588_vm8 = vweird.f32 %v6590_v60 }
 0x151   : > { %5681 = vrsqrt.f32 %v6584_v56  ;;  %v583_v19 = vmul.f32 %v6590_v60, %v582_v11  ;;  %v604_v26 = vmul.f32 0.5, %v603_v62  ;;  %v654_v62 = vmul.f32 %v530_v13, %v6382_v39  ;;  %vm6703_vm13 = vmor %vm587_vm5, %vm588_vm8 }
 0x152   : > { %v454_v52 = vpop.xlane.xlu2 %453  ;;  %v458_v25 = vpop.xlane.xlu1 %457  ;;  %5683 = vrsqrt.f32 %v6624_v17  ;;  %883 = vmatmul.bf16.vlgmr.msra.gmra.mxu0 %v707_v44  ;;  %932 = vmatmul.bf16.vlgmr.msra.gmra.mxu1 %v707_v44  ;;  %v576_v39 = vmul.f32 %v6524_v20, %v575_v43  ;;  %vm597_vm9 = vweird.f32 %v6571_v50  ;;  %vm617_vm15 = vweird.f32 %v6573_v54 }
 0x153   : > { %v472_v30 = vmul.f32 %v454_v52, %v6365_v22  ;;  %v584_v35 = vmul.f32 0.5, %v583_v19  ;;  %v474_v36 = vmul.f32 %v458_v25, %v6365_v22  ;;  %v605_v29 = vsub.f32 1.5, %v604_v26  ;;  %981 = vmatmul.bf16.vlgmr.msra.gmra.mxu2 %v707_v44 }
 0x154   : > { %v673_v19 = vmul.f32 %v6553_v37, %v6588_v59  ;;  %v674_v26 = vmul.f32 %v6553_v37, %v654_v62  ;;  %v540_v59 = vsel %vm6663_vm7, %v6512_v3, %v6653_v0  ;;  %v580_v32 = vsel %vm6675_vm10, %v6524_v20, %v576_v39 }
 0x155   : > { %v6633_v42 = vpop.eup %5677  ;;  %v585_v22 = vsub.f32 1.5, %v584_v35  ;;  %v6645_v7 = vadd.f32 1e-05, %v472_v30  ;;  %v6647_v57 = vadd.f32 1e-05, %v474_v36  ;;  %v606_v34 = vmul.f32 %v6555_v40, %v605_v29 }
 0x156   : > { %v592_v33 = vmul.f32 %v6633_v42, %v6571_v50  ;;  %v6643_v47 = vpop.eup %5679  ;;  %vm598_vm12 = vweird.f32 %v6633_v42  ;;  %v694_v3 = vadd.f32 %v6600_v4, %v674_v26  ;;  %vm637_vm2 = vweird.f32 %v6624_v17 }
 0x157   : > { %v6650_v8 = vpop.eup %5681  ;;  %v612_v9 = vmul.f32 %v6643_v47, %v6573_v54  ;;  %5685 = vrsqrt.f32 %v6645_v7  ;;  %v586_v10 = vmul.f32 %v6590_v60, %v585_v22  ;;  %vm618_vm0 = vweird.f32 %v6643_v47  ;;  %vm6721_vm1 = vmor %vm597_vm9, %vm598_vm12 }
 0x158   : > { %v593_v28 = vmul.f32 %v6633_v42, %v592_v33  ;;  %5687 = vrsqrt.f32 %v6647_v57  ;;  %v6682_v25 = vpop.eup %5683  ;;  %v562_v27 = vmul.f32 %v6650_v8, %v6584_v56  ;;  %v610_v29 = vsel %vm6689_vm11, %v6555_v40, %v606_v34  ;;  %vm6745_vm4 = vmor %vm617_vm15, %vm618_vm0 }
 0x159   : > { %v613_v52 = vmul.f32 %v6643_v47, %v612_v9  ;;  %v632_v13 = vmul.f32 %v6682_v25, %v6624_v17  ;;  %v590_v20 = vsel %vm6703_vm13, %v6590_v60, %v586_v10  ;;  %v693_v50 = vadd.f32 %v6600_v4, %v673_v19 }
 0x15a   : > { %v594_v14 = vmul.f32 0.5, %v593_v28  ;;  %vm638_vm3 = vweird.f32 %v6682_v25  ;;  %vm627_vm5 = vweird.f32 %v6645_v7  ;;  %vm647_vm6 = vweird.f32 %v6647_v57 }
 0x15b   : > { %v614_v30 = vmul.f32 0.5, %v613_v52  ;;  %v633_v43 = vmul.f32 %v6682_v25, %v632_v13  ;;  %v708_v39 = vpack.c.bf16 %v694_v3, %v693_v50  ;;  %vm6754_vm8 = vmor %vm637_vm2, %vm638_vm3  ;;  %v659_v21 = vmul.f32 %v580_v32, %v6398_v51 }
 0x15c   : > { %v595_v48 = vsub.f32 1.5, %v594_v14  ;;  %v660_v34 = vmul.f32 %v590_v20, %v6420_v1  ;;  %v662_v61 = vmul.f32 %v610_v29, %v6415_v63  ;;  %v563_v51 = vmul.f32 %v6650_v8, %v562_v27 }
 0x15d   : > { %v615_v36 = vsub.f32 1.5, %v614_v30  ;;  %v5686_v44 = vpop.eup %5685  ;;  %v634_v62 = vmul.f32 0.5, %v633_v43  ;;  %v679_v19 = vmul.f32 %v6553_v37, %v659_v21  ;;  %v655_v43 = vmul.f32 %v540_v59, %v6394_v46 }
 0x15e   : > { %v596_v5 = vmul.f32 %v6633_v42, %v595_v48  ;;  %v5688_v33 = vpop.eup %5687  ;;  %v622_v0 = vmul.f32 %v5686_v44, %v6645_v7  ;;  %vm628_vm7 = vweird.f32 %v5686_v44  ;;  %v680_v26 = vmul.f32 %v6553_v37, %v660_v34 }
 0x15f   : > { %v616_v22 = vmul.f32 %v6643_v47, %v615_v36  ;;  %v642_v28 = vmul.f32 %v5688_v33, %v6647_v57  ;;  %v635_v9 = vsub.f32 1.5, %v634_v62  ;;  %vm648_vm9 = vweird.f32 %v5688_v33  ;;  %vm6776_vm10 = vmor %vm627_vm5, %vm628_vm7 }
 0x160   : > { %v600_v60 = vsel %vm6721_vm1, %v6633_v42, %v596_v5  ;;  %v623_v11 = vmul.f32 %v5686_v44, %v622_v0  ;;  %v699_v63 = vadd.f32 %v6600_v4, %v679_v19  ;;  %v700_v27 = vadd.f32 %v6600_v4, %v680_v26  ;;  %vm6786_vm11 = vmor %vm647_vm6, %vm648_vm9 }
 0x161   : > { %v643_v54 = vmul.f32 %v5688_v33, %v642_v28  ;;  %v620_v14 = vsel %vm6745_vm4, %v6643_v47, %v616_v22  ;;  %v636_v52 = vmul.f32 %v6682_v25, %v635_v9  ;;  %v661_v15 = vmul.f32 %v600_v60, %v6428_v6 }
 0x162   : > { %v624_v10 = vmul.f32 0.5, %v623_v11  ;;  %888 = vmatmul.bf16.gmra.mxu0 %v708_v39  ;;  %937 = vmatmul.bf16.gmra.mxu1 %v708_v39  ;;  %v682_v13 = vmul.f32 %v6553_v37, %v662_v61  ;;  %v663_v5 = vmul.f32 %v620_v14, %v6438_v18  ;;  %v711_v3 = vpack.c.bf16 %v700_v27, %v699_v63 }
 0x163   : > { %v644_v17 = vmul.f32 0.5, %v643_v54  ;;  %v640_v1 = vsel %vm6754_vm8, %v6682_v25, %v636_v52  ;;  %v681_v47 = vmul.f32 %v6553_v37, %v661_v15  ;;  %986 = vmatmul.bf16.gmra.mxu2 %v708_v39  ;;  %v564_v29 = vmul.f32 0.5, %v563_v51 }
 0x164   : > { %v625_v48 = vsub.f32 1.5, %v624_v10  ;;  %v665_v35 = vmul.f32 %v640_v1, %v6433_v16  ;;  %v702_v20 = vadd.f32 %v6600_v4, %v682_v13  ;;  %v683_v50 = vmul.f32 %v6553_v37, %v663_v5 }
 0x165   : > { %v645_v30 = vsub.f32 1.5, %v644_v17  ;;  %v701_v7 = vadd.f32 %v6600_v4, %v681_v47  ;;  %v656_v46 = vmul.f32 %v550_v23, %v6380_v38  ;;  %v554_v59 = vmul.f32 0.5, %v6638_v45 }
 0x166   : > { %v626_v25 = vmul.f32 %v5686_v44, %v625_v48  ;;  %v685_v22 = vmul.f32 %v6553_v37, %v665_v35  ;;  %v565_v41 = vsub.f32 1.5, %v564_v29  ;;  %vm568_vm12 = vweird.f32 %v6650_v8 }
 0x167   : > { %v646_v36 = vmul.f32 %v5688_v33, %v645_v30  ;;  %v712_v16 = vpack.c.bf16 %v702_v20, %v701_v7  ;;  %v676_v38 = vmul.f32 %v6553_v37, %v656_v46  ;;  %vm557_vm13 = vweird.f32 %v6510_v2  ;;  %vm569_vm0 = vmor %vm567_vm14, %vm568_vm12 }
 0x168   : > { %v630_v57 = vsel %vm6776_vm10, %v5686_v44, %v626_v25  ;;  %v703_v44 = vadd.f32 %v6600_v4, %v683_v50  ;;  %v705_v60 = vadd.f32 %v6600_v4, %v685_v22  ;;  %vm558_vm15 = vweird.f32 %v6575_v55 }
 0x169   : > { %v650_v62 = vsel %vm6786_vm11, %v5688_v33, %v646_v36  ;;  %v664_v18 = vmul.f32 %v630_v57, %v6446_v12  ;;  %v675_v33 = vmul.f32 %v6553_v37, %v655_v43  ;;  %v555_v12 = vsub.f32 1.5, %v554_v59  ;;  %vm559_vm1 = vmor %vm557_vm13, %vm558_vm15 }
 0x16a   : > { %v666_v0 = vmul.f32 %v650_v62, %v6452_v24  ;;  %v566_v45 = vmul.f32 %v6650_v8, %v565_v41  ;;  %v696_v11 = vadd.f32 %v6600_v4, %v676_v38  ;;  %vm1704_vm2 = vcmask 261120  }
 0x16b   : > { %v684_v40 = vmul.f32 %v6553_v37, %v664_v18  ;;  %v695_v49 = vadd.f32 %v6600_v4, %v675_v33  ;;  %v556_v39 = vmul.f32 %v6575_v55, %v555_v12  ;;  %vm2655_vm3 = vcmask 130048  }
 0x16c   : > { %v686_v28 = vmul.f32 %v6553_v37, %v666_v0  ;;  %v570_v42 = vsel %vm569_vm0, %v6650_v8, %v566_v45  ;;  %vm4545_vm4 = vcmask 785408   ;;  %vm4528_vm5 = vcmask 523264  }
 0x16d   : > { %v704_v31 = vadd.f32 %v6600_v4, %v684_v40  ;;  %v709_v56 = vpack.c.bf16 %v696_v11, %v695_v49  ;;  %v560_v54 = vsel %vm559_vm1, %v6575_v55, %v556_v39  ;;  %v658_v2 = vmul.f32 %v570_v42, %v6410_v58 }
 0x16e   : > { %v706_v24 = vadd.f32 %v6600_v4, %v686_v28  ;;  %v657_v21 = vmul.f32 %v560_v54, %v6402_v53 }
 0x16f   : > { %v713_v23 = vpack.c.bf16 %v704_v31, %v703_v44  ;;  %v678_v34 = vmul.f32 %v6553_v37, %v658_v2 }
 0x170   : > { %v714_v9 = vpack.c.bf16 %v706_v24, %v705_v60  ;;  %v677_v14 = vmul.f32 %v6553_v37, %v657_v21 }
 0x171   : > { %v698_v52 = vadd.f32 %v6600_v4, %v678_v34 }
 0x172   : > { %893 = vmatmul.bf16.gmra.mxu0 %v709_v56  ;;  %942 = vmatmul.bf16.gmra.mxu1 %v709_v56  ;;  %v697_v10 = vadd.f32 %v6600_v4, %v677_v14 }
 0x173   : > { %991 = vmatmul.bf16.gmra.mxu2 %v709_v56 }
 0x174   : > { %v710_v15 = vpack.c.bf16 %v698_v52, %v697_v10 }
 0x182   : > { %898 = vmatmul.bf16.gmra.mxu0 %v710_v15  ;;  %947 = vmatmul.bf16.gmra.mxu1 %v710_v15 }
 0x183   : > { %996 = vmatmul.bf16.gmra.mxu2 %v710_v15 }
 0x192   : > { %903 = vmatmul.bf16.gmra.mxu0 %v711_v3  ;;  %952 = vmatmul.bf16.gmra.mxu1 %v711_v3 }
 0x193   : > { %1001 = vmatmul.bf16.gmra.mxu2 %v711_v3 }
 0x1a2   : > { %908 = vmatmul.bf16.gmra.mxu0 %v712_v16  ;;  %957 = vmatmul.bf16.gmra.mxu1 %v712_v16 }
 0x1a3   : > { %1006 = vmatmul.bf16.gmra.mxu2 %v712_v16 }
 0x1b2   : > { %913 = vmatmul.bf16.gmra.mxu0 %v713_v23  ;;  %962 = vmatmul.bf16.gmra.mxu1 %v713_v23 }
 0x1b3   : > { %1011 = vmatmul.bf16.gmra.mxu2 %v713_v23 }
 0x1c2   : > { %918 = vmatmul.bf16.gmra.mxu0 %v714_v9  ;;  %967 = vmatmul.bf16.gmra.mxu1 %v714_v9 }
 0x1c3   : > { %1016 = vmatmul.bf16.gmra.mxu2 %v714_v9 }
 0x1cf   : > { %v884_v53 = vpop.f32.mrf.mxu0  ;;  %v933_v58 = vpop.f32.mrf.mxu1 }
 0x1d0   : > { %v1406_v55 = vpack.c.bf16 %v933_v58, %v933_v58  ;;  %v1182_v47 = vpack.c.bf16 %v884_v53, %v884_v53 }
 0x1d2   : > { %v1701_v61 = vunpack.c.l.b16 %v1406_v55  ;;  %v1696_v32 = vunpack.c.l.b16 %v1182_v47 }
 0x1d6   : > { %v6834_v37 = vpop.f32.mrf.mxu2 }
 0x1d7   : > { %v886_v4 = vpop.f32.mrf.mxu0  ;;  %v935_v8 = vpop.f32.mrf.mxu1 }
 0x1d8   : > { %v5187_v17 = vpack.i.bf16 %v886_v4, %v884_v53  ;;  %v5192_v19 = vpack.i.bf16 %v935_v8, %v933_v58  ;;  %v1407_v26 = vpack.c.bf16 %v935_v8, %v935_v8  ;;  %v1183_v48 = vpack.c.bf16 %v886_v4, %v886_v4 }
 0x1da   : > { %5188 = vrot.lane.b32.xlu0 %v5187_v17, %s6151_s26  ;;  %5178 = vrot.lane.b32.xlu2 %v5187_v17, %s6152_s30  ;;  %v1702_v51 = vunpack.c.l.b16 %v1407_v26  ;;  %v1697_v13 = vunpack.c.l.b16 %v1183_v48 }
 0x1db   : > { %5193 = vrot.lane.b32.xlu1 %v5192_v19, %s6152_s30 }
 0x1dc   : > { %v1703_v1 = vpack.c.b16 %v1702_v51, %v1701_v61  ;;  %v1698_v7 = vpack.c.b16 %v1697_v13, %v1696_v32 }
 0x1de   : > { %v6839_v6 = vpop.f32.mrf.mxu2  ;;  %v1709_v30 = vsel %vm1704_vm2, %v1703_v1, 0 }
 0x1df   : > { %v889_v63 = vpop.f32.mrf.mxu0  ;;  %v938_v27 = vpop.f32.mrf.mxu1  ;;  %1718 = vmatpush.bf16.xpose.msra.mxu3 %v1709_v30  ;;  %v5207_v25 = vpack.i.bf16 %v6839_v6, %v6834_v37 }
 0x1e0   : > { %v1408_v5 = vpack.c.bf16 %v938_v27, %v938_v27  ;;  %v1184_v62 = vpack.c.bf16 %v889_v63, %v889_v63 }
 0x1e2   : > { %5203 = vrot.lane.b32.xlu0 %v5192_v19, %s6151_s26  ;;  %5183 = vrot.lane.b32.xlu2 %v5187_v17, %s6153_s7  ;;  %v1732_v20 = vunpack.c.l.b16 %v1408_v5  ;;  %v1727_v0 = vunpack.c.l.b16 %v1184_v62 }
 0x1e3   : > { %5208 = vrot.lane.b32.xlu1 %v5207_v25, %s6152_s30 }
 0x1e6   : > { %4934 = vmatmul.msk.bf16.vlgmr.msra.gmra.mxu3 %vm1704_vm2, %v1698_v7  ;;  %v6851_v57 = vpop.f32.mrf.mxu2 }
 0x1e7   : > { %v891_v35 = vpop.f32.mrf.mxu0  ;;  %v940_v36 = vpop.f32.mrf.mxu1 }
 0x1e8   : > { %v5227_v43 = vpack.i.bf16 %v891_v35, %v889_v63  ;;  %v1409_v3 = vpack.c.bf16 %v940_v36, %v940_v36  ;;  %v1185_v50 = vpack.c.bf16 %v891_v35, %v891_v35  ;;  %v5242_v44 = vpack.i.bf16 %v940_v36, %v938_v27 }
 0x1ea   : > { %5218 = vrot.lane.b32.xlu0 %v5207_v25, %s6151_s26  ;;  %5198 = vrot.lane.b32.xlu2 %v5192_v19, %s6153_s7  ;;  %v1733_v29 = vunpack.c.l.b16 %v1409_v3  ;;  %v1728_v59 = vunpack.c.l.b16 %v1185_v50 }
 0x1eb   : > { %5228 = vrot.lane.b32.xlu1 %v5227_v43, %s6153_s7 }
 0x1ec   : > { %v1734_v22 = vpack.c.b16 %v1733_v29, %v1732_v20  ;;  %v1729_v60 = vpack.c.b16 %v1728_v59, %v1727_v0 }
 0x1ee   : > { %v1739_v46 = vsel %vm1704_vm2, %v1734_v22, 0  ;;  %v6857_v33 = vpop.f32.mrf.mxu2 }
 0x1ef   : > { %v894_v16 = vpop.f32.mrf.mxu0  ;;  %v943_v18 = vpop.f32.mrf.mxu1  ;;  %1748 = vmatpush.bf16.xpose.msrb.mxu3 %v1739_v46  ;;  %v5257_v31 = vpack.i.bf16 %v6857_v33, %v6851_v57 }
 0x1f0   : > { %v1410_v40 = vpack.c.bf16 %v943_v18, %v943_v18  ;;  %v1186_v45 = vpack.c.bf16 %v894_v16, %v894_v16 }
 0x1f2   : > { %5213 = vrot.lane.b32.xlu2 %v5207_v25, %s6153_s7  ;;  %5223 = vrot.lane.b32.xlu0 %v5227_v43, %s6152_s30  ;;  %v1762_v12 = vunpack.c.l.b16 %v1410_v40  ;;  %v1757_v54 = vunpack.c.l.b16 %v1186_v45 }
 0x1f3   : > { %5243 = vrot.lane.b32.xlu1 %v5242_v44, %s6153_s7 }
 0x1f6   : > { %4935 = vmatmul.msk.bf16.vlgmr.msrb.gmra.mxu3 %vm1704_vm2, %v1729_v60  ;;  %v6869_v2 = vpop.f32.mrf.mxu2 }
 0x1f7   : > { %v896_v41 = vpop.f32.mrf.mxu0  ;;  %v945_v28 = vpop.f32.mrf.mxu1 }
 0x1f8   : > { %v1411_v38 = vpack.c.bf16 %v945_v28, %v945_v28  ;;  %v1187_v49 = vpack.c.bf16 %v896_v41, %v896_v41  ;;  %v5267_v42 = vpack.i.bf16 %v896_v41, %v894_v16  ;;  %v5282_v51 = vpack.i.bf16 %v945_v28, %v943_v18 }
 0x1fa   : > { %5233 = vrot.lane.b32.xlu2 %v5227_v43, %s6151_s26  ;;  %5238 = vrot.lane.b32.xlu0 %v5242_v44, %s6152_s30  ;;  %v1763_v24 = vunpack.c.l.b16 %v1411_v38  ;;  %v1758_v56 = vunpack.c.l.b16 %v1187_v49 }
 0x1fb   : > { %5258 = vrot.lane.b32.xlu1 %v5257_v31, %s6153_s7 }
 0x1fc   : > { %v1764_v23 = vpack.c.b16 %v1763_v24, %v1762_v12  ;;  %v1759_v21 = vpack.c.b16 %v1758_v56, %v1757_v54 }
 0x1fe   : > { %v1769_v9 = vsel %vm1704_vm2, %v1764_v23, 0  ;;  %v6875_v4 = vpop.f32.mrf.mxu2 }
 0x1ff   : > { %v899_v11 = vpop.f32.mrf.mxu0  ;;  %v948_v39 = vpop.f32.mrf.mxu1  ;;  %1778 = vmatpush.bf16.xpose.msra.mxu3 %v1769_v9  ;;  %v5297_v13 = vpack.i.bf16 %v6875_v4, %v6869_v2 }
 0x200   : > { %v1412_v34 = vpack.c.bf16 %v948_v39, %v948_v39  ;;  %v1188_v8 = vpack.c.bf16 %v899_v11, %v899_v11 }
 0x202   : > { %5248 = vrot.lane.b32.xlu2 %v5242_v44, %s6151_s26  ;;  %5253 = vrot.lane.b32.xlu0 %v5257_v31, %s6152_s30  ;;  %v1792_v15 = vunpack.c.l.b16 %v1412_v34  ;;  %v1787_v1 = vunpack.c.l.b16 %v1188_v8 }
 0x203   : > { %5268 = vrot.lane.b32.xlu1 %v5267_v42, %s6152_s30 }
 0x206   : > { %4936 = vmatmul.msk.bf16.vlgmr.msra.gmra.mxu3 %vm1704_vm2, %v1759_v21  ;;  %v6886_v27 = vpop.f32.mrf.mxu2 }
 0x207   : > { %v901_v14 = vpop.f32.mrf.mxu0  ;;  %v950_v52 = vpop.f32.mrf.mxu1 }
 0x208   : > { %v1413_v10 = vpack.c.bf16 %v950_v52, %v950_v52  ;;  %v1189_v58 = vpack.c.bf16 %v901_v14, %v901_v14  ;;  %v5322_v50 = vpack.i.bf16 %v901_v14, %v899_v11  ;;  %v5327_v22 = vpack.i.bf16 %v950_v52, %v948_v39 }
 0x20a   : > { %5263 = vrot.lane.b32.xlu2 %v5257_v31, %s6151_s26  ;;  %5273 = vrot.lane.b32.xlu0 %v5267_v42, %s6153_s7  ;;  %v1793_v53 = vunpack.c.l.b16 %v1413_v10  ;;  %v1788_v61 = vunpack.c.l.b16 %v1189_v58 }
 0x20b   : > { %5278 = vrot.lane.b32.xlu1 %v5267_v42, %s6151_s26 }
 0x20c   : > { %v1794_v55 = vpack.c.b16 %v1793_v53, %v1792_v15  ;;  %v1789_v48 = vpack.c.b16 %v1788_v61, %v1787_v1 }
 0x20e   : > { %v1799_v17 = vsel %vm1704_vm2, %v1794_v55, 0  ;;  %v6898_v62 = vpop.f32.mrf.mxu2 }
 0x20f   : > { %v904_v19 = vpop.f32.mrf.mxu0  ;;  %v6878_v26 = vpop.f32.mrf.mxu1  ;;  %1808 = vmatpush.bf16.xpose.msrb.mxu3 %v1799_v17  ;;  %v5342_v60 = vpack.i.bf16 %v6898_v62, %v6886_v27 }
 0x210   : > { %v1414_v47 = vpack.c.bf16 %v6878_v26, %v6878_v26  ;;  %v1190_v36 = vpack.c.bf16 %v904_v19, %v904_v19 }
 0x212   : > { %5283 = vrot.lane.b32.xlu2 %v5282_v51, %s6152_s30  ;;  %5288 = vrot.lane.b32.xlu0 %v5282_v51, %s6153_s7  ;;  %v1822_v32 = vunpack.c.l.b16 %v1414_v47  ;;  %v1817_v46 = vunpack.c.l.b16 %v1190_v36 }
 0x213   : > { %5293 = vrot.lane.b32.xlu1 %v5282_v51, %s6151_s26 }
 0x216   : > { %4937 = vmatmul.msk.bf16.vlgmr.msrb.gmra.mxu3 %vm1704_vm2, %v1789_v48  ;;  %v6915_v28 = vpop.f32.mrf.mxu2 }
 0x217   : > { %v906_v30 = vpop.f32.mrf.mxu0  ;;  %v955_v63 = vpop.f32.mrf.mxu1 }
 0x218   : > { %v1415_v25 = vpack.c.bf16 %v955_v63, %v955_v63  ;;  %v1191_v5 = vpack.c.bf16 %v906_v30, %v906_v30  ;;  %v5362_v9 = vpack.i.bf16 %v906_v30, %v904_v19  ;;  %v5377_v52 = vpack.i.bf16 %v955_v63, %v6878_v26 }
 0x21a   : > { %5298 = vrot.lane.b32.xlu2 %v5297_v13, %s6152_s30  ;;  %5303 = vrot.lane.b32.xlu0 %v5297_v13, %s6153_s7  ;;  %v1823_v7 = vunpack.c.l.b16 %v1415_v25  ;;  %v1818_v29 = vunpack.c.l.b16 %v1191_v5 }
 0x21b   : > { %5308 = vrot.lane.b32.xlu1 %v5297_v13, %s6151_s26 }
 0x21c   : > { %v1824_v35 = vpack.c.b16 %v1823_v7, %v1822_v32  ;;  %v1819_v16 = vpack.c.b16 %v1818_v29, %v1817_v46 }
 0x21e   : > { %v1829_v43 = vsel %vm1704_vm2, %v1824_v35, 0  ;;  %v6929_v42 = vpop.f32.mrf.mxu2 }
 0x21f   : > { %v6894_v3 = vpop.f32.mrf.mxu0  ;;  %v6896_v20 = vpop.f32.mrf.mxu1  ;;  %1838 = vmatpush.bf16.xpose.msra.mxu3 %v1829_v43  ;;  %v5392_v1 = vpack.i.bf16 %v6929_v42, %v6915_v28 }
 0x220   : > { %v1416_v18 = vpack.c.bf16 %v6896_v20, %v6896_v20  ;;  %v1192_v12 = vpack.c.bf16 %v6894_v3, %v6894_v3 }
 0x222   : > { %5323 = vrot.lane.b32.xlu0 %v5322_v50, %s6151_s26  ;;  %5313 = vrot.lane.b32.xlu2 %v5322_v50, %s6152_s30  ;;  %v1852_v40 = vunpack.c.l.b16 %v1416_v18  ;;  %v1847_v11 = vunpack.c.l.b16 %v1192_v12 }
 0x223   : > { %5328 = vrot.lane.b32.xlu1 %v5327_v22, %s6152_s30 }
 0x226   : > { %4938 = vmatmul.msk.bf16.vlgmr.msra.gmra.mxu3 %vm1704_vm2, %v1819_v16  ;;  %v6955_v51 = vpop.f32.mrf.mxu2 }
 0x227   : > { %v911_v59 = vpop.f32.mrf.mxu0  ;;  %v6906_v44 = vpop.f32.mrf.mxu1 }
 0x228   : > { %v1417_v0 = vpack.c.bf16 %v6906_v44, %v6906_v44  ;;  %v1193_v38 = vpack.c.bf16 %v911_v59, %v911_v59  ;;  %v5412_v7 = vpack.i.bf16 %v911_v59, %v6894_v3 }
 0x22a   : > { %5338 = vrot.lane.b32.xlu0 %v5327_v22, %s6151_s26  ;;  %5318 = vrot.lane.b32.xlu2 %v5322_v50, %s6153_s7  ;;  %v1853_v41 = vunpack.c.l.b16 %v1417_v0  ;;  %v1848_v45 = vunpack.c.l.b16 %v1193_v38 }
 0x22b   : > { %5343 = vrot.lane.b32.xlu1 %v5342_v60, %s6152_s30 }
 0x22c   : > { %v1854_v31 = vpack.c.b16 %v1853_v41, %v1852_v40  ;;  %v1849_v39 = vpack.c.b16 %v1848_v45, %v1847_v11  ;;  %v5427_v41 = vpack.i.bf16 %v6906_v44, %v6896_v20 }
 0x22e   : > { %v1859_v24 = vsel %vm1704_vm2, %v1854_v31, 0  ;;  %v6976_v36 = vpop.f32.mrf.mxu2 }
 0x22f   : > { %v6920_v49 = vpop.f32.mrf.mxu0  ;;  %v6922_v23 = vpop.f32.mrf.mxu1  ;;  %1868 = vmatpush.bf16.xpose.msrb.mxu3 %v1859_v24  ;;  %8360 = vst [vmem:[#allocation15_spill] sm:$0xff] %v6976_v36 }
 0x230   : > { %v1418_v54 = vpack.c.bf16 %v6922_v23, %v6922_v23  ;;  %v1194_v8 = vpack.c.bf16 %v6920_v49, %v6920_v49 }
 0x232   : > { %5353 = vrot.lane.b32.xlu0 %v5342_v60, %s6151_s26  ;;  %5333 = vrot.lane.b32.xlu2 %v5327_v22, %s6153_s7  ;;  %v1882_v10 = vunpack.c.l.b16 %v1418_v54  ;;  %v1877_v48 = vunpack.c.l.b16 %v1194_v8 }
 0x233   : > { %5363 = vrot.lane.b32.xlu1 %v5362_v9, %s6153_s7 }
 0x234   : > { %v6927_v56 = vpop.permute.xlu2 %5178 }
 0x235   : > { %v5181_v44 = vunpack.i.h.bf16 %v6927_v56 }
 0x236   : > { %4939 = vmatmul.msk.bf16.vlgmr.msrb.gmra.mxu3 %vm1704_vm2, %v1849_v39  ;;  %v6999_v54 = vpop.f32.mrf.mxu2 }
 0x237   : > { %v6934_v21 = vpop.f32.mrf.mxu0  ;;  %v6936_v34 = vpop.f32.mrf.mxu1 }
 0x238   : > { %v1419_v14 = vpack.c.bf16 %v6936_v34, %v6936_v34  ;;  %v1195_v53 = vpack.c.bf16 %v6934_v21, %v6934_v21 }
 0x23a   : > { %5348 = vrot.lane.b32.xlu2 %v5342_v60, %s6153_s7  ;;  %5358 = vrot.lane.b32.xlu0 %v5362_v9, %s6152_s30  ;;  %v1883_v15 = vunpack.c.l.b16 %v1419_v14  ;;  %v1878_v61 = vunpack.c.l.b16 %v1195_v53  ;;  %v5180_v14 = vunpack.i.l.bf16 %v6927_v56  ;;  %v5437_v56 = vpack.i.bf16 %v6976_v36, %v6955_v51 }
 0x23b   : > { %5378 = vrot.lane.b32.xlu1 %v5377_v52, %s6153_s7 }
 0x23c   : > { %v6946_v58 = vpop.permute.xlu2 %5183  ;;  %v1884_v55 = vpack.c.b16 %v1883_v15, %v1882_v10  ;;  %v1879_v47 = vpack.c.b16 %v1878_v61, %v1877_v48  ;;  %v1199_v10 = vpack.c.bf16 %v5181_v44, %v5181_v44  ;;  %v1198_v15 = vpack.c.bf16 %v5180_v14, %v5180_v14 }
 0x23e   : > { %v1889_v17 = vsel %vm1704_vm2, %v1884_v55, 0  ;;  %v1937_v61 = vunpack.c.l.b16 %v1198_v15 }
 0x23f   : > { %v6951_v19 = vpop.f32.mrf.mxu0  ;;  %v6953_v26 = vpop.f32.mrf.mxu1  ;;  %1898 = vmatpush.bf16.xpose.msra.mxu3 %v1889_v17  ;;  %v1938_v17 = vunpack.c.l.b16 %v1199_v10 }
 0x240   : > { %v1420_v63 = vpack.c.bf16 %v6953_v26, %v6953_v26  ;;  %v1196_v3 = vpack.c.bf16 %v6951_v19, %v6951_v19 }
 0x241   : > { %v1939_v48 = vpack.c.b16 %v1938_v17, %v1937_v61 }
 0x242   : > { %5368 = vrot.lane.b32.xlu2 %v5362_v9, %s6151_s26  ;;  %5373 = vrot.lane.b32.xlu0 %v5377_v52, %s6152_s30  ;;  %v1912_v5 = vunpack.c.l.b16 %v1420_v63  ;;  %v1907_v38 = vunpack.c.l.b16 %v1196_v3 }
 0x243   : > { %5393 = vrot.lane.b32.xlu1 %v5392_v1, %s6153_s7 }
 0x244   : > { %v6962_v30 = vpop.permute.xlu2 %5198 }
 0x246   : > { %4940 = vmatmul.msk.bf16.vlgmr.msra.gmra.mxu3 %vm1704_vm2, %v1879_v47 }
 0x247   : > { %v6967_v13 = vpop.f32.mrf.mxu1  ;;  %v6971_v32 = vpop.f32.mrf.mxu0 }
 0x248   : > { %v1421_v25 = vpack.c.bf16 %v6967_v13, %v6967_v13  ;;  %v1197_v43 = vpack.c.bf16 %v6971_v32, %v6971_v32 }
 0x24a   : > { %5383 = vrot.lane.b32.xlu2 %v5377_v52, %s6151_s26  ;;  %5388 = vrot.lane.b32.xlu0 %v5392_v1, %s6152_s30  ;;  %v1913_v35 = vunpack.c.l.b16 %v1421_v25  ;;  %v1908_v0 = vunpack.c.l.b16 %v1197_v43  ;;  %v5442_v52 = vpack.i.bf16 %v6999_v54, %v6955_v51 }
 0x24b   : > { %5413 = vrot.lane.b32.xlu1 %v5412_v7, %s6151_s26 }
 0x24c   : > { %v6981_v29 = vpop.permute.xlu2 %5213  ;;  %v6983_v50 = vpop.permute.xlu0 %5188  ;;  %v1914_v22 = vpack.c.b16 %v1913_v35, %v1912_v5  ;;  %v1909_v24 = vpack.c.b16 %v1908_v0, %v1907_v38  ;;  %v5462_v5 = vpack.i.bf16 %v6936_v34, %v6922_v23 }
 0x24d   : > { %8361 = vst [vmem:[#allocation16_spill] sm:$0xff] %v6981_v29  ;;  %v5194_v46 = vpop.permute.xlu1 %5193  ;;  %v7035_v35 = vpop.f32.mrf.mxu2 }
 0x24e   : > { %v5196_v16 = vunpack.i.h.bf16 %v5194_v46  ;;  %v5195_v18 = vunpack.i.l.bf16 %v5194_v46  ;;  %v1919_v59 = vsel %vm1704_vm2, %v1914_v22, 0  ;;  %8365 = vst [vmem:[#allocation20_spill] sm:$0xff] %v7035_v35 }
 0x24f   : > { %1928 = vmatpush.bf16.xpose.msrb.mxu3 %v1919_v59 }
 0x250   : > { %v1423_v60 = vpack.c.bf16 %v5196_v16, %v5196_v16  ;;  %v1422_v40 = vpack.c.bf16 %v5195_v18, %v5195_v18 }
 0x252   : > { %v1943_v31 = vunpack.c.l.b16 %v1423_v60  ;;  %v1942_v12 = vunpack.c.l.b16 %v1422_v40  ;;  %5398 = vrot.lane.b32.xlu2 %v5392_v1, %s6151_s26  ;;  %5408 = vrot.lane.b32.xlu0 %v5412_v7, %s6153_s7  ;;  %v5447_v1 = vpack.i.bf16 %v6934_v21, %v6920_v49  ;;  %v5477_v40 = vpack.i.bf16 %v7035_v35, %v6999_v54 }
 0x253   : > { %5428 = vrot.lane.b32.xlu1 %v5427_v41, %s6151_s26 }
 0x254   : > { %v6993_v45 = vpop.permute.xlu2 %5233  ;;  %v6995_v9 = vpop.permute.xlu0 %5203  ;;  %v1944_v11 = vpack.c.b16 %v1943_v31, %v1942_v12 }
 0x255   : > { %v6997_v39 = vpop.permute.xlu1 %5208 }
 0x256   : > { %8362 = vst [vmem:[#allocation17_spill] sm:$0xff] %v6997_v39  ;;  %4941 = vmatmul.msk.bf16.vlgmr.msrb.gmra.mxu3 %vm1704_vm2, %v1909_v24  ;;  %v1949_v20 = vsel %vm1704_vm2, %v1944_v11, 0 }
 0x257   : > { %1958 = vmatpush.bf16.xpose.msra.mxu3 %v1949_v20 }
 0x25a   : > { %5423 = vrot.lane.b32.xlu0 %v5427_v41, %s6153_s7  ;;  %5403 = vrot.lane.b32.xlu2 %v5412_v7, %s6152_s30 }
 0x25b   : > { %5443 = vrot.lane.b32.xlu1 %v5442_v52, %s6151_s26 }
 0x25c   : > { %v7010_v53 = vpop.permute.xlu2 %5248  ;;  %v7012_v55 = vpop.permute.xlu0 %5218 }
 0x25d   : > { %8363 = vst [vmem:[#allocation18_spill] sm:$0xff] %v7012_v55  ;;  %v7014_v8 = vpop.permute.xlu1 %5228 }
 0x262   : > { %5438 = vrot.lane.b32.xlu0 %v5437_v56, %s6153_s7  ;;  %5418 = vrot.lane.b32.xlu2 %v5427_v41, %s6152_s30 }
 0x263   : > { %5448 = vrot.lane.b32.xlu1 %v5447_v1, %s6152_s30 }
 0x264   : > { %v7023_v47 = vpop.permute.xlu2 %5263  ;;  %v5224_v63 = vpop.permute.xlu0 %5223 }
 0x265   : > { %8364 = vst [vmem:[#allocation19_spill] sm:$0xff] %v7023_v47  ;;  %v7025_v25 = vpop.permute.xlu1 %5243  ;;  %v5226_v34 = vunpack.i.h.bf16 %v5224_v63  ;;  %v5225_v60 = vunpack.i.l.bf16 %v5224_v63 }
 0x266   : > { %4942 = vmatmul.msk.bf16.vlgmr.msra.gmra.mxu3 %vm1704_vm2, %v1939_v48 }
 0x267   : > { %v1201_v44 = vpack.c.bf16 %v5226_v34, %v5226_v34  ;;  %v1200_v14 = vpack.c.bf16 %v5225_v60, %v5225_v60  ;;  %v5502_v34 = vpack.i.bf16 %v6967_v13, %v6953_v26 }
 0x269   : > { %v7028_v7 = vpop.f32.mrf.mxu3  ;;  %v1968_v63 = vunpack.c.l.b16 %v1201_v44 }
 0x26a   : > { %5433 = vrot.lane.b32.xlu2 %v5437_v56, %s6152_s30  ;;  %5458 = vrot.lane.b32.xlu0 %v5447_v1, %s6151_s26 }
 0x26b   : > { %5463 = vrot.lane.b32.xlu1 %v5462_v5, %s6152_s30 }
 0x26c   : > { %v5284_v49 = vpop.permute.xlu2 %5283  ;;  %v5239_v21 = vpop.permute.xlu0 %5238 }
 0x26d   : > { %v7037_v43 = vpop.permute.xlu1 %5258  ;;  %v5286_v22 = vunpack.i.h.bf16 %v5284_v49  ;;  %v5285_v46 = vunpack.i.l.bf16 %v5284_v49  ;;  %v5241_v3 = vunpack.i.h.bf16 %v5239_v21  ;;  %v5240_v16 = vunpack.i.l.bf16 %v5239_v21 }
 0x26e   : > { %8366 = vst [vmem:[#allocation21_spill] sm:$0xff] %v7037_v43  ;;  %v1967_v49 = vunpack.c.l.b16 %v1200_v14 }
 0x26f   : > { %v1427_v18 = vpack.c.bf16 %v5286_v22, %v5286_v22  ;;  %v1426_v59 = vpack.c.bf16 %v5285_v46, %v5285_v46  ;;  %v1425_v0 = vpack.c.bf16 %v5241_v3, %v5241_v3  ;;  %v1424_v23 = vpack.c.bf16 %v5240_v16, %v5240_v16 }
 0x271   : > { %v1973_v41 = vunpack.c.l.b16 %v1425_v0  ;;  %v1972_v38 = vunpack.c.l.b16 %v1424_v23  ;;  %v7041_v31 = vpop.f32.mrf.mxu3  ;;  %v2002_v12 = vunpack.c.l.b16 %v1426_v59  ;;  %v2003_v24 = vunpack.c.l.b16 %v1427_v18  ;;  %v7058_v18 = vpop.f32.mrf.mxu2 }
 0x272   : > { %5473 = vrot.lane.b32.xlu0 %v5462_v5, %s6151_s26  ;;  %5453 = vrot.lane.b32.xlu2 %v5447_v1, %s6153_s7  ;;  %v5487_v1 = vpack.i.bf16 %v6971_v32, %v6951_v19  ;;  %8369 = vst [vmem:[#allocation24_spill] sm:$0xff] %v7058_v18  ;;  %v1969_v59 = vpack.c.b16 %v1968_v63, %v1967_v49 }
 0x273   : > { %5478 = vrot.lane.b32.xlu1 %v5477_v40, %s6152_s30  ;;  %v1974_v11 = vpack.c.b16 %v1973_v41, %v1972_v38  ;;  %v2004_v20 = vpack.c.b16 %v2003_v24, %v2002_v12 }
 0x274   : > { %v7046_v52 = vpop.permute.xlu2 %5298  ;;  %v7048_v10 = vpop.permute.xlu0 %5253 }
 0x275   : > { %8367 = vst [vmem:[#allocation22_spill] sm:$0xff] %v7046_v52  ;;  %v5269_v15 = vpop.permute.xlu1 %5268  ;;  %v1979_v56 = vsel %vm1704_vm2, %v1974_v11, 0  ;;  %v2009_v48 = vsel %vm1704_vm2, %v2004_v20, 0 }
 0x276   : > { %8368 = vst [vmem:[#allocation23_spill] sm:$0xff] %v7048_v10  ;;  %v5271_v17 = vunpack.i.h.bf16 %v5269_v15  ;;  %v5270_v61 = vunpack.i.l.bf16 %v5269_v15  ;;  %1988 = vmatpush.bf16.xpose.msrb.mxu3 %v1979_v56  ;;  %2018 = vmatpush.bf16.xpose.msrb.mxu1 %v2009_v48 }
 0x278   : > { %v1203_v21 = vpack.c.bf16 %v5271_v17, %v5271_v17  ;;  %v1202_v22 = vpack.c.bf16 %v5270_v61, %v5270_v61 }
 0x279   : > { %v7054_v46 = vpop.f32.mrf.mxu3  ;;  %v7074_v38 = vpop.f32.mrf.mxu2 }
 0x27a   : > { %v1998_v3 = vunpack.c.l.b16 %v1203_v21  ;;  %v1997_v16 = vunpack.c.l.b16 %v1202_v22  ;;  %5468 = vrot.lane.b32.xlu2 %v5462_v5, %s6153_s7  ;;  %5488 = vrot.lane.b32.xlu0 %v5487_v1, %s6152_s30  ;;  %8370 = vst [vmem:[#allocation25_spill] sm:$0xff] %v7074_v38 }
 0x27b   : > { %5493 = vrot.lane.b32.xlu1 %v5487_v1, %s6153_s7 }
 0x27c   : > { %v1999_v0 = vpack.c.b16 %v1998_v3, %v1997_v16  ;;  %v5314_v19 = vpop.permute.xlu2 %5313  ;;  %v5274_v32 = vpop.permute.xlu0 %5273 }
 0x27d   : > { %v7061_v23 = vpop.permute.xlu1 %5278  ;;  %4943 = vmatmul.msk.bf16.vlgmr.msrb.gmra.mxu3 %vm1704_vm2, %v1969_v59  ;;  %v5276_v26 = vunpack.i.h.bf16 %v5274_v32  ;;  %v5275_v13 = vunpack.i.l.bf16 %v5274_v32 }
 0x27e   : > { %4944 = vmatmul.msk.bf16.vlgmr.msrb.gmra.mxu1 %vm1704_vm2, %v1999_v0 }
 0x27f   : > { %v1219_v56 = vpack.c.bf16 %v5276_v26, %v5276_v26  ;;  %v1218_v48 = vpack.c.bf16 %v5275_v13, %v5275_v13 }
 0x281   : > { %v7067_v5 = vpop.f32.mrf.mxu3  ;;  %v2238_v3 = vunpack.c.l.b16 %v1219_v56 }
 0x282   : > { %5483 = vrot.lane.b32.xlu2 %v5477_v40, %s6153_s7  ;;  %5503 = vrot.lane.b32.xlu0 %v5502_v34, %s6152_s30  ;;  %v7080_v40 = vpack.i.bf16 %v7074_v38, %v7058_v18 }
 0x283   : > { %5508 = vrot.lane.b32.xlu1 %v5502_v34, %s6153_s7 }
 0x284   : > { %v7072_v60 = vpop.permute.xlu2 %5318  ;;  %v5289_v41 = vpop.permute.xlu0 %5288  ;;  %8371 = vst [vmem:[#allocation26_spill] sm:$0xff] %v7080_v40 }
 0x285   : > { %v7076_v12 = vpop.permute.xlu1 %5293  ;;  %v5291_v24 = vunpack.i.h.bf16 %v5289_v41  ;;  %v5290_v11 = vunpack.i.l.bf16 %v5289_v41 }
 0x287   : > { %v1443_v20 = vpack.c.bf16 %v5291_v24, %v5291_v24  ;;  %v1442_v44 = vpack.c.bf16 %v5290_v11, %v5290_v11 }
 0x289   : > { %v7082_v14 = vpop.f32.mrf.mxu3  ;;  %v2242_v15 = vunpack.c.l.b16 %v1442_v44  ;;  %v2243_v17 = vunpack.c.l.b16 %v1443_v20  ;;  %v5316_v20 = vunpack.i.h.bf16 %v5314_v19  ;;  %v5315_v44 = vunpack.i.l.bf16 %v5314_v19 }
 0x28a   : > { %8372 = vst [vmem:[#allocation27_spill] sm:$0xff] %v7082_v14  ;;  %5498 = vrot.lane.b32.xlu2 %v5487_v1, %s6151_s26  ;;  %5518 = vrot.lane.b32.xlu0 %v7080_v40, %s6152_s30  ;;  %v2237_v1 = vunpack.c.l.b16 %v1218_v48 }
 0x28b   : > { %5523 = vrot.lane.b32.xlu1 %v7080_v40, %s6153_s7  ;;  %v2244_v61 = vpack.c.b16 %v2243_v17, %v2242_v15  ;;  %v1205_v56 = vpack.c.bf16 %v5316_v20, %v5316_v20 }
 0x28c   : > { %v7089_v63 = vpop.permute.xlu2 %5333  ;;  %v7091_v49 = vpop.permute.xlu0 %5303  ;;  %v2239_v59 = vpack.c.b16 %v2238_v3, %v2237_v1 }
 0x28d   : > { %8373 = vst [vmem:[#allocation28_spill] sm:$0xff] %v7091_v49  ;;  %v7093_v21 = vpop.permute.xlu1 %5308  ;;  %v2249_v22 = vsel %vm1704_vm2, %v2244_v61, 0 }
 0x28e   : > { %8374 = vst [vmem:[#allocation29_spill] sm:$0xff] %v7093_v21  ;;  %2258 = vmatpush.bf16.xpose.msrb.mxu0 %v2249_v22 }
 0x291   : > { %v7096_v16 = vpop.f32.mrf.mxu3 }
 0x292   : > { %5513 = vrot.lane.b32.xlu2 %v5502_v34, %s6151_s26  ;;  %v1204_v34 = vpack.c.bf16 %v5315_v44, %v5315_v44 }
 0x294   : > { %v7099_v0 = vpop.permute.xlu2 %5348  ;;  %v7101_v32 = vpop.permute.xlu0 %5323  ;;  %v2027_v19 = vunpack.c.l.b16 %v1204_v34  ;;  %v5200_v34 = vunpack.i.l.bf16 %v6962_v30 }
 0x295   : > { %8375 = vst [vmem:[#allocation30_spill] sm:$0xff] %v7099_v0  ;;  %v5329_v41 = vpop.permute.xlu1 %5328  ;;  %4952 = vmatmul.msk.bf16.vlgmr.msrb.gmra.mxu0 %vm1704_vm2, %v2239_v59  ;;  %v2028_v59 = vunpack.c.l.b16 %v1205_v56  ;;  %v5201_v56 = vunpack.i.h.bf16 %v6962_v30 }
 0x296   : > { %v5331_v24 = vunpack.i.h.bf16 %v5329_v41  ;;  %v5330_v11 = vunpack.i.l.bf16 %v5329_v41 }
 0x298   : > { %v1429_v26 = vpack.c.bf16 %v5331_v24, %v5331_v24  ;;  %v1428_v13 = vpack.c.bf16 %v5330_v11, %v5330_v11  ;;  %v2029_v11 = vpack.c.b16 %v2028_v59, %v2027_v19  ;;  %v1438_v59 = vpack.c.bf16 %v5200_v34, %v5200_v34 }
 0x299   : > { %v7104_v15 = vpop.f32.mrf.mxu3  ;;  %v2656_v19 = vsel %vm2655_vm3, %v7028_v7, -inf  ;;  %v5245_v34 = vunpack.i.l.bf16 %v7025_v25 }
 0x29a   : > { %v2033_v17 = vunpack.c.l.b16 %v1429_v26  ;;  %v2032_v61 = vunpack.c.l.b16 %v1428_v13  ;;  %v2182_v0 = vunpack.c.l.b16 %v1438_v59 }
 0x29c   : > { %v7106_v48 = vpop.permute.xlu2 %5368  ;;  %v7108_v22 = vpop.permute.xlu0 %5338  ;;  %v2034_v3 = vpack.c.b16 %v2033_v17, %v2032_v61 }
 0x29d   : > { %v7110_v1 = vpop.permute.xlu1 %5343 }
 0x29e   : > { %8376 = vst [vmem:[#allocation31_spill] sm:$0xff] %v7110_v1  ;;  %v2039_v41 = vsel %vm1704_vm2, %v2034_v3, 0 }
 0x29f   : > { %2048 = vmatpush.bf16.xpose.msra.mxu1 %v2039_v41  ;;  %v1439_v41 = vpack.c.bf16 %v5201_v56, %v5201_v56  ;;  %v5246_v56 = vunpack.i.h.bf16 %v7025_v25  ;;  %v2662_v25 = vsel %vm2655_vm3, %v7054_v46, -inf }
 0x2a1   : > { %v7113_v24 = vpop.f32.mrf.mxu3  ;;  %v2183_v55 = vunpack.c.l.b16 %v1439_v41 }
 0x2a2   : > { %8377 = vst [vmem:[#allocation32_spill] sm:$0xff] %v7113_v24 }
 0x2a3   : > { %v2184_v41 = vpack.c.b16 %v2183_v55, %v2182_v0 }
 0x2a4   : > { %v7115_v21 = vpop.permute.xlu2 %5383  ;;  %v7117_v26 = vpop.permute.xlu0 %5353 }
 0x2a5   : > { %8378 = vst [vmem:[#allocation33_spill] sm:$0xff] %v7117_v26  ;;  %v7119_v20 = vpop.permute.xlu1 %5363 }
 0x2a6   : > { %4945 = vmatmul.msk.bf16.vlgmr.msra.gmra.mxu1 %vm1704_vm2, %v2029_v11  ;;  %v2668_v11 = vsel %vm2655_vm3, %v7082_v14, -inf }
 0x2a9   : > { %v7122_v44 = vpop.f32.mrf.mxu3 }
 0x2aa   : > { %8379 = vst [vmem:[#allocation34_spill] sm:$0xff] %v7122_v44 }
 0x2ac   : > { %v7124_v13 = vpop.permute.xlu2 %5398  ;;  %v5359_v17 = vpop.permute.xlu0 %5358 }
 0x2ad   : > { %8380 = vst [vmem:[#allocation35_spill] sm:$0xff] %v7124_v13  ;;  %v5379_v61 = vpop.permute.xlu1 %5378  ;;  %v5361_v52 = vunpack.i.h.bf16 %v5359_v17  ;;  %v5360_v10 = vunpack.i.l.bf16 %v5359_v17 }
 0x2ae   : > { %v5381_v43 = vunpack.i.h.bf16 %v5379_v61  ;;  %v5380_v49 = vunpack.i.l.bf16 %v5379_v61 }
 0x2af   : > { %v1207_v61 = vpack.c.bf16 %v5361_v52, %v5361_v52 }
 0x2b0   : > { %v1447_v59 = vpack.c.bf16 %v5381_v43, %v5381_v43  ;;  %v1446_v18 = vpack.c.bf16 %v5380_v49, %v5380_v49 }
 0x2b1   : > { %v7128_v3 = vpop.f32.mrf.mxu3 }
 0x2b2   : > { %8381 = vst [vmem:[#allocation36_spill] sm:$0xff] %v7128_v3  ;;  %v2303_v52 = vunpack.c.l.b16 %v1447_v59 }
 0x2b4   : > { %v7132_v26 = vpop.permute.xlu2 %5403  ;;  %2657 = vmax.xlane.f32.xlu0 %v2656_v19  ;;  %v5374_v13 = vpop.permute.xlu0 %5373 }
 0x2b5   : > { %v7136_v47 = vpop.permute.xlu1 %5393  ;;  %2669 = vmax.xlane.f32.xlu1 %v2668_v11  ;;  %v5376_v40 = vunpack.i.h.bf16 %v5374_v13  ;;  %v5375_v30 = vunpack.i.l.bf16 %v5374_v13  ;;  %v1440_v11 = vpack.c.bf16 %v5245_v34, %v5245_v34  ;;  %v2659_v13 = vsel %vm2655_vm3, %v7041_v31, -inf }
 0x2b6   : > { %8382 = vst [vmem:[#allocation37_spill] sm:$0xff] %v7136_v47  ;;  %v1441_v47 = vpack.c.bf16 %v5246_v56, %v5246_v56  ;;  %v5405_v38 = vunpack.i.l.bf16 %v7132_v26 }
 0x2b7   : > { %v1431_v29 = vpack.c.bf16 %v5376_v40, %v5376_v40  ;;  %v1430_v1 = vpack.c.bf16 %v5375_v30, %v5375_v30  ;;  %v1206_v30 = vpack.c.bf16 %v5360_v10, %v5360_v10  ;;  %v2212_v49 = vunpack.c.l.b16 %v1440_v11 }
 0x2b8   : > { %v2213_v43 = vunpack.c.l.b16 %v1441_v47  ;;  %v2302_v10 = vunpack.c.l.b16 %v1446_v18  ;;  %v2665_v11 = vsel %vm2655_vm3, %v7067_v5, -inf  ;;  %v2671_v18 = vsel %vm2655_vm3, %v7096_v16, -inf }
 0x2b9   : > { %v7140_v39 = vpop.f32.mrf.mxu3  ;;  %v2062_v19 = vunpack.c.l.b16 %v1430_v1  ;;  %v2063_v14 = vunpack.c.l.b16 %v1431_v29  ;;  %v2677_v1 = vsel %vm2655_vm3, %v7113_v24, -inf  ;;  %v2058_v24 = vunpack.c.l.b16 %v1207_v61 }
 0x2ba   : > { %8383 = vst [vmem:[#allocation38_spill] sm:$0xff] %v7140_v39  ;;  %v2304_v59 = vpack.c.b16 %v2303_v52, %v2302_v10 }
 0x2bb   : > { %2660 = vmax.xlane.f32.xlu2 %v2659_v13  ;;  %v2064_v40 = vpack.c.b16 %v2063_v14, %v2062_v19  ;;  %v2189_v14 = vsel %vm1704_vm2, %v2184_v41, 0 }
 0x2bc   : > { %v5419_v17 = vpop.permute.xlu2 %5418  ;;  %2663 = vmax.xlane.f32.xlu0 %v2662_v25  ;;  %v7148_v29 = vpop.permute.xlu0 %5388  ;;  %v2057_v25 = vunpack.c.l.b16 %v1206_v30 }
 0x2bd   : > { %8384 = vst [vmem:[#allocation39_spill] sm:$0xff] %v7148_v29  ;;  %v7150_v56 = vpop.permute.xlu1 %5413  ;;  %v5421_v34 = vunpack.i.h.bf16 %v5419_v17  ;;  %v5420_v55 = vunpack.i.l.bf16 %v5419_v17  ;;  %2678 = vmax.xlane.f32.xlu1 %v2677_v1  ;;  %v2069_v0 = vsel %vm1704_vm2, %v2064_v40, 0  ;;  %v5406_v29 = vunpack.i.h.bf16 %v7132_v26 }
 0x2be   : > { %2078 = vmatpush.bf16.xpose.msrb.mxu2 %v2069_v0  ;;  %v2214_v40 = vpack.c.b16 %v2213_v43, %v2212_v49  ;;  %v2059_v61 = vpack.c.b16 %v2058_v24, %v2057_v25  ;;  %v2680_v26 = vsel %vm2655_vm3, %v7122_v44, -inf  ;;  %v5186_v43 = vunpack.i.h.bf16 %v6946_v58 }
 0x2bf   : > { %v1433_v19 = vpack.c.bf16 %v5421_v34, %v5421_v34  ;;  %v1432_v13 = vpack.c.bf16 %v5420_v55, %v5420_v55  ;;  %v1209_v30 = vpack.c.bf16 %v5406_v29, %v5406_v29  ;;  %v1208_v34 = vpack.c.bf16 %v5405_v38, %v5405_v38 }
 0x2c0   : > { %v5185_v24 = vunpack.i.l.bf16 %v6946_v58  ;;  %v2309_v29 = vsel %vm1704_vm2, %v2304_v59, 0  ;;  %v2219_v49 = vsel %vm1704_vm2, %v2214_v40, 0  ;;  %v5251_v58 = vunpack.i.h.bf16 %v7010_v53 }
 0x2c1   : > { %v2093_v17 = vunpack.c.l.b16 %v1433_v19  ;;  %v2092_v1 = vunpack.c.l.b16 %v1432_v13  ;;  %v7156_v47 = vpop.f32.mrf.mxu3  ;;  %v5205_v19 = vunpack.i.l.bf16 %v6995_v9  ;;  %v2088_v52 = vunpack.c.l.b16 %v1209_v30 }
 0x2c2   : > { %v2087_v10 = vunpack.c.l.b16 %v1208_v34  ;;  %v2683_v59 = vsel %vm2655_vm3, %v7128_v3, -inf  ;;  %v5296_v40 = vunpack.i.h.bf16 %v7076_v12 }
 0x2c3   : > { %2666 = vmax.xlane.f32.xlu2 %v2665_v11  ;;  %v2094_v41 = vpack.c.b16 %v2093_v17, %v2092_v1  ;;  %v1454_v25 = vpack.c.bf16 %v5205_v19, %v5205_v19  ;;  %v1215_v1 = vpack.c.bf16 %v5186_v43, %v5186_v43  ;;  %v2674_v11 = vsel %vm2655_vm3, %v7104_v15, -inf }
 0x2c4   : > { %v7162_v55 = vpop.permute.xlu2 %5433  ;;  %2672 = vmax.xlane.f32.xlu0 %v2671_v18  ;;  %v7166_v0 = vpop.permute.xlu0 %5408  ;;  %v1214_v18 = vpack.c.bf16 %v5185_v24, %v5185_v24  ;;  %v2089_v30 = vpack.c.b16 %v2088_v52, %v2087_v10 }
 0x2c5   : > { %8385 = vst [vmem:[#allocation40_spill] sm:$0xff] %v7162_v55  ;;  %v7170_v13 = vpop.permute.xlu1 %5428  ;;  %2681 = vmax.xlane.f32.xlu1 %v2680_v26  ;;  %4946 = vmatmul.msk.bf16.vlgmr.msrb.gmra.mxu2 %vm1704_vm2, %v2059_v61  ;;  %v2099_v38 = vsel %vm1704_vm2, %v2094_v41, 0  ;;  %v5250_v41 = vunpack.i.l.bf16 %v7010_v53  ;;  %v5295_v61 = vunpack.i.l.bf16 %v7076_v12  ;;  %v2686_v26 = vsel %vm2655_vm3, %v7140_v39, -inf }
 0x2c6   : > { %2198 = vmatpush.bf16.xpose.msra.mxu2 %v2189_v14  ;;  %v5206_v14 = vunpack.i.h.bf16 %v6995_v9  ;;  %2108 = vmatpush.bf16.xpose.msra.mxu3 %v2099_v38  ;;  %v2422_v43 = vunpack.c.l.b16 %v1454_v25  ;;  %v1457_v12 = vpack.c.bf16 %v5251_v58, %v5251_v58  ;;  %v2178_v55 = vunpack.c.l.b16 %v1215_v1 }
 0x2c7   : > { %v1456_v52 = vpack.c.bf16 %v5250_v41, %v5250_v41  ;;  %v1459_v39 = vpack.c.bf16 %v5296_v40, %v5296_v40  ;;  %v2689_v1 = vsel %vm2655_vm3, %v7156_v47, -inf }
 0x2c8   : > { %v1455_v9 = vpack.c.bf16 %v5206_v14, %v5206_v14  ;;  %v2453_v41 = vunpack.c.l.b16 %v1457_v12 }
 0x2c9   : > { %v7178_v17 = vpop.f32.mrf.mxu3 }
 0x2ca   : > { %v2423_v19 = vunpack.c.l.b16 %v1455_v9  ;;  %v1458_v9 = vpack.c.bf16 %v5295_v61, %v5295_v61  ;;  %v2483_v61 = vunpack.c.l.b16 %v1459_v39 }
 0x2cb   : > { %2675 = vmax.xlane.f32.xlu2 %v2674_v11 }
 0x2cc   : > { %v7188_v34 = vpop.permute.xlu2 %5453  ;;  %2684 = vmax.xlane.f32.xlu0 %v2683_v59  ;;  %v5424_v14 = vpop.permute.xlu0 %5423  ;;  %v2177_v59 = vunpack.c.l.b16 %v1214_v18 }
 0x2cd   : > { %v7192_v38 = vpop.permute.xlu1 %5443  ;;  %2687 = vmax.xlane.f32.xlu1 %v2686_v26  ;;  %v5426_v53 = vunpack.i.h.bf16 %v5424_v14  ;;  %v5425_v24 = vunpack.i.l.bf16 %v5424_v14  ;;  %4947 = vmatmul.msk.bf16.vlgmr.msra.gmra.mxu3 %vm1704_vm2, %v2089_v30  ;;  %v2424_v26 = vpack.c.b16 %v2423_v19, %v2422_v43  ;;  %v2452_v30 = vunpack.c.l.b16 %v1456_v52 }
 0x2ce   : > { %2318 = vmatpush.bf16.xpose.msrb.mxu2 %v2309_v29  ;;  %2228 = vmatpush.bf16.xpose.msrb.mxu3 %v2219_v49  ;;  %8386 = vst [vmem:[#allocation41_spill] sm:$0xff] %v7192_v38  ;;  %v5231_v29 = vunpack.i.h.bf16 %v7014_v8  ;;  %v5230_v49 = vunpack.i.l.bf16 %v7014_v8  ;;  %v2692_v8 = vsel %vm2655_vm3, %v7178_v17, -inf  ;;  %v2179_v40 = vpack.c.b16 %v2178_v55, %v2177_v59 }
 0x2cf   : > { %v1449_v10 = vpack.c.bf16 %v5426_v53, %v5426_v53  ;;  %v1448_v11 = vpack.c.bf16 %v5425_v24, %v5425_v24  ;;  %v2482_v53 = vunpack.c.l.b16 %v1458_v9  ;;  %v5386_v19 = vunpack.i.h.bf16 %v7115_v21 }
 0x2d0   : > { %v1217_v14 = vpack.c.bf16 %v5231_v29, %v5231_v29  ;;  %v1216_v3 = vpack.c.bf16 %v5230_v49, %v5230_v49  ;;  %v5385_v29 = vunpack.i.l.bf16 %v7115_v21  ;;  %v5366_v49 = vunpack.i.h.bf16 %v7119_v20 }
 0x2d1   : > { %v2333_v25 = vunpack.c.l.b16 %v1449_v10  ;;  %v2332_v44 = vunpack.c.l.b16 %v1448_v11  ;;  %v7197_v38 = vpop.f32.mrf.mxu3  ;;  %v2429_v39 = vsel %vm1704_vm2, %v2424_v26, 0  ;;  %v2454_v21 = vpack.c.b16 %v2453_v41, %v2452_v30 }
 0x2d2   : > { %8387 = vst [vmem:[#allocation42_spill] sm:$0xff] %v7197_v38  ;;  %v2695_v58 = vsel %vm2655_vm3, %v7197_v38, -inf  ;;  %v2208_v11 = vunpack.c.l.b16 %v1217_v14  ;;  %v2207_v59 = vunpack.c.l.b16 %v1216_v3  ;;  %v2484_v14 = vpack.c.b16 %v2483_v61, %v2482_v53 }
 0x2d3   : > { %2693 = vmax.xlane.f32.xlu2 %v2692_v8  ;;  %v2334_v18 = vpack.c.b16 %v2333_v25, %v2332_v44  ;;  %v5365_v44 = vunpack.i.l.bf16 %v7119_v20  ;;  %v1463_v8 = vpack.c.bf16 %v5386_v19, %v5386_v19  ;;  %v1223_v20 = vpack.c.bf16 %v5366_v49, %v5366_v49 }
 0x2d4   : > { %v5469_v43 = vpop.permute.xlu2 %5468  ;;  %2690 = vmax.xlane.f32.xlu0 %v2689_v1  ;;  %v7206_v24 = vpop.permute.xlu0 %5438  ;;  %v5456_v1 = vunpack.i.h.bf16 %v7188_v34 }
 0x2d5   : > { %8388 = vst [vmem:[#allocation43_spill] sm:$0xff] %v7206_v24  ;;  %v5471_v12 = vunpack.i.h.bf16 %v5469_v43  ;;  %v5470_v52 = vunpack.i.l.bf16 %v5469_v43  ;;  %v7210_v10 = vpop.permute.xlu1 %5448  ;;  %2696 = vmax.xlane.f32.xlu1 %v2695_v58  ;;  %4950 = vmatmul.msk.bf16.vlgmr.msra.gmra.mxu2 %vm1704_vm2, %v2179_v40  ;;  %v2339_v55 = vsel %vm1704_vm2, %v2334_v18, 0  ;;  %v5455_v43 = vunpack.i.l.bf16 %v7188_v34 }
 0x2d6   : > { %2438 = vmatpush.bf16.xpose.msra.mxu2 %v2429_v39  ;;  %2348 = vmatpush.bf16.xpose.msra.mxu3 %v2339_v55  ;;  %v1462_v58 = vpack.c.bf16 %v5385_v29, %v5385_v29  ;;  %v1222_v26 = vpack.c.bf16 %v5365_v44, %v5365_v44  ;;  %v1227_v41 = vpack.c.bf16 %v5456_v1, %v5456_v1  ;;  %v2459_v34 = vsel %vm1704_vm2, %v2454_v21, 0 }
 0x2d7   : > { %v1451_v9 = vpack.c.bf16 %v5471_v12, %v5471_v12  ;;  %v1450_v25 = vpack.c.bf16 %v5470_v52, %v5470_v52  ;;  %v2209_v12 = vpack.c.b16 %v2208_v11, %v2207_v59  ;;  %v1226_v30 = vpack.c.bf16 %v5455_v43, %v5455_v43 }
 0x2d8   : > { %v2543_v61 = vunpack.c.l.b16 %v1463_v8  ;;  %v2542_v53 = vunpack.c.l.b16 %v1462_v58  ;;  %v2298_v29 = vunpack.c.l.b16 %v1223_v20  ;;  %v2489_v52 = vsel %vm1704_vm2, %v2484_v14, 0 }
 0x2d9   : > { %v2363_v24 = vunpack.c.l.b16 %v1451_v9  ;;  %v2362_v40 = vunpack.c.l.b16 %v1450_v25  ;;  %v7218_v38 = vpop.f32.mrf.mxu3  ;;  %v2297_v39 = vunpack.c.l.b16 %v1222_v26  ;;  %v5431_v11 = vunpack.i.h.bf16 %v7170_v13 }
 0x2da   : > { %v2698_v3 = vsel %vm2655_vm3, %v7218_v38, -inf  ;;  %v5430_v59 = vunpack.i.l.bf16 %v7170_v13  ;;  %v5411_v9 = vunpack.i.h.bf16 %v7166_v0  ;;  %v5410_v25 = vunpack.i.l.bf16 %v7166_v0 }
 0x2db   : > { %v2364_v18 = vpack.c.b16 %v2363_v24, %v2362_v40  ;;  %v2358_v21 = vunpack.c.l.b16 %v1227_v41  ;;  %v2357_v8 = vunpack.c.l.b16 %v1226_v30  ;;  %v5451_v14 = vunpack.i.h.bf16 %v7210_v10 }
 0x2dc   : > { %2699 = vmax.xlane.f32.xlu0 %v2698_v3  ;;  %v7222_v19 = vpop.permute.xlu0 %5458  ;;  %v5450_v58 = vunpack.i.l.bf16 %v7210_v10  ;;  %v2544_v3 = vpack.c.b16 %v2543_v61, %v2542_v53  ;;  %v2299_v0 = vpack.c.b16 %v2298_v29, %v2297_v39  ;;  %v1225_v41 = vpack.c.bf16 %v5411_v9, %v5411_v9 }
 0x2dd   : > { %v5464_v49 = vpop.permute.xlu1 %5463  ;;  %4951 = vmatmul.msk.bf16.vlgmr.msrb.gmra.mxu3 %vm1704_vm2, %v2209_v12  ;;  %v2369_v24 = vsel %vm1704_vm2, %v2364_v18, 0  ;;  %v1465_v18 = vpack.c.bf16 %v5431_v11, %v5431_v11  ;;  %v1464_v12 = vpack.c.bf16 %v5430_v59, %v5430_v59  ;;  %v1224_v30 = vpack.c.bf16 %v5410_v25, %v5410_v25 }
 0x2de   : > { %v5466_v44 = vunpack.i.h.bf16 %v5464_v49  ;;  %v5465_v55 = vunpack.i.l.bf16 %v5464_v49  ;;  %2468 = vmatpush.bf16.xpose.msrb.mxu3 %v2459_v34  ;;  %2378 = vmatpush.bf16.xpose.msra.mxu0 %v2369_v24  ;;  %v2359_v34 = vpack.c.b16 %v2358_v21, %v2357_v8  ;;  %v1210_v10 = vpack.c.bf16 %v5450_v58, %v5450_v58 }
 0x2df   : > { %v2549_v61 = vsel %vm1704_vm2, %v2544_v3, 0  ;;  %v2573_v29 = vunpack.c.l.b16 %v1465_v18  ;;  %v2572_v39 = vunpack.c.l.b16 %v1464_v12  ;;  %v5281_v9 = vunpack.i.h.bf16 %v7061_v23 }
 0x2e0   : > { %v1435_v1 = vpack.c.bf16 %v5466_v44, %v5466_v44  ;;  %v1434_v43 = vpack.c.bf16 %v5465_v55, %v5465_v55  ;;  %v1211_v55 = vpack.c.bf16 %v5451_v14, %v5451_v14  ;;  %v5280_v25 = vunpack.i.l.bf16 %v7061_v23 }
 0x2e1   : > { %v7234_v20 = vpop.f32.mrf.mxu3  ;;  %v2328_v21 = vunpack.c.l.b16 %v1225_v41  ;;  %v2327_v8 = vunpack.c.l.b16 %v1224_v30  ;;  %v2117_v14 = vunpack.c.l.b16 %v1210_v10  ;;  %v1635_v23 = vpack.c.bf16 %v6875_v4, %v6875_v4 }
 0x2e2   : > { %8389 = vst [vmem:[#allocation44_spill] sm:$0xff] %v7234_v20  ;;  %v2123_v40 = vunpack.c.l.b16 %v1435_v1  ;;  %v2122_v26 = vunpack.c.l.b16 %v1434_v43  ;;  %v2701_v13 = vsel %vm2655_vm3, %v7234_v20, -inf  ;;  %v5191_v43 = vunpack.i.h.bf16 %v6983_v50 }
 0x2e3   : > { %2702 = vmax.xlane.f32.xlu2 %v2701_v13  ;;  %v5190_v20 = vunpack.i.l.bf16 %v6983_v50  ;;  %v2118_v50 = vunpack.c.l.b16 %v1211_v55  ;;  %v1630_v13 = vpack.c.bf16 %v6834_v37, %v6834_v37  ;;  %v2574_v18 = vpack.c.b16 %v2573_v29, %v2572_v39 }
 0x2e4   : > { %v5474_v49 = vpop.permute.xlu0 %5473  ;;  %v2124_v44 = vpack.c.b16 %v2123_v40, %v2122_v26  ;;  %v1231_v41 = vpack.c.bf16 %v5191_v43, %v5191_v43  ;;  %v5235_v37 = vunpack.i.l.bf16 %v6993_v45  ;;  %v1235_v55 = vpack.c.bf16 %v5281_v9, %v5281_v9 }
 0x2e5   : > { %v5476_v24 = vunpack.i.h.bf16 %v5474_v49  ;;  %v5475_v1 = vunpack.i.l.bf16 %v5474_v49  ;;  %4954 = vmatmul.msk.bf16.vlgmr.msrb.gmra.mxu2 %vm1704_vm2, %v2299_v0  ;;  %4956 = vmatmul.msk.bf16.vlgmr.msra.gmra.mxu0 %vm1704_vm2, %v2359_v34  ;;  %v1631_v0 = vpack.c.bf16 %v6839_v6, %v6839_v6  ;;  %v1230_v30 = vpack.c.bf16 %v5190_v20, %v5190_v20 }
 0x2e6   : > { %2498 = vmatpush.bf16.xpose.msrb.mxu0 %v2489_v52  ;;  %v7238_v52 = vpop.permute.xlu1 %5478  ;;  %v2129_v53 = vsel %vm1704_vm2, %v2124_v44, 0  ;;  %2558 = vmatpush.bf16.xpose.msrb.mxu2 %v2549_v61  ;;  %v5236_v34 = vunpack.i.h.bf16 %v6993_v45  ;;  %v2329_v49 = vpack.c.b16 %v2328_v21, %v2327_v8  ;;  %v1234_v10 = vpack.c.bf16 %v5280_v25, %v5280_v25 }
 0x2e7   : > { %8390 = vst [vmem:[#allocation45_spill] sm:$0xff] %v7238_v52  ;;  %v1467_v11 = vpack.c.bf16 %v5476_v24, %v5476_v24  ;;  %v1466_v59 = vpack.c.bf16 %v5475_v1, %v5475_v1  ;;  %2138 = vmatpush.bf16.xpose.msrb.mxu1 %v2129_v53  ;;  %v2119_v24 = vpack.c.b16 %v2118_v50, %v2117_v14  ;;  %v5336_v4 = vunpack.i.h.bf16 %v7089_v63 }
 0x2e8   : > { %v1634_v6 = vpack.c.bf16 %v6869_v2, %v6869_v2  ;;  %v5335_v43 = vunpack.i.l.bf16 %v7089_v63  ;;  %v3432_v61 = vunpack.c.l.b16 %v1631_v0  ;;  %v1632_v45 = vpack.c.bf16 %v6851_v57, %v6851_v57 }
 0x2e9   : > { %v2603_v58 = vunpack.c.l.b16 %v1467_v11  ;;  %v2602_v40 = vunpack.c.l.b16 %v1466_v59  ;;  %v7248_v26 = vpop.f32.mrf.mxu3  ;;  %v1633_v53 = vpack.c.bf16 %v6857_v33, %v6857_v33  ;;  %v2579_v29 = vsel %vm1704_vm2, %v2574_v18, 0 }
 0x2ea   : > { %v2704_v3 = vsel %vm2655_vm3, %v7248_v26, -inf  ;;  %v3488_v2 = vunpack.c.l.b16 %v1635_v23  ;;  %v2418_v39 = vunpack.c.l.b16 %v1231_v41  ;;  %v2417_v11 = vunpack.c.l.b16 %v1230_v30 }
 0x2eb   : > { %2705 = vmax.xlane.f32.xlu2 %v2704_v3  ;;  %v2604_v12 = vpack.c.b16 %v2603_v58, %v2602_v40  ;;  %v1233_v59 = vpack.c.bf16 %v5236_v34, %v5236_v34  ;;  %v3431_v63 = vunpack.c.l.b16 %v1630_v13  ;;  %v1232_v9 = vpack.c.bf16 %v5235_v37, %v5235_v37 }
 0x2ec   : > { %v7259_v44 = vpop.permute.xlu0 %5488  ;;  %v2478_v25 = vunpack.c.l.b16 %v1235_v55  ;;  %v2477_v21 = vunpack.c.l.b16 %v1234_v10  ;;  %v3487_v8 = vunpack.c.l.b16 %v1634_v6  ;;  %v1445_v50 = vpack.c.bf16 %v5336_v4, %v5336_v4 }
 0x2ed   : > { %4955 = vmatmul.msk.bf16.vlgmr.msra.gmra.mxu3 %vm1704_vm2, %v2329_v49  ;;  %v2609_v20 = vsel %vm1704_vm2, %v2604_v12, 0  ;;  %v1444_v57 = vpack.c.bf16 %v5335_v43, %v5335_v43  ;;  %v3459_v14 = vunpack.c.l.b16 %v1632_v45  ;;  %v3433_v58 = vpack.c.b16 %v3432_v61, %v3431_v63 }
 0x2ee   : > { %v7262_v1 = vpop.permute.xlu1 %5493  ;;  %4948 = vmatmul.msk.bf16.vlgmr.msrb.gmra.mxu1 %vm1704_vm2, %v2119_v24  ;;  %2588 = vmatpush.bf16.xpose.msra.mxu3 %v2579_v29  ;;  %v3460_v33 = vunpack.c.l.b16 %v1633_v53  ;;  %v2419_v40 = vpack.c.b16 %v2418_v39, %v2417_v11  ;;  %v2448_v3 = vunpack.c.l.b16 %v1233_v59  ;;  %v3489_v18 = vpack.c.b16 %v3488_v2, %v3487_v8 }
 0x2ef   : > { %2618 = vmatpush.bf16.xpose.msra.mxu0 %v2609_v20  ;;  %v2447_v23 = vunpack.c.l.b16 %v1232_v9  ;;  %v2479_v12 = vpack.c.b16 %v2478_v25, %v2477_v21  ;;  %v2273_v49 = vunpack.c.l.b16 %v1445_v50  ;;  %v2272_v13 = vunpack.c.l.b16 %v1444_v57 }
 0x2f0   : > { %v5491_v10 = vunpack.i.h.bf16 %v7259_v44  ;;  %v5490_v24 = vunpack.i.l.bf16 %v7259_v44  ;;  %v5371_v43 = vunpack.i.h.bf16 %v7106_v48  ;;  %v5370_v20 = vunpack.i.l.bf16 %v7106_v48 }
 0x2f1   : > { %v5461_v61 = vunpack.i.h.bf16 %v7222_v19  ;;  %v5460_v45 = vunpack.i.l.bf16 %v7222_v19  ;;  %v7284_v53 = vpop.f32.mrf.mxu3  ;;  %v1638_v11 = vpack.c.bf16 %v6915_v28, %v6915_v28  ;;  %v3461_v59 = vpack.c.b16 %v3460_v33, %v3459_v14  ;;  %v7293_v14 = vpop.permute.xlu2 %5483 }
 0x2f2   : > { %v2274_v63 = vpack.c.b16 %v2273_v49, %v2272_v13  ;;  %v1639_v9 = vpack.c.bf16 %v6929_v42, %v6929_v42  ;;  %v1213_v48 = vpack.c.bf16 %v5491_v10, %v5491_v10  ;;  %v1212_v25 = vpack.c.bf16 %v5490_v24, %v5490_v24  ;;  %8391 = vst [vmem:[#allocation46_spill] sm:$0xff] %v7293_v14 }
 0x2f3   : > { %v2449_v8 = vpack.c.b16 %v2448_v3, %v2447_v23  ;;  %v1239_v19 = vpack.c.bf16 %v5371_v43, %v5371_v43  ;;  %v1238_v50 = vpack.c.bf16 %v5370_v20, %v5370_v20  ;;  %v1243_v57 = vpack.c.bf16 %v5461_v61, %v5461_v61 }
 0x2f4   : > { %v5504_v0 = vpop.permute.xlu0 %5503  ;;  %v1643_v28 = vpack.c.bf16 %v7035_v35, %v7035_v35  ;;  %v2279_v42 = vsel %vm1704_vm2, %v2274_v63, 0  ;;  %v3544_v33 = vunpack.c.l.b16 %v1639_v9  ;;  %v1642_v3 = vpack.c.bf16 %v6999_v54, %v6999_v54 }
 0x2f5   : > { %v5506_v30 = vunpack.i.h.bf16 %v5504_v0  ;;  %v5505_v34 = vunpack.i.l.bf16 %v5504_v0  ;;  %4958 = vmatmul.msk.bf16.vlgmr.msra.gmra.mxu2 %vm1704_vm2, %v2419_v40  ;;  %4960 = vmatmul.msk.bf16.vlgmr.msrb.gmra.mxu0 %vm1704_vm2, %v2479_v12  ;;  %v2148_v23 = vunpack.c.l.b16 %v1213_v48  ;;  %v2147_v12 = vunpack.c.l.b16 %v1212_v25 }
 0x2f6   : > { %v5509_v41 = vpop.permute.xlu1 %5508  ;;  %3445 = vmatpush.bf16.msra.mxu2 %v3433_v58  ;;  %v1242_v58 = vpack.c.bf16 %v5460_v45, %v5460_v45  ;;  %v5415_v49 = vunpack.i.l.bf16 %v7150_v56  ;;  %v3543_v13 = vunpack.c.l.b16 %v1638_v11  ;;  %v3599_v61 = vunpack.c.l.b16 %v1642_v3 }
 0x2f7   : > { %v5511_v37 = vunpack.i.h.bf16 %v5509_v41  ;;  %v5510_v55 = vunpack.i.l.bf16 %v5509_v41  ;;  %v1437_v6 = vpack.c.bf16 %v5506_v30, %v5506_v30  ;;  %v1436_v4 = vpack.c.bf16 %v5505_v34, %v5505_v34  ;;  %3501 = vmatpush.bf16.msrb.mxu0 %v3489_v18 }
 0x2f8   : > { %v2538_v41 = vunpack.c.l.b16 %v1239_v19  ;;  %v2537_v30 = vunpack.c.l.b16 %v1238_v50  ;;  %v5416_v34 = vunpack.i.h.bf16 %v7150_v56  ;;  %v2149_v43 = vpack.c.b16 %v2148_v23, %v2147_v12 }
 0x2f9   : > { %v1453_v29 = vpack.c.bf16 %v5511_v37, %v5511_v37  ;;  %v1452_v2 = vpack.c.bf16 %v5510_v55, %v5510_v55  ;;  %v2153_v39 = vunpack.c.l.b16 %v1437_v6  ;;  %v2152_v44 = vunpack.c.l.b16 %v1436_v4 }
 0x2fa   : > { %v2598_v37 = vunpack.c.l.b16 %v1243_v57  ;;  %v2597_v55 = vunpack.c.l.b16 %v1242_v58  ;;  %v3600_v6 = vunpack.c.l.b16 %v1643_v28  ;;  %v1641_v4 = vpack.c.bf16 %v6976_v36, %v6976_v36 }
 0x2fb   : > { %v2154_v21 = vpack.c.b16 %v2153_v39, %v2152_v44  ;;  %v2393_v40 = vunpack.c.l.b16 %v1453_v29  ;;  %v2392_v0 = vunpack.c.l.b16 %v1452_v2  ;;  %v3545_v20 = vpack.c.b16 %v3544_v33, %v3543_v13 }
 0x2fc   : > { %v2539_v45 = vpack.c.b16 %v2538_v41, %v2537_v30  ;;  %v1241_v29 = vpack.c.bf16 %v5416_v34, %v5416_v34  ;;  %v1240_v56 = vpack.c.bf16 %v5415_v49, %v5415_v49  ;;  %v5341_v2 = vunpack.i.h.bf16 %v7108_v22 }
 0x2fd   : > { %v2159_v18 = vsel %vm1704_vm2, %v2154_v21, 0  ;;  %4959 = vmatmul.msk.bf16.vlgmr.msrb.gmra.mxu3 %vm1704_vm2, %v2449_v8  ;;  %v2394_v24 = vpack.c.b16 %v2393_v40, %v2392_v0  ;;  %v5340_v39 = vunpack.i.l.bf16 %v7108_v22  ;;  %v2599_v44 = vpack.c.b16 %v2598_v37, %v2597_v55  ;;  %v7317_v21 = vpop.permute.xlu2 %5498 }
 0x2fe   : > { %2168 = vmatpush.bf16.xpose.msra.mxu1 %v2159_v18  ;;  %3473 = vmatpush.bf16.msrb.mxu3 %v3461_v59  ;;  %v3601_v59 = vpack.c.b16 %v3600_v6, %v3599_v61  ;;  %v1640_v63 = vpack.c.bf16 %v6955_v51, %v6955_v51  ;;  %v5321_v9 = vunpack.i.h.bf16 %v7072_v60  ;;  %v5320_v48 = vunpack.i.l.bf16 %v7072_v60 }
 0x2ff   : > { %v2399_v11 = vsel %vm1704_vm2, %v2394_v24, 0  ;;  %v2568_v22 = vunpack.c.l.b16 %v1241_v29  ;;  %v2567_v25 = vunpack.c.l.b16 %v1240_v56  ;;  %v3572_v8 = vunpack.c.l.b16 %v1641_v4 }
 0x300   : > { %v7301_v10 = vpop.f32.mrf.mxu3  ;;  %v1461_v19 = vpack.c.bf16 %v5341_v2, %v5341_v2  ;;  %v1460_v50 = vpack.c.bf16 %v5340_v39, %v5340_v39  ;;  %v3571_v57 = vunpack.c.l.b16 %v1640_v63  ;;  %v1221_v58 = vpack.c.bf16 %v5321_v9, %v5321_v9 }
 0x301   : > { %v2710_v54 = vsel %vm2655_vm3, %v7301_v10, -inf  ;;  %v1220_v40 = vpack.c.bf16 %v5320_v48, %v5320_v48  ;;  %v2569_v0 = vpack.c.b16 %v2568_v22, %v2567_v25  ;;  %v5496_v34 = vunpack.i.h.bf16 %v7262_v1 }
 0x302   : > { %2711 = vmax.xlane.f32.xlu2 %v2710_v54  ;;  %v2513_v51 = vunpack.c.l.b16 %v1461_v19  ;;  %v2512_v18 = vunpack.c.l.b16 %v1460_v50  ;;  %v3573_v28 = vpack.c.b16 %v3572_v8, %v3571_v57  ;;  %v2268_v60 = vunpack.c.l.b16 %v1221_v58 }
 0x303   : > { %v5495_v49 = vunpack.i.l.bf16 %v7262_v1  ;;  %v1229_v55 = vpack.c.bf16 %v5496_v34, %v5496_v34  ;;  %v5326_v56 = vunpack.i.h.bf16 %v7101_v32  ;;  %v5325_v1 = vunpack.i.l.bf16 %v7101_v32 }
 0x304   : > { %v2514_v33 = vpack.c.b16 %v2513_v51, %v2512_v18  ;;  %v1637_v63 = vpack.c.bf16 %v6898_v62, %v6898_v62  ;;  %v1636_v9 = vpack.c.bf16 %v6886_v27, %v6886_v27  ;;  %v5500_v18 = vunpack.i.l.bf16 %v7317_v21 }
 0x305   : > { %4949 = vmatmul.msk.bf16.vlgmr.msra.gmra.mxu1 %vm1704_vm2, %v2149_v43  ;;  %4962 = vmatmul.msk.bf16.vlgmr.msrb.gmra.mxu2 %vm1704_vm2, %v2539_v45  ;;  %v5514_v3 = vpop.permute.xlu2 %5513  ;;  %v1228_v24 = vpack.c.bf16 %v5495_v49, %v5495_v49  ;;  %v2388_v4 = vunpack.c.l.b16 %v1229_v55 }
 0x306   : > { %2288 = vmatpush.bf16.xpose.msrb.mxu1 %v2279_v42  ;;  %4964 = vmatmul.msk.bf16.vlgmr.msra.gmra.mxu0 %vm1704_vm2, %v2599_v44  ;;  %v2267_v42 = vunpack.c.l.b16 %v1220_v40  ;;  %v5516_v12 = vunpack.i.h.bf16 %v5514_v3  ;;  %v5515_v41 = vunpack.i.l.bf16 %v5514_v3  ;;  %v2519_v30 = vsel %vm1704_vm2, %v2514_v33, 0  ;;  %v7339_v40 = vpop.f32.mrf.mxu1 }
 0x307   : > { %3557 = vmatpush.bf16.msrb.mxu2 %v3545_v20  ;;  %3613 = vmatpush.bf16.msra.mxu0 %v3601_v59  ;;  %v2387_v43 = vunpack.c.l.b16 %v1228_v24  ;;  %v7324_v20 = vpop.permute.xlu0 %5518  ;;  %v1236_v59 = vpack.c.bf16 %v5325_v1, %v5325_v1  ;;  %v3516_v32 = vunpack.c.l.b16 %v1637_v63  ;;  %v3515_v58 = vunpack.c.l.b16 %v1636_v9 }
 0x308   : > { %v2269_v23 = vpack.c.b16 %v2268_v60, %v2267_v42  ;;  %v1469_v13 = vpack.c.bf16 %v5516_v12, %v5516_v12  ;;  %v1468_v37 = vpack.c.bf16 %v5515_v41, %v5515_v41  ;;  %8392 = vst [vmem:[#allocation47_spill] sm:$0xff] %v7324_v20  ;;  %v7350_v42 = vpop.permute.xlu1 %5523  ;;  %v2707_v12 = vsel %vm2655_vm3, %v7284_v53, -inf  ;;  %v7379_v9 = vpop.f32.mrf.mxu3 }
 0x309   : > { %v2389_v45 = vpack.c.b16 %v2388_v4, %v2387_v43  ;;  %v2507_v25 = vunpack.c.l.b16 %v1236_v59  ;;  %v3517_v51 = vpack.c.b16 %v3516_v32, %v3515_v58  ;;  %8393 = vst [vmem:[#allocation48_spill] sm:$0xff] %v7350_v42  ;;  %v2716_v1 = vsel %vm2655_vm3, %v7339_v40, -inf }
 0x30a   : > { %v2633_v6 = vunpack.c.l.b16 %v1469_v13  ;;  %v2632_v54 = vunpack.c.l.b16 %v1468_v37  ;;  %v8395_v37 = vld [vmem:[#allocation24_spill] sm:$0xff] }
 0x30b   : > { %v1644_v55 = vpack.c.bf16 %v8395_v37, %v8395_v37 }
 0x30c   : > { %v2634_v61 = vpack.c.b16 %v2633_v6, %v2632_v54 }
 0x30d   : > { %4963 = vmatmul.msk.bf16.vlgmr.msra.gmra.mxu3 %vm1704_vm2, %v2569_v0 }
 0x30e   : > { %2408 = vmatpush.bf16.xpose.msra.mxu1 %v2399_v11  ;;  %3585 = vmatpush.bf16.msra.mxu3 %v3573_v28  ;;  %v2639_v29 = vsel %vm1704_vm2, %v2634_v61, 0  ;;  %v1237_v11 = vpack.c.bf16 %v5326_v56, %v5326_v56  ;;  %v7360_v34 = vpop.f32.mrf.mxu1 }
 0x310   : > { %v2508_v22 = vunpack.c.l.b16 %v1237_v11 }
 0x312   : > { %v2509_v0 = vpack.c.b16 %v2508_v22, %v2507_v25  ;;  %v7362_v49 = vpop.f32.mrf.mxu0 }
 0x315   : > { %4953 = vmatmul.msk.bf16.vlgmr.msrb.gmra.mxu1 %vm1704_vm2, %v2269_v23  ;;  %v1244_v23 = vpack.c.bf16 %v5500_v18, %v5500_v18 }
 0x316   : > { %2528 = vmatpush.bf16.xpose.msrb.mxu1 %v2519_v30  ;;  %v8394_v30 = vld [vmem:[#allocation25_spill] sm:$0xff] }
 0x317   : > { %v2627_v54 = vunpack.c.l.b16 %v1244_v23 }
 0x31a   : > { %v7377_v59 = vpop.f32.mrf.mxu0 }
 0x31b   : > { %v2767_v32 = vsel %vm2655_vm3, %v7377_v59, -inf }
 0x323   : > { %v7374_v11 = vpop.f32.mrf.mxu1 }
 0x325   : > { %4957 = vmatmul.msk.bf16.vlgmr.msra.gmra.mxu1 %vm1704_vm2, %v2389_v45  ;;  %v3627_v45 = vunpack.c.l.b16 %v1644_v55  ;;  %v8399_v55 = vld [vmem:[#allocation32_spill] sm:$0xff] }
 0x326   : > { %2648 = vmatpush.bf16.xpose.msra.mxu1 %v2639_v29 }
 0x327   : > { %v2658_v2 = vpop.xlane.xlu0 %2657 }
 0x328   : > { %v2848_v39 = vsub.f32 %v7028_v7, %v2658_v2  ;;  %v2670_v29 = vpop.xlane.xlu1 %2669 }
 0x32a   : > { %v2912_v44 = vmul.f32 1.442695, %v2848_v39  ;;  %v2764_v39 = vsel %vm2655_vm3, %v7362_v49, -inf }
 0x32c   : > { %5689 = vpow2.f32 %v2912_v44  ;;  %v2719_v44 = vsel %vm2655_vm3, %v7360_v34, -inf }
 0x32e   : > { %v2661_v48 = vpop.xlane.xlu2 %2660 }
 0x32f   : > { %v2849_v8 = vsub.f32 %v7041_v31, %v2661_v48  ;;  %v2664_v19 = vpop.xlane.xlu0 %2663 }
 0x330   : > { %v2850_v50 = vsub.f32 %v7054_v46, %v2664_v19  ;;  %v5501_v46 = vunpack.i.h.bf16 %v7317_v21  ;;  %v1645_v21 = vpack.c.bf16 %v8394_v30, %v8394_v30  ;;  %v2679_v58 = vpop.xlane.xlu1 %2678 }
 0x331   : > { %v2914_v7 = vmul.f32 1.442695, %v2849_v8  ;;  %v8396_v8 = vld [vmem:[#allocation36_spill] sm:$0xff] }
 0x332   : > { %v7337_v57 = vpop.eup %5689  ;;  %v2916_v62 = vmul.f32 1.442695, %v2850_v50  ;;  %v1245_v3 = vpack.c.bf16 %v5501_v46, %v5501_v46  ;;  %v3628_v43 = vunpack.c.l.b16 %v1645_v21 }
 0x333   : > { %5691 = vpow2.f32 %v2914_v7  ;;  %v3040_v27 = vsel %vm2655_vm3, %v7337_v57, 0.0  ;;  %v2713_v7 = vsel %vm2655_vm3, %v7379_v9, -inf }
 0x334   : > { %5693 = vpow2.f32 %v2916_v62  ;;  %3041 = vadd.xlane.f32.xlu1 %v3040_v27  ;;  %v2628_v6 = vunpack.c.l.b16 %v1245_v3 }
 0x335   : > { %4961 = vmatmul.msk.bf16.vlgmr.msrb.gmra.mxu1 %vm1704_vm2, %v2509_v0  ;;  %v7393_v0 = vpop.f32.mrf.mxu1 }
 0x336   : > { %3529 = vmatpush.bf16.msrb.mxu1 %v3517_v51  ;;  %v2667_v31 = vpop.xlane.xlu2 %2666  ;;  %v2629_v2 = vpack.c.b16 %v2628_v6, %v2627_v54  ;;  %v2725_v18 = vsel %vm2655_vm3, %v7393_v0, -inf }
 0x337   : > { %v2673_v13 = vpop.xlane.xlu0 %2672  ;;  %v2851_v56 = vsub.f32 %v7067_v5, %v2667_v31  ;;  %v8397_v31 = vld [vmem:[#allocation27_spill] sm:$0xff] }
 0x338   : > { %v2853_v22 = vsub.f32 %v7096_v16, %v2673_v13  ;;  %v2852_v46 = vsub.f32 %v8397_v31, %v2670_v29  ;;  %v8398_v13 = vld [vmem:[#allocation34_spill] sm:$0xff] }
 0x339   : > { %v7346_v28 = vpop.eup %5691  ;;  %v2918_v5 = vmul.f32 1.442695, %v2851_v56 }
 0x33a   : > { %v7348_v60 = vpop.eup %5693  ;;  %v3043_v33 = vsel %vm2655_vm3, %v7346_v28, 0.0  ;;  %v2922_v62 = vmul.f32 1.442695, %v2853_v22  ;;  %v2920_v23 = vmul.f32 1.442695, %v2852_v46 }
 0x33b   : > { %3044 = vadd.xlane.f32.xlu0 %v3043_v33  ;;  %v3046_v41 = vsel %vm2655_vm3, %v7348_v60, 0.0 }
 0x33c   : > { %2708 = vmax.xlane.f32.xlu1 %v2707_v12  ;;  %3047 = vadd.xlane.f32.xlu2 %v3046_v41  ;;  %v2682_v12 = vpop.xlane.xlu1 %2681 }
 0x33d   : > { %v2856_v37 = vsub.f32 %v8398_v13, %v2682_v12 }
 0x33e   : > { %v2676_v24 = vpop.xlane.xlu2 %2675 }
 0x33f   : > { %v2854_v4 = vsub.f32 %v7104_v15, %v2676_v24  ;;  %v3629_v15 = vpack.c.b16 %v3628_v43, %v3627_v45  ;;  %v2685_v63 = vpop.xlane.xlu0 %2684  ;;  %v2855_v24 = vsub.f32 %v8399_v55, %v2679_v58  ;;  %v2928_v43 = vmul.f32 1.442695, %v2856_v37 }
 0x340   : > { %v2857_v19 = vsub.f32 %v8396_v8, %v2685_v63  ;;  %v8400_v63 = vld [vmem:[#allocation38_spill] sm:$0xff] }
 0x341   : > { %v2924_v61 = vmul.f32 1.442695, %v2854_v4  ;;  %v2722_v4 = vsel %vm2655_vm3, %v7374_v11, -inf }
 0x342   : > { %v2930_v16 = vmul.f32 1.442695, %v2857_v19 }
 0x343   : > { %5695 = vpow2.f32 %v2924_v61  ;;  %2717 = vmax.xlane.f32.xlu0 %v2716_v1  ;;  %v2926_v61 = vmul.f32 1.442695, %v2855_v24 }
 0x344   : > { %2765 = vmax.xlane.f32.xlu1 %v2764_v39  ;;  %2720 = vmax.xlane.f32.xlu2 %v2719_v44  ;;  %5697 = vpow2.f32 %v2918_v5 }
 0x345   : > { %4965 = vmatmul.msk.bf16.vlgmr.msra.gmra.mxu1 %vm1704_vm2, %v2629_v2  ;;  %5699 = vpow2.f32 %v2922_v62 }
 0x346   : > { %3641 = vmatpush.bf16.msra.mxu1 %v3629_v15  ;;  %5701 = vpow2.f32 %v2930_v16  ;;  %v2688_v15 = vpop.xlane.xlu1 %2687 }
 0x347   : > { %5703 = vpow2.f32 %v2920_v23  ;;  %v2858_v22 = vsub.f32 %v8400_v63, %v2688_v15  ;;  %v2691_v55 = vpop.xlane.xlu0 %2690 }
 0x348   : > { %v7384_v25 = vpop.f32.mrf.mxu2  ;;  %5705 = vpow2.f32 %v2928_v43 }
 0x349   : > { %v7381_v48 = vpop.eup %5695  ;;  %5707 = vpow2.f32 %v2926_v61  ;;  %v2728_v56 = vsel %vm2655_vm3, %v7384_v25, -inf }
 0x34a   : > { %v3058_v50 = vsel %vm2655_vm3, %v7381_v48, 0.0  ;;  %v7395_v27 = vpop.eup %5697 }
 0x34b   : > { %2768 = vmax.xlane.f32.xlu0 %v2767_v32  ;;  %v3049_v3 = vsel %vm2655_vm3, %v7395_v27, 0.0  ;;  %v7408_v30 = vpop.eup %5699 }
 0x34c   : > { %3059 = vadd.xlane.f32.xlu2 %v3058_v50  ;;  %2714 = vmax.xlane.f32.xlu1 %v2713_v7  ;;  %v7410_v21 = vpop.eup %5701  ;;  %v3055_v6 = vsel %vm2655_vm3, %v7408_v30, 0.0  ;;  %v2932_v7 = vmul.f32 1.442695, %v2858_v22  ;;  %v2694_v22 = vpop.xlane.xlu2 %2693 }
 0x34d   : > { %v3067_v54 = vsel %vm2655_vm3, %v7410_v21, 0.0  ;;  %v7420_v45 = vpop.eup %5703 }
 0x34e   : > { %v3052_v1 = vsel %vm2655_vm3, %v7420_v45, 0.0  ;;  %v7432_v44 = vpop.eup %5705  ;;  %5709 = vpow2.f32 %v2932_v7  ;;  %v2860_v7 = vsub.f32 %v7178_v17, %v2694_v22 }
 0x34f   : > { %v7434_v5 = vpop.eup %5707  ;;  %v3064_v8 = vsel %vm2655_vm3, %v7432_v44, 0.0 }
 0x350   : > { %v7397_v51 = vpop.f32.mrf.mxu2  ;;  %v7406_v41 = vpop.f32.mrf.mxu3  ;;  %v3061_v19 = vsel %vm2655_vm3, %v7434_v5, 0.0 }
 0x351   : > { %v2731_v33 = vsel %vm2655_vm3, %v7397_v51, -inf  ;;  %v2734_v31 = vsel %vm2655_vm3, %v7406_v41, -inf }
 0x353   : > { %2726 = vmax.xlane.f32.xlu0 %v2725_v18 }
 0x354   : > { %2732 = vmax.xlane.f32.xlu2 %v2731_v33  ;;  %3050 = vadd.xlane.f32.xlu1 %v3049_v3  ;;  %v7457_v33 = vpop.eup %5709 }
 0x355   : > { %v3070_v13 = vsel %vm2655_vm3, %v7457_v33, 0.0 }
 0x358   : > { %v7422_v29 = vpop.f32.mrf.mxu3  ;;  %v7430_v39 = vpop.f32.mrf.mxu2 }
 0x359   : > { %v2737_v2 = vsel %vm2655_vm3, %v7422_v29, -inf  ;;  %v2752_v46 = vsel %vm2655_vm3, %v7430_v39, -inf }
 0x35b   : > { %3056 = vadd.xlane.f32.xlu0 %v3055_v6  ;;  %v2859_v6 = vsub.f32 %v7156_v47, %v2691_v55  ;;  %v2936_v55 = vmul.f32 1.442695, %v2860_v7  ;;  %v2700_v7 = vpop.xlane.xlu0 %2699 }
 0x35c   : > { %3068 = vadd.xlane.f32.xlu2 %v3067_v54  ;;  %2723 = vmax.xlane.f32.xlu1 %v2722_v4 }
 0x35d   : > { %v2934_v61 = vmul.f32 1.442695, %v2859_v6  ;;  %v7504_v6 = vpop.xlane.xlu2 %2702 }
 0x35f   : > { %5711 = vpow2.f32 %v2934_v61 }
 0x360   : > { %v7445_v58 = vpop.f32.mrf.mxu2  ;;  %v7449_v16 = vpop.f32.mrf.mxu3  ;;  %5713 = vpow2.f32 %v2936_v55 }
 0x361   : > { %v2758_v18 = vsel %vm2655_vm3, %v7449_v16, -inf  ;;  %v2755_v12 = vsel %vm2655_vm3, %v7445_v58, -inf }
 0x362   : > { %v7447_v62 = vpop.f32.mrf.mxu0 }
 0x363   : > { %2729 = vmax.xlane.f32.xlu0 %v2728_v56  ;;  %v2788_v4 = vsel %vm2655_vm3, %v7447_v62, -inf }
 0x364   : > { %3053 = vadd.xlane.f32.xlu1 %v3052_v1  ;;  %2738 = vmax.xlane.f32.xlu2 %v2737_v2 }
 0x368   : > { %v7459_v3 = vpop.f32.mrf.mxu2  ;;  %v7480_v1 = vpop.f32.mrf.mxu3 }
 0x369   : > { %v2776_v47 = vsel %vm2655_vm3, %v7459_v3, -inf  ;;  %v2761_v15 = vsel %vm2655_vm3, %v7480_v1, -inf }
 0x36a   : > { %v7461_v23 = vpop.f32.mrf.mxu0 }
 0x36b   : > { %3065 = vadd.xlane.f32.xlu0 %v3064_v8  ;;  %v7441_v32 = vpop.f32.mrf.mxu1  ;;  %v2791_v37 = vsel %vm2655_vm3, %v7461_v23, -inf }
 0x36c   : > { %3062 = vadd.xlane.f32.xlu1 %v3061_v19  ;;  %v2740_v50 = vsel %vm2655_vm3, %v7441_v32, -inf  ;;  %v7492_v19 = vpop.eup %5711 }
 0x36d   : > { %2741 = vmax.xlane.f32.xlu2 %v2740_v50 }
 0x370   : > { %v7472_v54 = vpop.f32.mrf.mxu2  ;;  %v7494_v50 = vpop.f32.mrf.mxu3 }
 0x371   : > { %v2779_v56 = vsel %vm2655_vm3, %v7472_v54, -inf }
 0x372   : > { %v7482_v2 = vpop.f32.mrf.mxu0 }
 0x373   : > { %2735 = vmax.xlane.f32.xlu0 %v2734_v31  ;;  %v7469_v24 = vpop.f32.mrf.mxu1  ;;  %v2812_v8 = vsel %vm2655_vm3, %v7482_v2, -inf  ;;  %v2697_v31 = vpop.xlane.xlu1 %2696 }
 0x374   : > { %2753 = vmax.xlane.f32.xlu1 %v2752_v46  ;;  %v2743_v43 = vsel %vm2655_vm3, %v7469_v24, -inf }
 0x375   : > { %2759 = vmax.xlane.f32.xlu2 %v2758_v18  ;;  %v3073_v18 = vsel %vm2655_vm3, %v7492_v19, 0.0 }
 0x378   : > { %v7497_v46 = vpop.f32.mrf.mxu2  ;;  %v7518_v22 = vpop.f32.mrf.mxu3 }
 0x379   : > { %8403 = vst [vmem:[#allocation24_spill] sm:$0xff] %v7518_v22 }
 0x37a   : > { %v7510_v61 = vpop.f32.mrf.mxu0 }
 0x37b   : > { %2756 = vmax.xlane.f32.xlu0 %v2755_v12  ;;  %v2782_v12 = vsel %vm2655_vm3, %v7494_v50, -inf }
 0x37c   : > { %3071 = vadd.xlane.f32.xlu1 %v3070_v13  ;;  %v8401_v13 = vld [vmem:[#allocation42_spill] sm:$0xff] }
 0x37d   : > { %2792 = vmax.xlane.f32.xlu2 %v2791_v37  ;;  %v2861_v37 = vsub.f32 %v8401_v13, %v2697_v31  ;;  %v2706_v31 = vpop.xlane.xlu2 %2705 }
 0x380   : > { %v7537_v42 = vpop.f32.mrf.mxu3 }
 0x381   : > { %8408 = vst [vmem:[#allocation38_spill] sm:$0xff] %v7537_v42 }
 0x382   : > { %v7488_v63 = vpop.f32.mrf.mxu1 }
 0x383   : > { %2789 = vmax.xlane.f32.xlu0 %v2788_v4  ;;  %v2800_v4 = vsel %vm2655_vm3, %v7497_v46, -inf  ;;  %v7539_v14 = vpop.f32.mrf.mxu0 }
 0x384   : > { %2744 = vmax.xlane.f32.xlu1 %v2743_v43  ;;  %v2938_v43 = vmul.f32 1.442695, %v2861_v37  ;;  %v2862_v37 = vsub.f32 %v7218_v38, %v2700_v7  ;;  %8409 = vst [vmem:[#allocation42_spill] sm:$0xff] %v7539_v14  ;;  %v2785_v7 = vsel %vm2655_vm3, %v7518_v22, -inf }
 0x385   : > { %2780 = vmax.xlane.f32.xlu2 %v2779_v56  ;;  %v2746_v56 = vsel %vm2655_vm3, %v7488_v63, -inf }
 0x386   : > { %5715 = vpow2.f32 %v2938_v43 }
 0x38a   : > { %v7508_v17 = vpop.f32.mrf.mxu1 }
 0x38b   : > { %2777 = vmax.xlane.f32.xlu0 %v2776_v47  ;;  %8402 = vst [vmem:[#allocation25_spill] sm:$0xff] %v7508_v17  ;;  %v2815_v47 = vsel %vm2655_vm3, %v7510_v61, -inf }
 0x38c   : > { %2762 = vmax.xlane.f32.xlu1 %v2761_v15  ;;  %v2749_v15 = vsel %vm2655_vm3, %v7508_v17, -inf }
 0x38d   : > { %2813 = vmax.xlane.f32.xlu2 %v2812_v8  ;;  %v7520_v8 = vpop.eup %5713 }
 0x38e   : > { %8404 = vst [vmem:[#allocation36_spill] sm:$0xff] %v7520_v8  ;;  %v7526_v13 = vpop.eup %5715  ;;  %v3076_v55 = vsel %vm2655_vm3, %v7520_v8, 0.0 }
 0x38f   : > { %8407 = vst [vmem:[#allocation32_spill] sm:$0xff] %v7526_v13  ;;  %v3079_v43 = vsel %vm2655_vm3, %v7526_v13, 0.0 }
 0x393   : > { %3074 = vadd.xlane.f32.xlu0 %v3073_v18  ;;  %v7522_v18 = vpop.f32.mrf.mxu2 }
 0x394   : > { %2783 = vmax.xlane.f32.xlu1 %v2782_v12  ;;  %8405 = vst [vmem:[#allocation27_spill] sm:$0xff] %v7522_v18  ;;  %v7524_v12 = vpop.f32.mrf.mxu1 }
 0x395   : > { %2801 = vmax.xlane.f32.xlu2 %v2800_v4  ;;  %8406 = vst [vmem:[#allocation34_spill] sm:$0xff] %v7524_v12  ;;  %v2803_v4 = vsel %vm2655_vm3, %v7522_v18, -inf }
 0x39b   : > { %2747 = vmax.xlane.f32.xlu0 %v2746_v56  ;;  %v2940_v56 = vmul.f32 1.442695, %v2862_v37  ;;  %v2864_v37 = vsub.f32 %v7248_v26, %v2706_v31  ;;  %v8413_v26 = vld [vmem:[#allocation44_spill] sm:$0xff] }
 0x39c   : > { %2816 = vmax.xlane.f32.xlu1 %v2815_v47  ;;  %v7535_v47 = vpop.xlane.xlu2 %2711  ;;  %v7541_v38 = vpop.f32.mrf.mxu1  ;;  %v2863_v31 = vsub.f32 %v8413_v26, %v7504_v6 }
 0x39d   : > { %2750 = vmax.xlane.f32.xlu2 %v2749_v15  ;;  %8410 = vst [vmem:[#allocation49_spill] sm:$0xff] %v7541_v38  ;;  %v2944_v20 = vmul.f32 1.442695, %v2864_v37  ;;  %v7569_v26 = vpop.f32.mrf.mxu0 }
 0x39e   : > { %v2942_v8 = vmul.f32 1.442695, %v2863_v31 }
 0x3a3   : > { %3077 = vadd.xlane.f32.xlu0 %v3076_v55  ;;  %v2836_v55 = vsel %vm2655_vm3, %v7539_v14, -inf }
 0x3a4   : > { %2804 = vmax.xlane.f32.xlu1 %v2803_v4  ;;  %v2770_v4 = vsel %vm2655_vm3, %v7524_v12, -inf  ;;  %v7565_v37 = vpop.f32.mrf.mxu1 }
 0x3a5   : > { %3080 = vadd.xlane.f32.xlu2 %v3079_v43  ;;  %8415 = vst [vmem:[#allocation44_spill] sm:$0xff] %v7565_v37 }
 0x3a7   : > { %v3042_v15 = vpop.xlane.xlu1 %3041 }
 0x3a8   : > { %5717 = vrcp.f32 %v3042_v15 }
 0x3a9   : > { %5719 = vpow2.f32 %v2940_v56 }
 0x3ab   : > { %2786 = vmax.xlane.f32.xlu0 %v2785_v7  ;;  %v8412_v7 = vld [vmem:[#allocation17_spill] sm:$0xff] }
 0x3ac   : > { %2837 = vmax.xlane.f32.xlu1 %v2836_v55  ;;  %v5211_v18 = vunpack.i.h.bf16 %v8412_v7  ;;  %v5210_v14 = vunpack.i.l.bf16 %v8412_v7  ;;  %v7558_v55 = vpop.f32.mrf.mxu3 }
 0x3ad   : > { %2771 = vmax.xlane.f32.xlu2 %v2770_v4  ;;  %8414 = vst [vmem:[#allocation17_spill] sm:$0xff] %v7558_v55  ;;  %v2809_v6 = vsel %vm2655_vm3, %v7558_v55, -inf }
 0x3ae   : > { %v3045_v43 = vpop.xlane.xlu0 %3044  ;;  %v5718_v36 = vpop.eup %5717  ;;  %v1647_v7 = vpack.c.bf16 %v5211_v18, %v5211_v18  ;;  %v1646_v22 = vpack.c.bf16 %v5210_v14, %v5210_v14 }
 0x3af   : > { %5721 = vrcp.f32 %v3045_v43  ;;  %v7550_v56 = vpop.xlane.xlu1 %2708  ;;  %v3048_v15 = vpop.xlane.xlu2 %3047  ;;  %v3296_v4 = vmul.f32 %v5718_v36, %v7337_v57  ;;  %v2806_v43 = vsel %vm2655_vm3, %v7537_v42, -inf }
 0x3b0   : > { %v7552_v35 = vpop.eup %5719  ;;  %5723 = vpow2.f32 %v2944_v20  ;;  %v3656_v14 = vunpack.c.l.b16 %v1647_v7  ;;  %v3655_v31 = vunpack.c.l.b16 %v1646_v22  ;;  %v7586_v22 = vpop.f32.mrf.mxu1 }
 0x3b1   : > { %8411 = vst [vmem:[#allocation50_spill] sm:$0xff] %v7552_v35  ;;  %v3082_v12 = vsel %vm2655_vm3, %v7552_v35, 0.0  ;;  %v3360_v36 = vpack.c.bf16 %v3296_v4, %v3296_v4  ;;  %5725 = vpow2.f32 %v2942_v8 }
 0x3b2   : > { %v3657_v7 = vpack.c.b16 %v3656_v14, %v3655_v31 }
 0x3b3   : > { %2807 = vmax.xlane.f32.xlu0 %v2806_v43  ;;  %v3426_v17 = vunpack.c.l.b16 %v3360_v36 }
 0x3b4   : > { %3083 = vadd.xlane.f32.xlu1 %v3082_v12  ;;  %v7575_v12 = vpop.f32.mrf.mxu2 }
 0x3b5   : > { %v5722_v13 = vpop.eup %5721  ;;  %2810 = vmax.xlane.f32.xlu2 %v2809_v6 }
 0x3b6   : > { %v3297_v57 = vmul.f32 %v5722_v13, %v7346_v28  ;;  %v2718_v43 = vpop.xlane.xlu0 %2717  ;;  %v7577_v55 = vpop.eup %5723  ;;  %v2839_v28 = vsel %vm2655_vm3, %v7569_v26, -inf }
 0x3b7   : > { %v2868_v35 = vsub.f32 %v7339_v40, %v2718_v43  ;;  %v2766_v20 = vpop.xlane.xlu1 %2765  ;;  %v7573_v42 = vpop.xlane.xlu2 %2720  ;;  %8416 = vst [vmem:[#allocation51_spill] sm:$0xff] %v7577_v55  ;;  %v2824_v40 = vsel %vm2655_vm3, %v7575_v12, -inf }
 0x3b8   : > { %v3361_v18 = vpack.c.bf16 %v3297_v57, %v3297_v57  ;;  %v2884_v6 = vsub.f32 %v7362_v49, %v2766_v20 }
 0x3b9   : > { %v2952_v52 = vmul.f32 1.442695, %v2868_v35  ;;  %v3088_v35 = vsel %vm2655_vm3, %v7577_v55, 0.0 }
 0x3ba   : > { %v3427_v4 = vunpack.c.l.b16 %v3361_v18  ;;  %v2984_v57 = vmul.f32 1.442695, %v2884_v6  ;;  %v2773_v18 = vsel %vm2655_vm3, %v7541_v38, -inf }
 0x3bb   : > { %5727 = vpow2.f32 %v2952_v52  ;;  %2840 = vmax.xlane.f32.xlu0 %v2839_v28  ;;  %v7591_v52 = vpop.eup %5725 }
 0x3bc   : > { %v3428_v13 = vpack.c.b16 %v3427_v4, %v3426_v17  ;;  %2825 = vmax.xlane.f32.xlu1 %v2824_v40  ;;  %8417 = vst [vmem:[#allocation52_spill] sm:$0xff] %v7591_v52  ;;  %5729 = vrcp.f32 %v3048_v15  ;;  %v3085_v43 = vsel %vm2655_vm3, %v7591_v52, 0.0  ;;  %v7603_v14 = vpop.f32.mrf.mxu2  ;;  %v7607_v40 = vpop.f32.mrf.mxu1 }
 0x3bd   : > { %3089 = vadd.xlane.f32.xlu2 %v3088_v35  ;;  %5731 = vpow2.f32 %v2984_v57  ;;  %8419 = vst [vmem:[#allocation54_spill] sm:$0xff] %v7603_v14 }
 0x3be   : > { %v7588_v8 = vpop.xlane.xlu0 %2768  ;;  %4966 = vmatmul.msk.bf16.vlgmr.msra.gmra.mxu2 %vm2655_vm3, %v3428_v13  ;;  %v2865_v13 = vsub.f32 %v7284_v53, %v7550_v56 }
 0x3bf   : > { %3669 = vmatpush.bf16.msra.mxu2 %v3657_v7  ;;  %v7593_v36 = vpop.xlane.xlu2 %3059  ;;  %v2715_v17 = vpop.xlane.xlu1 %2714  ;;  %v8421_v7 = vld [vmem:[#allocation23_spill] sm:$0xff] }
 0x3c0   : > { %v5256_v35 = vunpack.i.h.bf16 %v8421_v7  ;;  %v5255_v57 = vunpack.i.l.bf16 %v8421_v7  ;;  %v2946_v53 = vmul.f32 1.442695, %v2865_v13 }
 0x3c1   : > { %v7595_v49 = vpop.eup %5727 }
 0x3c2   : > { %8418 = vst [vmem:[#allocation53_spill] sm:$0xff] %v7595_v49  ;;  %v3100_v20 = vsel %vm2655_vm3, %v7595_v49, 0.0  ;;  %v5730_v15 = vpop.eup %5729  ;;  %v7620_v49 = vpop.f32.mrf.mxu3  ;;  %v1649_v7 = vpack.c.bf16 %v5256_v35, %v5256_v35  ;;  %v1648_v52 = vpack.c.bf16 %v5255_v57, %v5255_v57  ;;  %v2797_v35 = vsel %vm2655_vm3, %v7586_v22, -inf }
 0x3c3   : > { %3086 = vadd.xlane.f32.xlu0 %v3085_v43  ;;  %v7611_v6 = vpop.eup %5731  ;;  %v2827_v43 = vsel %vm2655_vm3, %v7603_v14, -inf }
 0x3c4   : > { %2774 = vmax.xlane.f32.xlu1 %v2773_v18  ;;  %8420 = vst [vmem:[#allocation55_spill] sm:$0xff] %v7611_v6  ;;  %v2794_v18 = vsel %vm2655_vm3, %v7565_v37, -inf  ;;  %v3148_v56 = vsel %vm2655_vm3, %v7611_v6, 0.0  ;;  %v3684_v13 = vunpack.c.l.b16 %v1649_v7  ;;  %v7630_v6 = vpop.f32.mrf.mxu1 }
 0x3c5   : > { %3101 = vadd.xlane.f32.xlu2 %v3100_v20  ;;  %v3298_v20 = vmul.f32 %v5730_v15, %v7348_v60  ;;  %v2869_v60 = vsub.f32 %v7360_v34, %v7573_v42  ;;  %v2830_v42 = vsel %vm2655_vm3, %v7620_v49, -inf }
 0x3c6   : > { %v2727_v31 = vpop.xlane.xlu0 %2726 }
 0x3c7   : > { %v7605_v4 = vpop.xlane.xlu2 %2732  ;;  %v3051_v28 = vpop.xlane.xlu1 %3050  ;;  %v3362_v38 = vpack.c.bf16 %v3298_v20, %v3298_v20  ;;  %v2954_v20 = vmul.f32 1.442695, %v2869_v60  ;;  %v2871_v34 = vsub.f32 %v7393_v0, %v2727_v31 }
 0x3c8   : > { %5733 = vrcp.f32 %v3051_v28  ;;  %v2867_v28 = vsub.f32 %v7379_v9, %v2715_v17 }
 0x3c9   : > { %5735 = vpow2.f32 %v2946_v53  ;;  %v3454_v57 = vunpack.c.l.b16 %v3362_v38  ;;  %v8422_v53 = vld [vmem:[#allocation22_spill] sm:$0xff] }
 0x3ca   : > { %v2950_v9 = vmul.f32 1.442695, %v2867_v28  ;;  %v5301_v7 = vunpack.i.h.bf16 %v8422_v53 }
 0x3cb   : > { %2828 = vmax.xlane.f32.xlu0 %v2827_v43 }
 0x3cc   : > { %2795 = vmax.xlane.f32.xlu1 %v2794_v18  ;;  %v3683_v18 = vunpack.c.l.b16 %v1648_v52 }
 0x3cd   : > { %3149 = vadd.xlane.f32.xlu2 %v3148_v56 }
 0x3ce   : > { %v5734_v55 = vpop.eup %5733  ;;  %v3057_v14 = vpop.xlane.xlu0 %3056  ;;  %v3685_v52 = vpack.c.b16 %v3684_v13, %v3683_v18  ;;  %v5300_v13 = vunpack.i.l.bf16 %v8422_v53  ;;  %v2885_v18 = vsub.f32 %v7377_v59, %v7588_v8 }
 0x3cf   : > { %v3299_v15 = vmul.f32 %v5734_v55, %v7395_v27  ;;  %v3069_v43 = vpop.xlane.xlu2 %3068  ;;  %v7628_v37 = vpop.xlane.xlu1 %2723  ;;  %5737 = vrcp.f32 %v3057_v14  ;;  %v2821_v55 = vsel %vm2655_vm3, %v7630_v6, -inf }
 0x3d0   : > { %5739 = vpow2.f32 %v2950_v9  ;;  %v7639_v14 = vpop.f32.mrf.mxu3  ;;  %v7643_v38 = vpop.eup %5735  ;;  %v2866_v9 = vsub.f32 %v7301_v10, %v7535_v47 }
 0x3d1   : > { %v3363_v17 = vpack.c.bf16 %v3299_v15, %v3299_v15  ;;  %5741 = vpow2.f32 %v2954_v20  ;;  %v2958_v15 = vmul.f32 1.442695, %v2871_v34  ;;  %v3091_v10 = vsel %vm2655_vm3, %v7643_v38, 0.0 }
 0x3d3   : > { %v3455_v56 = vunpack.c.l.b16 %v3363_v17  ;;  %2798 = vmax.xlane.f32.xlu0 %v2797_v35  ;;  %v2833_v35 = vsel %vm2655_vm3, %v7639_v14, -inf }
 0x3d4   : > { %2831 = vmax.xlane.f32.xlu1 %v2830_v42 }
 0x3d5   : > { %v3456_v27 = vpack.c.b16 %v3455_v56, %v3454_v57  ;;  %2822 = vmax.xlane.f32.xlu2 %v2821_v55  ;;  %v5738_v31 = vpop.eup %5737  ;;  %v1651_v57 = vpack.c.bf16 %v5301_v7, %v5301_v7  ;;  %v2986_v56 = vmul.f32 1.442695, %v2885_v18  ;;  %v8424_v7 = vld [vmem:[#allocation31_spill] sm:$0xff]  ;;  %v2870_v18 = vsub.f32 %v7374_v11, %v7628_v37 }
 0x3d6   : > { %v7641_v28 = vpop.xlane.xlu0 %2729  ;;  %v7651_v17 = vpop.eup %5739  ;;  %v3301_v20 = vmul.f32 %v5738_v31, %v7408_v30  ;;  %v5345_v31 = vunpack.i.l.bf16 %v8424_v7 }
 0x3d7   : > { %4967 = vmatmul.msk.bf16.vlgmr.msrb.gmra.mxu3 %vm2655_vm3, %v3456_v27  ;;  %v3054_v60 = vpop.xlane.xlu1 %3053  ;;  %v7647_v0 = vpop.xlane.xlu2 %2738  ;;  %8423 = vst [vmem:[#allocation23_spill] sm:$0xff] %v7651_v17  ;;  %v3097_v59 = vsel %vm2655_vm3, %v7651_v17, 0.0  ;;  %v3712_v27 = vunpack.c.l.b16 %v1651_v57 }
 0x3d8   : > { %3697 = vmatpush.bf16.msrb.mxu3 %v3685_v52  ;;  %5743 = vrcp.f32 %v3054_v60  ;;  %v7662_v47 = vpop.eup %5741  ;;  %v3365_v30 = vpack.c.bf16 %v3301_v20, %v3301_v20  ;;  %v5346_v60 = vunpack.i.h.bf16 %v8424_v7 }
 0x3d9   : > { %5745 = vrcp.f32 %v3069_v43  ;;  %v2948_v43 = vmul.f32 1.442695, %v2866_v9  ;;  %v3103_v11 = vsel %vm2655_vm3, %v7662_v47, 0.0 }
 0x3da   : > { %5747 = vrcp.f32 %v7593_v36  ;;  %v1650_v36 = vpack.c.bf16 %v5300_v13, %v5300_v13  ;;  %v1653_v37 = vpack.c.bf16 %v5346_v60, %v5346_v60 }
 0x3db   : > { %2834 = vmax.xlane.f32.xlu0 %v2833_v35  ;;  %5749 = vpow2.f32 %v2958_v15  ;;  %v8425_v15 = vld [vmem:[#allocation39_spill] sm:$0xff] }
 0x3dc   : > { %3092 = vadd.xlane.f32.xlu1 %v3091_v10  ;;  %v5391_v9 = vunpack.i.h.bf16 %v8425_v15  ;;  %v5390_v13 = vunpack.i.l.bf16 %v8425_v15  ;;  %v3711_v20 = vunpack.c.l.b16 %v1650_v36 }
 0x3dd   : > { %3098 = vadd.xlane.f32.xlu2 %v3097_v59  ;;  %v2818_v59 = vsel %vm2655_vm3, %v7607_v40, -inf }
 0x3de   : > { %v5744_v8 = vpop.eup %5743  ;;  %v3066_v42 = vpop.xlane.xlu0 %3065  ;;  %v1654_v36 = vpack.c.bf16 %v5390_v13, %v5390_v13  ;;  %v3713_v17 = vpack.c.b16 %v3712_v27, %v3711_v20 }
 0x3df   : > { %v5746_v34 = vpop.eup %5745  ;;  %v3300_v55 = vmul.f32 %v5744_v8, %v7420_v45  ;;  %5751 = vrcp.f32 %v3066_v42  ;;  %v3063_v52 = vpop.xlane.xlu1 %3062  ;;  %v3483_v42 = vunpack.c.l.b16 %v3365_v30 }
 0x3e0   : > { %v5748_v53 = vpop.eup %5747  ;;  %5753 = vrcp.f32 %v3063_v52  ;;  %v7673_v57 = vpop.xlane.xlu2 %2741  ;;  %v3305_v10 = vmul.f32 %v5746_v34, %v7410_v21 }
 0x3e1   : > { %5755 = vpow2.f32 %v2948_v43  ;;  %v3364_v35 = vpack.c.bf16 %v3300_v55, %v3300_v55  ;;  %v7675_v45 = vpop.eup %5749  ;;  %v3302_v8 = vmul.f32 %v5748_v53, %v7381_v48  ;;  %v1652_v43 = vpack.c.bf16 %v5345_v31, %v5345_v31 }
 0x3e2   : > { %5757 = vpow2.f32 %v2986_v56  ;;  %v1655_v55 = vpack.c.bf16 %v5391_v9, %v5391_v9  ;;  %v2956_v56 = vmul.f32 1.442695, %v2870_v18  ;;  %v3109_v21 = vsel %vm2655_vm3, %v7675_v45, 0.0 }
 0x3e3   : > { %v3482_v52 = vunpack.c.l.b16 %v3364_v35  ;;  %2819 = vmax.xlane.f32.xlu0 %v2818_v59  ;;  %v3369_v48 = vpack.c.bf16 %v3305_v10, %v3305_v10  ;;  %v3366_v60 = vpack.c.bf16 %v3302_v8, %v3302_v8  ;;  %v3740_v59 = vunpack.c.l.b16 %v1653_v37 }
 0x3e4   : > { %3104 = vadd.xlane.f32.xlu1 %v3103_v11  ;;  %v3739_v27 = vunpack.c.l.b16 %v1652_v43  ;;  %v3768_v20 = vunpack.c.l.b16 %v1655_v55  ;;  %5759 = vpow2.f32 %v2956_v56  ;;  %v7701_v55 = vpop.f32.mrf.mxu1 }
 0x3e5   : > { %v5752_v7 = vpop.eup %5751  ;;  %v3484_v15 = vpack.c.b16 %v3483_v42, %v3482_v52  ;;  %3110 = vadd.xlane.f32.xlu2 %v3109_v21  ;;  %v3539_v11 = vunpack.c.l.b16 %v3369_v48 }
 0x3e6   : > { %v5754_v34 = vpop.eup %5753  ;;  %v3304_v30 = vmul.f32 %v5752_v7, %v7432_v44  ;;  %v2736_v53 = vpop.xlane.xlu0 %2735  ;;  %v3767_v44 = vunpack.c.l.b16 %v1654_v36  ;;  %v3741_v56 = vpack.c.b16 %v3740_v59, %v3739_v27  ;;  %v2875_v59 = vsub.f32 %v7422_v29, %v7647_v0 }
 0x3e7   : > { %v7686_v35 = vpop.eup %5755  ;;  %v3303_v31 = vmul.f32 %v5754_v34, %v7434_v5  ;;  %v2874_v9 = vsub.f32 %v7406_v41, %v2736_v53  ;;  %4968 = vmatmul.msk.bf16.vlgmr.msrb.gmra.mxu0 %vm2655_vm3, %v3484_v15  ;;  %v7691_v13 = vpop.xlane.xlu1 %2753  ;;  %v2872_v41 = vsub.f32 %v7384_v25, %v7641_v28  ;;  %v3510_v15 = vunpack.c.l.b16 %v3366_v60 }
 0x3e8   : > { %v7693_v18 = vpop.eup %5757  ;;  %v3368_v10 = vpack.c.bf16 %v3304_v30, %v3304_v30  ;;  %3725 = vmatpush.bf16.msrb.mxu0 %v3713_v17  ;;  %v2760_v8 = vpop.xlane.xlu2 %2759  ;;  %v3094_v7 = vsel %vm2655_vm3, %v7686_v35, 0.0  ;;  %v3769_v43 = vpack.c.b16 %v3768_v20, %v3767_v44  ;;  %v2873_v60 = vsub.f32 %v7397_v51, %v7605_v4 }
 0x3e9   : > { %v3367_v42 = vpack.c.bf16 %v3303_v31, %v3303_v31  ;;  %v2964_v52 = vmul.f32 1.442695, %v2874_v9  ;;  %v3151_v17 = vsel %vm2655_vm3, %v7693_v18, 0.0  ;;  %v2960_v34 = vmul.f32 1.442695, %v2872_v41 }
 0x3ea   : > { %v3538_v5 = vunpack.c.l.b16 %v3368_v10  ;;  %v7704_v28 = vpop.eup %5759  ;;  %v2842_v20 = vsel %vm2655_vm3, %v7701_v55, -inf  ;;  %v2962_v51 = vmul.f32 1.442695, %v2873_v60  ;;  %v2966_v4 = vmul.f32 1.442695, %v2875_v59 }
 0x3eb   : > { %v3511_v21 = vunpack.c.l.b16 %v3367_v42  ;;  %5761 = vpow2.f32 %v2964_v52  ;;  %3095 = vadd.xlane.f32.xlu0 %v3094_v7  ;;  %v2880_v52 = vsub.f32 %v7430_v39, %v7691_v13  ;;  %v2882_v41 = vsub.f32 %v7449_v16, %v2760_v8 }
 0x3ec   : > { %v3540_v37 = vpack.c.b16 %v3539_v11, %v3538_v5  ;;  %3152 = vadd.xlane.f32.xlu1 %v3151_v17  ;;  %5763 = vpow2.f32 %v2960_v34  ;;  %v7720_v44 = vpop.f32.mrf.mxu1 }
 0x3ed   : > { %v3512_v36 = vpack.c.b16 %v3511_v21, %v3510_v15  ;;  %v2876_v15 = vsub.f32 %v7441_v32, %v7673_v57  ;;  %v2845_v21 = vsel %vm2655_vm3, %v7720_v44, -inf  ;;  %v2976_v13 = vmul.f32 1.442695, %v2880_v52 }
 0x3ee   : > { %v2757_v25 = vpop.xlane.xlu0 %2756  ;;  %4970 = vmatmul.msk.bf16.vlgmr.msrb.gmra.mxu2 %vm2655_vm3, %v3540_v37  ;;  %v2980_v16 = vmul.f32 1.442695, %v2882_v41 }
 0x3ef   : > { %v2881_v48 = vsub.f32 %v7445_v58, %v2757_v25  ;;  %3781 = vmatpush.bf16.msrb.mxu2 %v3769_v43  ;;  %4969 = vmatmul.msk.bf16.vlgmr.msrb.gmra.mxu1 %vm2655_vm3, %v3512_v36  ;;  %v3072_v30 = vpop.xlane.xlu1 %3071  ;;  %v3106_v58 = vsel %vm2655_vm3, %v7704_v28, 0.0  ;;  %v2968_v8 = vmul.f32 1.442695, %v2876_v15 }
 0x3f0   : > { %3753 = vmatpush.bf16.msrb.mxu1 %v3741_v56  ;;  %v2793_v9 = vpop.xlane.xlu2 %2792 }
 0x3f1   : > { %v7708_v53 = vpop.eup %5761  ;;  %v2978_v31 = vmul.f32 1.442695, %v2881_v48  ;;  %v2893_v25 = vsub.f32 %v7461_v23, %v2793_v9  ;;  %v8426_v9 = vld [vmem:[#allocation40_spill] sm:$0xff] }
 0x3f2   : > { %v3118_v27 = vsel %vm2655_vm3, %v7708_v53, 0.0  ;;  %v7725_v42 = vpop.eup %5763 }
 0x3f3   : > { %5765 = vpow2.f32 %v2978_v31  ;;  %3119 = vadd.xlane.f32.xlu2 %v3118_v27  ;;  %3107 = vadd.xlane.f32.xlu0 %v3106_v58  ;;  %v3112_v39 = vsel %vm2655_vm3, %v7725_v42, 0.0  ;;  %v3002_v27 = vmul.f32 1.442695, %v2893_v25 }
 0x3f4   : > { %2843 = vmax.xlane.f32.xlu1 %v2842_v20  ;;  %5767 = vpow2.f32 %v2962_v51  ;;  %v5436_v20 = vunpack.i.h.bf16 %v8426_v9 }
 0x3f5   : > { %5769 = vpow2.f32 %v2966_v4 }
 0x3f6   : > { %v2790_v10 = vpop.xlane.xlu0 %2789 }
 0x3f7   : > { %v2892_v29 = vsub.f32 %v7447_v62, %v2790_v10  ;;  %v7723_v0 = vpop.xlane.xlu1 %2744  ;;  %v5435_v10 = vunpack.i.l.bf16 %v8426_v9 }
 0x3f8   : > { %v2781_v7 = vpop.xlane.xlu2 %2780  ;;  %v2877_v52 = vsub.f32 %v7469_v24, %v7723_v0 }
 0x3f9   : > { %v7729_v11 = vpop.eup %5765  ;;  %v3000_v5 = vmul.f32 1.442695, %v2892_v29  ;;  %v2889_v43 = vsub.f32 %v7472_v54, %v2781_v7 }
 0x3fa   : > { %v3139_v62 = vsel %vm2655_vm3, %v7729_v11, 0.0  ;;  %v7740_v37 = vpop.eup %5767  ;;  %v2970_v0 = vmul.f32 1.442695, %v2877_v52 }
 0x3fb   : > { %5771 = vpow2.f32 %v3000_v5  ;;  %3140 = vadd.xlane.f32.xlu2 %v3139_v62  ;;  %2846 = vmax.xlane.f32.xlu0 %v2845_v21  ;;  %v7742_v57 = vpop.eup %5769  ;;  %v2994_v60 = vmul.f32 1.442695, %v2889_v43  ;;  %v1657_v62 = vpack.c.bf16 %v5436_v20, %v5436_v20  ;;  %v1656_v21 = vpack.c.bf16 %v5435_v10, %v5435_v10 }
 0x3fc   : > { %3113 = vadd.xlane.f32.xlu1 %v3112_v39  ;;  %5773 = vrcp.f32 %v3072_v30  ;;  %v3115_v30 = vsel %vm2655_vm3, %v7740_v37, 0.0  ;;  %v3121_v54 = vsel %vm2655_vm3, %v7742_v57, 0.0 }
 0x3fd   : > { %5775 = vpow2.f32 %v2976_v13  ;;  %v3796_v43 = vunpack.c.l.b16 %v1657_v62  ;;  %v8427_v62 = vld [vmem:[#allocation25_spill] sm:$0xff] }
 0x3fe   : > { %v2778_v17 = vpop.xlane.xlu0 %2777  ;;  %5777 = vpow2.f32 %v2980_v16 }
 0x3ff   : > { %v2763_v32 = vpop.xlane.xlu1 %2762  ;;  %v2888_v56 = vsub.f32 %v7459_v3, %v2778_v17  ;;  %5779 = vpow2.f32 %v2968_v8 }
 0x400   : > { %v2814_v34 = vpop.xlane.xlu2 %2813  ;;  %v2883_v5 = vsub.f32 %v7480_v1, %v2763_v32 }
 0x401   : > { %v7745_v36 = vpop.eup %5771  ;;  %v2992_v59 = vmul.f32 1.442695, %v2888_v56  ;;  %v2900_v13 = vsub.f32 %v7482_v2, %v2814_v34 }
 0x402   : > { %v3172_v48 = vsel %vm2655_vm3, %v7745_v36, 0.0  ;;  %v5774_v31 = vpop.eup %5773  ;;  %v2982_v16 = vmul.f32 1.442695, %v2883_v5 }
 0x403   : > { %3173 = vadd.xlane.f32.xlu2 %v3172_v48  ;;  %3116 = vadd.xlane.f32.xlu0 %v3115_v30  ;;  %v7755_v3 = vpop.eup %5775  ;;  %v3306_v29 = vmul.f32 %v5774_v31, %v7457_v33  ;;  %v3795_v30 = vunpack.c.l.b16 %v1656_v21  ;;  %v3016_v2 = vmul.f32 1.442695, %v2900_v13  ;;  %v8428_v13 = vld [vmem:[#allocation45_spill] sm:$0xff] }
 0x404   : > { %3122 = vadd.xlane.f32.xlu1 %v3121_v54  ;;  %v7757_v23 = vpop.eup %5777  ;;  %v3136_v15 = vsel %vm2655_vm3, %v7755_v3, 0.0 }
 0x405   : > { %v7760_v4 = vpop.eup %5779  ;;  %v3142_v7 = vsel %vm2655_vm3, %v7757_v23, 0.0  ;;  %v3370_v39 = vpack.c.bf16 %v3306_v29, %v3306_v29 }
 0x406   : > { %v3075_v58 = vpop.xlane.xlu0 %3074  ;;  %v3124_v33 = vsel %vm2655_vm3, %v7760_v4, 0.0 }
 0x407   : > { %5781 = vrcp.f32 %v3075_v58  ;;  %v2784_v51 = vpop.xlane.xlu1 %2783  ;;  %v3566_v54 = vunpack.c.l.b16 %v3370_v39 }
 0x408   : > { %5783 = vpow2.f32 %v2994_v60  ;;  %v2802_v41 = vpop.xlane.xlu2 %2801  ;;  %v2890_v31 = vsub.f32 %v7494_v50, %v2784_v51 }
 0x409   : > { %5785 = vpow2.f32 %v2992_v59  ;;  %v2896_v34 = vsub.f32 %v7497_v46, %v2802_v41  ;;  %v3797_v46 = vpack.c.b16 %v3796_v43, %v3795_v30 }
 0x40a   : > { %5787 = vpow2.f32 %v3002_v27  ;;  %v2996_v20 = vmul.f32 1.442695, %v2890_v31  ;;  %v8430_v31 = vld [vmem:[#allocation24_spill] sm:$0xff] }
 0x40b   : > { %3143 = vadd.xlane.f32.xlu2 %v3142_v7  ;;  %3137 = vadd.xlane.f32.xlu0 %v3136_v15  ;;  %5789 = vpow2.f32 %v2970_v0  ;;  %v3008_v51 = vmul.f32 1.442695, %v2896_v34 }
 0x40c   : > { %3125 = vadd.xlane.f32.xlu1 %v3124_v33  ;;  %5791 = vpow2.f32 %v2982_v16  ;;  %v5481_v16 = vunpack.i.h.bf16 %v8428_v13 }
 0x40d   : > { %v5782_v24 = vpop.eup %5781 }
 0x40e   : > { %v7774_v1 = vpop.eup %5783  ;;  %v3307_v8 = vmul.f32 %v5782_v24, %v7492_v19  ;;  %v2748_v17 = vpop.xlane.xlu0 %2747 }
 0x40f   : > { %v7777_v32 = vpop.eup %5785  ;;  %v2878_v56 = vsub.f32 %v7488_v63, %v2748_v17  ;;  %v2817_v25 = vpop.xlane.xlu1 %2816  ;;  %v3163_v58 = vsel %vm2655_vm3, %v7774_v1, 0.0 }
 0x410   : > { %v7780_v48 = vpop.eup %5787  ;;  %v3371_v60 = vpack.c.bf16 %v3307_v8, %v3307_v8  ;;  %v2751_v19 = vpop.xlane.xlu2 %2750  ;;  %v3160_v63 = vsel %vm2655_vm3, %v7777_v32, 0.0  ;;  %v2901_v7 = vsub.f32 %v7510_v61, %v2817_v25  ;;  %v5480_v61 = vunpack.i.l.bf16 %v8428_v13  ;;  %v8429_v25 = vld [vmem:[#allocation36_spill] sm:$0xff] }
 0x411   : > { %v2972_v59 = vmul.f32 1.442695, %v2878_v56  ;;  %v3175_v50 = vsel %vm2655_vm3, %v7780_v48, 0.0  ;;  %v7791_v29 = vpop.eup %5789  ;;  %v2879_v33 = vsub.f32 %v8427_v62, %v2751_v19  ;;  %v1659_v19 = vpack.c.bf16 %v5481_v16, %v5481_v16 }
 0x412   : > { %v3567_v27 = vunpack.c.l.b16 %v3371_v60  ;;  %v7793_v41 = vpop.eup %5791  ;;  %v3127_v39 = vsel %vm2655_vm3, %v7791_v29, 0.0  ;;  %v3018_v17 = vmul.f32 1.442695, %v2901_v7  ;;  %v8433_v7 = vld [vmem:[#allocation34_spill] sm:$0xff] }
 0x413   : > { %5793 = vpow2.f32 %v2972_v59  ;;  %3164 = vadd.xlane.f32.xlu2 %v3163_v58  ;;  %3161 = vadd.xlane.f32.xlu0 %v3160_v63  ;;  %v3145_v24 = vsel %vm2655_vm3, %v7793_v41, 0.0  ;;  %v2974_v56 = vmul.f32 1.442695, %v2879_v33  ;;  %v8431_v63 = vld [vmem:[#allocation32_spill] sm:$0xff] }
 0x414   : > { %v3568_v9 = vpack.c.b16 %v3567_v27, %v3566_v54  ;;  %3176 = vadd.xlane.f32.xlu1 %v3175_v50  ;;  %5795 = vpow2.f32 %v3016_v2  ;;  %v1658_v27 = vpack.c.bf16 %v5480_v61, %v5480_v61 }
 0x416   : > { %4971 = vmatmul.msk.bf16.vlgmr.msra.gmra.mxu3 %vm2655_vm3, %v3568_v9  ;;  %v3078_v10 = vpop.xlane.xlu0 %3077  ;;  %v3823_v13 = vunpack.c.l.b16 %v1658_v27 }
 0x417   : > { %3809 = vmatpush.bf16.msra.mxu3 %v3797_v46  ;;  %5797 = vrcp.f32 %v3078_v10  ;;  %v2805_v52 = vpop.xlane.xlu1 %2804 }
 0x418   : > { %5799 = vpow2.f32 %v2996_v20  ;;  %v3081_v15 = vpop.xlane.xlu2 %3080 }
 0x419   : > { %v7795_v5 = vpop.eup %5793  ;;  %5801 = vpow2.f32 %v3008_v51  ;;  %v8432_v51 = vld [vmem:[#allocation27_spill] sm:$0xff] }
 0x41a   : > { %5803 = vrcp.f32 %v3081_v15  ;;  %v3130_v21 = vsel %vm2655_vm3, %v7795_v5, 0.0  ;;  %v7805_v0 = vpop.eup %5795  ;;  %v2897_v10 = vsub.f32 %v8432_v51, %v2805_v52 }
 0x41b   : > { %3131 = vadd.xlane.f32.xlu2 %v3130_v21  ;;  %3128 = vadd.xlane.f32.xlu0 %v3127_v39  ;;  %5805 = vpow2.f32 %v3018_v17  ;;  %v3196_v46 = vsel %vm2655_vm3, %v7805_v0, 0.0 }
 0x41c   : > { %3146 = vadd.xlane.f32.xlu1 %v3145_v24  ;;  %5807 = vpow2.f32 %v2974_v56  ;;  %v3824_v24 = vunpack.c.l.b16 %v1659_v19 }
 0x41d   : > { %v5798_v8 = vpop.eup %5797 }
 0x41e   : > { %v7809_v43 = vpop.eup %5799  ;;  %v3308_v30 = vmul.f32 %v5798_v8, %v8429_v25  ;;  %v2787_v54 = vpop.xlane.xlu0 %2786  ;;  %v3010_v8 = vmul.f32 1.442695, %v2897_v10  ;;  %v8434_v25 = vld [vmem:[#allocation38_spill] sm:$0xff] }
 0x41f   : > { %v7812_v60 = vpop.eup %5801  ;;  %v2891_v2 = vsub.f32 %v8430_v31, %v2787_v54  ;;  %v2838_v34 = vpop.xlane.xlu1 %2837  ;;  %v3166_v39 = vsel %vm2655_vm3, %v7809_v43, 0.0 }
 0x420   : > { %v5804_v59 = vpop.eup %5803  ;;  %v3372_v58 = vpack.c.bf16 %v3308_v30, %v3308_v30  ;;  %v2772_v20 = vpop.xlane.xlu2 %2771  ;;  %v3184_v62 = vsel %vm2655_vm3, %v7812_v60, 0.0 }
 0x421   : > { %v3309_v50 = vmul.f32 %v5804_v59, %v8431_v63  ;;  %v2998_v9 = vmul.f32 1.442695, %v2891_v2  ;;  %v2886_v15 = vsub.f32 %v8433_v7, %v2772_v20  ;;  %v7824_v17 = vpop.eup %5805  ;;  %v3825_v2 = vpack.c.b16 %v3824_v24, %v3823_v13  ;;  %v8435_v59 = vld [vmem:[#allocation42_spill] sm:$0xff] }
 0x422   : > { %v3594_v33 = vunpack.c.l.b16 %v3372_v58  ;;  %v7827_v31 = vpop.eup %5807  ;;  %v2908_v58 = vsub.f32 %v8435_v59, %v2838_v34 }
 0x423   : > { %v3373_v21 = vpack.c.bf16 %v3309_v50, %v3309_v50  ;;  %5809 = vpow2.f32 %v2998_v9  ;;  %3185 = vadd.xlane.f32.xlu2 %v3184_v62  ;;  %3197 = vadd.xlane.f32.xlu0 %v3196_v46  ;;  %v2988_v61 = vmul.f32 1.442695, %v2886_v15  ;;  %v3199_v50 = vsel %vm2655_vm3, %v7824_v17, 0.0 }
 0x424   : > { %3167 = vadd.xlane.f32.xlu1 %v3166_v39  ;;  %v3133_v34 = vsel %vm2655_vm3, %v7827_v31, 0.0  ;;  %v3032_v20 = vmul.f32 1.442695, %v2908_v58  ;;  %v8438_v58 = vld [vmem:[#allocation47_spill] sm:$0xff] }
 0x425   : > { %v3595_v16 = vunpack.c.l.b16 %v3373_v21  ;;  %5811 = vpow2.f32 %v2988_v61  ;;  %v8436_v21 = vld [vmem:[#allocation17_spill] sm:$0xff] }
 0x426   : > { %v2808_v52 = vpop.xlane.xlu0 %2807  ;;  %5813 = vpow2.f32 %v3010_v8 }
 0x427   : > { %v3596_v56 = vpack.c.b16 %v3595_v16, %v3594_v33  ;;  %v2898_v30 = vsub.f32 %v8434_v25, %v2808_v52  ;;  %v3084_v54 = vpop.xlane.xlu1 %3083 }
 0x428   : > { %v2811_v27 = vpop.xlane.xlu2 %2810 }
 0x429   : > { %v7830_v63 = vpop.eup %5809  ;;  %v3012_v19 = vmul.f32 1.442695, %v2898_v30  ;;  %4972 = vmatmul.msk.bf16.vlgmr.msra.gmra.mxu0 %vm2655_vm3, %v3596_v56  ;;  %v2899_v39 = vsub.f32 %v8436_v21, %v2811_v27 }
 0x42a   : > { %3837 = vmatpush.bf16.msra.mxu0 %v3825_v2  ;;  %v3169_v9 = vsel %vm2655_vm3, %v7830_v63, 0.0  ;;  %v8437_v2 = vld [vmem:[#allocation49_spill] sm:$0xff] }
 0x42b   : > { %5815 = vpow2.f32 %v3012_v19  ;;  %3200 = vadd.xlane.f32.xlu2 %v3199_v50  ;;  %3170 = vadd.xlane.f32.xlu0 %v3169_v9  ;;  %v7839_v51 = vpop.eup %5811  ;;  %v3014_v52 = vmul.f32 1.442695, %v2899_v39  ;;  %v5521_v19 = vunpack.i.h.bf16 %v8438_v58  ;;  %v8439_v9 = vld [vmem:[#allocation50_spill] sm:$0xff] }
 0x42c   : > { %3134 = vadd.xlane.f32.xlu1 %v3133_v34  ;;  %v7841_v7 = vpop.eup %5813  ;;  %5817 = vpow2.f32 %v3032_v20  ;;  %v3154_v16 = vsel %vm2655_vm3, %v7839_v51, 0.0 }
 0x42d   : > { %5819 = vrcp.f32 %v3084_v54  ;;  %v1661_v21 = vpack.c.bf16 %v5521_v19, %v5521_v19 }
 0x42e   : > { %v2841_v46 = vpop.xlane.xlu0 %2840 }
 0x42f   : > { %v2826_v10 = vpop.xlane.xlu1 %2825  ;;  %v2909_v61 = vsub.f32 %v7569_v26, %v2841_v46  ;;  %v5520_v26 = vunpack.i.l.bf16 %v8438_v58  ;;  %v3852_v58 = vunpack.c.l.b16 %v1661_v21 }
 0x430   : > { %v2904_v15 = vsub.f32 %v7575_v12, %v2826_v10  ;;  %v7846_v33 = vpop.xlane.xlu2 %3089  ;;  %v3187_v12 = vsel %vm2655_vm3, %v7841_v7, 0.0 }
 0x431   : > { %v7844_v62 = vpop.eup %5815  ;;  %v3034_v30 = vmul.f32 1.442695, %v2909_v61  ;;  %v1660_v39 = vpack.c.bf16 %v5520_v26, %v5520_v26 }
 0x432   : > { %v3024_v24 = vmul.f32 1.442695, %v2904_v15  ;;  %v3190_v13 = vsel %vm2655_vm3, %v7844_v62, 0.0  ;;  %v7856_v8 = vpop.eup %5817 }
 0x433   : > { %3191 = vadd.xlane.f32.xlu2 %v3190_v13  ;;  %3155 = vadd.xlane.f32.xlu0 %v3154_v16  ;;  %v5820_v25 = vpop.eup %5819  ;;  %v3220_v46 = vsel %vm2655_vm3, %v7856_v8, 0.0  ;;  %v8440_v13 = vld [vmem:[#allocation52_spill] sm:$0xff] }
 0x434   : > { %5821 = vpow2.f32 %v3024_v24  ;;  %3188 = vadd.xlane.f32.xlu1 %v3187_v12  ;;  %v3310_v34 = vmul.f32 %v5820_v25, %v8439_v9  ;;  %v8441_v12 = vld [vmem:[#allocation54_spill] sm:$0xff]  ;;  %v3851_v9 = vunpack.c.l.b16 %v1660_v39 }
 0x436   : > { %v3087_v56 = vpop.xlane.xlu0 %3086  ;;  %v3374_v24 = vpack.c.bf16 %v3310_v34, %v3310_v34  ;;  %v3853_v39 = vpack.c.b16 %v3852_v58, %v3851_v9 }
 0x437   : > { %5823 = vrcp.f32 %v3087_v56  ;;  %v2775_v54 = vpop.xlane.xlu1 %2774 }
 0x438   : > { %v2887_v59 = vsub.f32 %v8437_v2, %v2775_v54  ;;  %v7861_v27 = vpop.xlane.xlu2 %3101  ;;  %5825 = vpow2.f32 %v3014_v52  ;;  %v8442_v54 = vld [vmem:[#allocation44_spill] sm:$0xff]  ;;  %v3622_v26 = vunpack.c.l.b16 %v3374_v24 }
 0x439   : > { %5827 = vpow2.f32 %v3034_v30 }
 0x43a   : > { %v7863_v50 = vpop.eup %5821  ;;  %v2990_v20 = vmul.f32 1.442695, %v2887_v59 }
 0x43b   : > { %v3208_v10 = vsel %vm2655_vm3, %v7863_v50, 0.0 }
 0x43c   : > { %5829 = vpow2.f32 %v2990_v20  ;;  %3221 = vadd.xlane.f32.xlu1 %v3220_v46  ;;  %3209 = vadd.xlane.f32.xlu0 %v3208_v10 }
 0x43d   : > { %v5824_v15 = vpop.eup %5823 }
 0x43e   : > { %v3311_v16 = vmul.f32 %v5824_v15, %v8440_v13  ;;  %v2829_v61 = vpop.xlane.xlu0 %2828  ;;  %v7872_v25 = vpop.eup %5825 }
 0x43f   : > { %v2905_v52 = vsub.f32 %v8441_v12, %v2829_v61  ;;  %v2796_v56 = vpop.xlane.xlu1 %2795  ;;  %v7875_v59 = vpop.eup %5827  ;;  %v3193_v15 = vsel %vm2655_vm3, %v7872_v25, 0.0 }
 0x440   : > { %v3375_v30 = vpack.c.bf16 %v3311_v16, %v3311_v16  ;;  %v2894_v2 = vsub.f32 %v8442_v54, %v2796_v56  ;;  %v7877_v46 = vpop.xlane.xlu2 %3149  ;;  %v3223_v21 = vsel %vm2655_vm3, %v7875_v59, 0.0 }
 0x441   : > { %v3026_v20 = vmul.f32 1.442695, %v2905_v52 }
 0x442   : > { %v7879_v19 = vpop.eup %5829  ;;  %v3623_v34 = vunpack.c.l.b16 %v3375_v30  ;;  %v3004_v10 = vmul.f32 1.442695, %v2894_v2 }
 0x443   : > { %5831 = vpow2.f32 %v3026_v20  ;;  %v3157_v13 = vsel %vm2655_vm3, %v7879_v19, 0.0 }
 0x444   : > { %v3624_v16 = vpack.c.b16 %v3623_v34, %v3622_v26  ;;  %5833 = vpow2.f32 %v3004_v10  ;;  %3194 = vadd.xlane.f32.xlu1 %v3193_v15  ;;  %3158 = vadd.xlane.f32.xlu2 %v3157_v13 }
 0x445   : > { %3224 = vadd.xlane.f32.xlu0 %v3223_v21  ;;  %5835 = vrcp.f32 %v7846_v33 }
 0x446   : > { %4973 = vmatmul.msk.bf16.vlgmr.msra.gmra.mxu1 %vm2655_vm3, %v3624_v16  ;;  %v2799_v24 = vpop.xlane.xlu0 %2798  ;;  %v8444_v16 = vld [vmem:[#allocation16_spill] sm:$0xff] }
 0x447   : > { %3865 = vmatpush.bf16.msra.mxu1 %v3853_v39  ;;  %v2895_v61 = vsub.f32 %v7586_v22, %v2799_v24  ;;  %v2832_v12 = vpop.xlane.xlu1 %2831  ;;  %v5216_v21 = vunpack.i.h.bf16 %v8444_v16  ;;  %v5215_v39 = vunpack.i.l.bf16 %v8444_v16 }
 0x448   : > { %v2906_v52 = vsub.f32 %v7620_v49, %v2832_v12  ;;  %v2823_v2 = vpop.xlane.xlu2 %2822 }
 0x449   : > { %v7890_v56 = vpop.eup %5831  ;;  %v3006_v30 = vmul.f32 1.442695, %v2895_v61  ;;  %v2903_v49 = vsub.f32 %v7630_v6, %v2823_v2  ;;  %v8445_v6 = vld [vmem:[#allocation51_spill] sm:$0xff]  ;;  %v1663_v2 = vpack.c.bf16 %v5216_v21, %v5216_v21 }
 0x44a   : > { %v7892_v54 = vpop.eup %5833  ;;  %v3028_v20 = vmul.f32 1.442695, %v2906_v52  ;;  %v3211_v58 = vsel %vm2655_vm3, %v7890_v56, 0.0 }
 0x44b   : > { %5837 = vpow2.f32 %v3006_v30  ;;  %v3178_v9 = vsel %vm2655_vm3, %v7892_v54, 0.0  ;;  %v5836_v10 = vpop.eup %5835 }
 0x44c   : > { %5839 = vpow2.f32 %v3028_v20  ;;  %3212 = vadd.xlane.f32.xlu2 %v3211_v58  ;;  %v3312_v61 = vmul.f32 %v5836_v10, %v8445_v6  ;;  %v1662_v20 = vpack.c.bf16 %v5215_v39, %v5215_v39  ;;  %v3880_v39 = vunpack.c.l.b16 %v1663_v2 }
 0x44d   : > { %3179 = vadd.xlane.f32.xlu0 %v3178_v9 }
 0x44e   : > { %v2835_v22 = vpop.xlane.xlu0 %2834  ;;  %v3376_v9 = vpack.c.bf16 %v3312_v61, %v3312_v61  ;;  %v3879_v6 = vunpack.c.l.b16 %v1662_v20  ;;  %v8448_v61 = vld [vmem:[#allocation53_spill] sm:$0xff] }
 0x44f   : > { %v2907_v26 = vsub.f32 %v7639_v14, %v2835_v22  ;;  %v3093_v34 = vpop.xlane.xlu1 %3092  ;;  %v3022_v14 = vmul.f32 1.442695, %v2903_v49  ;;  %v8446_v49 = vld [vmem:[#allocation28_spill] sm:$0xff] }
 0x450   : > { %5841 = vrcp.f32 %v3093_v34  ;;  %v3099_v52 = vpop.xlane.xlu2 %3098  ;;  %v5306_v10 = vunpack.i.h.bf16 %v8446_v49  ;;  %v5305_v16 = vunpack.i.l.bf16 %v8446_v49 }
 0x451   : > { %v7901_v33 = vpop.eup %5837  ;;  %v3030_v15 = vmul.f32 1.442695, %v2907_v26  ;;  %5843 = vrcp.f32 %v7861_v27 }
 0x452   : > { %v7903_v13 = vpop.eup %5839  ;;  %v3181_v24 = vsel %vm2655_vm3, %v7901_v33, 0.0 }
 0x453   : > { %8443 = vst [vmem:[#allocation22_spill] sm:$0xff] %v7903_v13  ;;  %5845 = vpow2.f32 %v3030_v15  ;;  %v3214_v12 = vsel %vm2655_vm3, %v7903_v13, 0.0 }
 0x454   : > { %3215 = vadd.xlane.f32.xlu1 %v3214_v12  ;;  %3182 = vadd.xlane.f32.xlu2 %v3181_v24  ;;  %5847 = vpow2.f32 %v3022_v14 }
 0x456   : > { %v5842_v30 = vpop.eup %5841  ;;  %v2820_v58 = vpop.xlane.xlu0 %2819 }
 0x457   : > { %v3313_v27 = vmul.f32 %v5842_v30, %v7643_v38  ;;  %v2902_v22 = vsub.f32 %v7607_v40, %v2820_v58  ;;  %v3105_v26 = vpop.xlane.xlu1 %3104  ;;  %v5844_v34 = vpop.eup %5843  ;;  %v3650_v40 = vunpack.c.l.b16 %v3376_v9  ;;  %v1667_v58 = vpack.c.bf16 %v5306_v10, %v5306_v10 }
 0x458   : > { %5849 = vrcp.f32 %v3105_v26  ;;  %v3316_v14 = vmul.f32 %v5844_v34, %v8448_v61  ;;  %v1666_v26 = vpack.c.bf16 %v5305_v16, %v5305_v16  ;;  %v3111_v2 = vpop.xlane.xlu2 %3110 }
 0x459   : > { %v7916_v15 = vpop.eup %5845  ;;  %5851 = vrcp.f32 %v3099_v52  ;;  %v3377_v24 = vpack.c.bf16 %v3313_v27, %v3313_v27  ;;  %v3020_v21 = vmul.f32 1.442695, %v2902_v22  ;;  %v3881_v22 = vpack.c.b16 %v3880_v39, %v3879_v6 }
 0x45a   : > { %8447 = vst [vmem:[#allocation31_spill] sm:$0xff] %v7916_v15  ;;  %5853 = vrcp.f32 %v7877_v46  ;;  %v3217_v38 = vsel %vm2655_vm3, %v7916_v15, 0.0  ;;  %v7923_v30 = vpop.eup %5847  ;;  %v3380_v46 = vpack.c.bf16 %v3316_v14, %v3316_v14  ;;  %v3936_v39 = vunpack.c.l.b16 %v1667_v58 }
 0x45b   : > { %v3651_v12 = vunpack.c.l.b16 %v3377_v24  ;;  %5855 = vpow2.f32 %v3020_v21  ;;  %3218 = vadd.xlane.f32.xlu0 %v3217_v38  ;;  %8449 = vst [vmem:[#allocation39_spill] sm:$0xff] %v7923_v30  ;;  %v8450_v24 = vld [vmem:[#allocation21_spill] sm:$0xff]  ;;  %v3935_v6 = vunpack.c.l.b16 %v1666_v26 }
 0x45c   : > { %v5261_v21 = vunpack.i.h.bf16 %v8450_v24  ;;  %v5260_v16 = vunpack.i.l.bf16 %v8450_v24 }
 0x45d   : > { %v3652_v52 = vpack.c.b16 %v3651_v12, %v3650_v40  ;;  %v8452_v40 = vld [vmem:[#allocation23_spill] sm:$0xff]  ;;  %v3706_v12 = vunpack.c.l.b16 %v3380_v46  ;;  %v3937_v24 = vpack.c.b16 %v3936_v39, %v3935_v6  ;;  %v8454_v39 = vld [vmem:[#allocation30_spill] sm:$0xff] }
 0x45e   : > { %v5850_v27 = vpop.eup %5849  ;;  %v3096_v20 = vpop.xlane.xlu0 %3095  ;;  %v1664_v58 = vpack.c.bf16 %v5260_v16, %v5260_v16  ;;  %v5351_v6 = vunpack.i.h.bf16 %v8454_v39 }
 0x45f   : > { %v5852_v49 = vpop.eup %5851  ;;  %v3317_v13 = vmul.f32 %v5850_v27, %v7662_v47  ;;  %5857 = vrcp.f32 %v3096_v20  ;;  %4974 = vmatmul.msk.bf16.vlgmr.msra.gmra.mxu2 %vm2655_vm3, %v3652_v52  ;;  %v3153_v9 = vpop.xlane.xlu1 %3152  ;;  %v3205_v47 = vsel %vm2655_vm3, %v7923_v30, 0.0  ;;  %v8453_v52 = vld [vmem:[#allocation55_spill] sm:$0xff] }
 0x460   : > { %v5854_v34 = vpop.eup %5853  ;;  %3893 = vmatpush.bf16.msra.mxu2 %v3881_v22  ;;  %5859 = vrcp.f32 %v3153_v9  ;;  %v3315_v61 = vmul.f32 %v5852_v49, %v8452_v40  ;;  %v1665_v9 = vpack.c.bf16 %v5261_v21, %v5261_v21 }
 0x461   : > { %v7928_v10 = vpop.eup %5855  ;;  %v3381_v38 = vpack.c.bf16 %v3317_v13, %v3317_v13  ;;  %5861 = vrcp.f32 %v3111_v2  ;;  %v3332_v27 = vmul.f32 %v5854_v34, %v8453_v52 }
 0x462   : > { %8451 = vst [vmem:[#allocation40_spill] sm:$0xff] %v7928_v10  ;;  %v3202_v14 = vsel %vm2655_vm3, %v7928_v10, 0.0  ;;  %v3379_v49 = vpack.c.bf16 %v3315_v61, %v3315_v61  ;;  %v3908_v16 = vunpack.c.l.b16 %v1665_v9 }
 0x463   : > { %v3707_v22 = vunpack.c.l.b16 %v3381_v38  ;;  %3206 = vadd.xlane.f32.xlu0 %v3205_v47  ;;  %3203 = vadd.xlane.f32.xlu1 %v3202_v14  ;;  %v3396_v30 = vpack.c.bf16 %v3332_v27, %v3332_v27  ;;  %v3907_v47 = vunpack.c.l.b16 %v1664_v58  ;;  %v1669_v58 = vpack.c.bf16 %v5351_v6, %v5351_v6 }
 0x464   : > { %v3679_v14 = vunpack.c.l.b16 %v3379_v49 }
 0x465   : > { %v5858_v20 = vpop.eup %5857  ;;  %v3708_v26 = vpack.c.b16 %v3707_v22, %v3706_v12 }
 0x466   : > { %v5860_v13 = vpop.eup %5859  ;;  %v3314_v2 = vmul.f32 %v5858_v20, %v7686_v35  ;;  %v3120_v40 = vpop.xlane.xlu2 %3119  ;;  %v5350_v35 = vunpack.i.l.bf16 %v8454_v39  ;;  %v3909_v20 = vpack.c.b16 %v3908_v16, %v3907_v47 }
 0x467   : > { %v3108_v15 = vpop.xlane.xlu0 %3107  ;;  %v3333_v10 = vmul.f32 %v5860_v13, %v7693_v18  ;;  %4976 = vmatmul.msk.bf16.vlgmr.msrb.gmra.mxu0 %vm2655_vm3, %v3708_v26  ;;  %v2844_v46 = vpop.xlane.xlu1 %2843  ;;  %v7943_v18 = vunpack.c.l.b16 %v3396_v30 }
 0x468   : > { %v5862_v34 = vpop.eup %5861  ;;  %v3378_v38 = vpack.c.bf16 %v3314_v2, %v3314_v2  ;;  %5863 = vrcp.f32 %v3108_v15  ;;  %3949 = vmatpush.bf16.msrb.mxu0 %v3937_v24  ;;  %v2910_v21 = vsub.f32 %v7701_v55, %v2844_v46  ;;  %v8455_v55 = vld [vmem:[#allocation20_spill] sm:$0xff]  ;;  %v1668_v26 = vpack.c.bf16 %v5350_v35, %v5350_v35 }
 0x469   : > { %v3397_v61 = vpack.c.bf16 %v3333_v10, %v3333_v10  ;;  %v3319_v27 = vmul.f32 %v5862_v34, %v7675_v45 }
 0x46a   : > { %v3678_v12 = vunpack.c.l.b16 %v3378_v38  ;;  %v3036_v52 = vmul.f32 1.442695, %v2910_v21  ;;  %v3964_v21 = vunpack.c.l.b16 %v1669_v58  ;;  %v3963_v16 = vunpack.c.l.b16 %v1668_v26 }
 0x46b   : > { %v7946_v22 = vunpack.c.l.b16 %v3397_v61  ;;  %v3383_v24 = vpack.c.bf16 %v3319_v27, %v3319_v27  ;;  %v8456_v27 = vld [vmem:[#allocation37_spill] sm:$0xff] }
 0x46c   : > { %v3680_v15 = vpack.c.b16 %v3679_v14, %v3678_v12  ;;  %5865 = vpow2.f32 %v3036_v52  ;;  %1608 = vrot.lane.b32.xlu2 %v8455_v55, %s6151_s26  ;;  %v3965_v61 = vpack.c.b16 %v3964_v21, %v3963_v16  ;;  %v5395_v55 = vunpack.i.l.bf16 %v8456_v27 }
 0x46d   : > { %5867 = vrcp.f32 %v3120_v40  ;;  %v3735_v47 = vunpack.c.l.b16 %v3383_v24 }
 0x46e   : > { %v5864_v9 = vpop.eup %5863  ;;  %v3141_v13 = vpop.xlane.xlu2 %3140  ;;  %4975 = vmatmul.msk.bf16.vlgmr.msrb.gmra.mxu3 %vm2655_vm3, %v3680_v15  ;;  %v5396_v15 = vunpack.i.h.bf16 %v8456_v27 }
 0x46f   : > { %v2847_v30 = vpop.xlane.xlu0 %2846  ;;  %v3318_v45 = vmul.f32 %v5864_v9, %v7704_v28  ;;  %3921 = vmatpush.bf16.msrb.mxu3 %v3909_v20  ;;  %v3114_v2 = vpop.xlane.xlu1 %3113  ;;  %v8457_v9 = vld [vmem:[#allocation43_spill] sm:$0xff] }
 0x470   : > { %v2911_v49 = vsub.f32 %v7720_v44, %v2847_v30  ;;  %5869 = vrcp.f32 %v3114_v2  ;;  %v5441_v58 = vunpack.i.h.bf16 %v8457_v9  ;;  %v5440_v26 = vunpack.i.l.bf16 %v8457_v9 }
 0x471   : > { %v3382_v46 = vpack.c.bf16 %v3318_v45, %v3318_v45  ;;  %v1670_v2 = vpack.c.bf16 %v5395_v55, %v5395_v55 }
 0x472   : > { %v3038_v34 = vmul.f32 1.442695, %v2911_v49  ;;  %v7955_v38 = vpop.eup %5865  ;;  %v1671_v49 = vpack.c.bf16 %v5396_v15, %v5396_v15  ;;  %v1673_v16 = vpack.c.bf16 %v5441_v58, %v5441_v58 }
 0x473   : > { %v3734_v39 = vunpack.c.l.b16 %v3382_v46  ;;  %v3226_v6 = vsel %vm2655_vm3, %v7955_v38, 0.0  ;;  %v5868_v40 = vpop.eup %5867 }
 0x474   : > { %5871 = vpow2.f32 %v3038_v34  ;;  %3227 = vadd.xlane.f32.xlu1 %v3226_v6  ;;  %v3322_v24 = vmul.f32 %v5868_v40, %v7708_v53  ;;  %v4020_v40 = vunpack.c.l.b16 %v1673_v16 }
 0x475   : > { %v3736_v28 = vpack.c.b16 %v3735_v47, %v3734_v39  ;;  %v1672_v47 = vpack.c.bf16 %v5440_v26, %v5440_v26 }
 0x476   : > { %v7959_v35 = vpop.xlane.xlu2 %3173  ;;  %v5870_v12 = vpop.eup %5869 }
 0x477   : > { %v3117_v44 = vpop.xlane.xlu0 %3116  ;;  %4977 = vmatmul.msk.bf16.vlgmr.msrb.gmra.mxu1 %vm2655_vm3, %v3736_v28  ;;  %v3123_v14 = vpop.xlane.xlu1 %3122  ;;  %v3320_v30 = vmul.f32 %v5870_v12, %v7725_v42  ;;  %v3991_v12 = vunpack.c.l.b16 %v1670_v2  ;;  %v4019_v27 = vunpack.c.l.b16 %v1672_v47  ;;  %v8458_v2 = vld [vmem:[#allocation18_spill] sm:$0xff] }
 0x478   : > { %3977 = vmatpush.bf16.msrb.mxu1 %v3965_v61  ;;  %5873 = vrcp.f32 %v3117_v44  ;;  %v3386_v61 = vpack.c.bf16 %v3322_v24, %v3322_v24 }
 0x479   : > { %5875 = vrcp.f32 %v3123_v14  ;;  %v3384_v39 = vpack.c.bf16 %v3320_v30, %v3320_v30  ;;  %v3992_v14 = vunpack.c.l.b16 %v1671_v49  ;;  %v4021_v10 = vpack.c.b16 %v4020_v40, %v4019_v27 }
 0x47a   : > { %v7962_v52 = vpop.eup %5871 }
 0x47b   : > { %v3229_v20 = vsel %vm2655_vm3, %v7962_v52, 0.0  ;;  %v3762_v15 = vunpack.c.l.b16 %v3384_v39  ;;  %v3993_v30 = vpack.c.b16 %v3992_v14, %v3991_v12  ;;  %v8459_v39 = vld [vmem:[#allocation15_spill] sm:$0xff] }
 0x47c   : > { %3230 = vadd.xlane.f32.xlu0 %v3229_v20  ;;  %v3790_v20 = vunpack.c.l.b16 %v3386_v61  ;;  %v8461_v12 = vld [vmem:[#allocation19_spill] sm:$0xff] }
 0x47e   : > { %v5874_v45 = vpop.eup %5873  ;;  %v3144_v46 = vpop.xlane.xlu2 %3143 }
 0x47f   : > { %v3138_v34 = vpop.xlane.xlu0 %3137  ;;  %v5876_v21 = vpop.eup %5875  ;;  %v3321_v6 = vmul.f32 %v5874_v45, %v7740_v37 }
 0x480   : > { %v3126_v28 = vpop.xlane.xlu1 %3125  ;;  %v3323_v44 = vmul.f32 %v5876_v21, %v7742_v57  ;;  %5877 = vrcp.f32 %v3138_v34  ;;  %v5221_v34 = vunpack.i.h.bf16 %v8458_v2  ;;  %v5220_v21 = vunpack.i.l.bf16 %v8458_v2 }
 0x481   : > { %v3385_v42 = vpack.c.bf16 %v3321_v6, %v3321_v6  ;;  %5879 = vrcp.f32 %v3141_v13 }
 0x482   : > { %v3387_v53 = vpack.c.bf16 %v3323_v44, %v3323_v44  ;;  %5881 = vrcp.f32 %v3126_v28  ;;  %v1679_v6 = vpack.c.bf16 %v5221_v34, %v5221_v34  ;;  %v1678_v61 = vpack.c.bf16 %v5220_v21, %v5220_v21 }
 0x483   : > { %v3763_v55 = vunpack.c.l.b16 %v3385_v42  ;;  %5883 = vrcp.f32 %v3144_v46  ;;  %v5266_v28 = vunpack.i.h.bf16 %v8461_v12 }
 0x484   : > { %v3791_v9 = vunpack.c.l.b16 %v3387_v53  ;;  %v4104_v40 = vunpack.c.l.b16 %v1679_v6  ;;  %v4103_v27 = vunpack.c.l.b16 %v1678_v61 }
 0x485   : > { %v3764_v58 = vpack.c.b16 %v3763_v55, %v3762_v15  ;;  %v8462_v15 = vld [vmem:[#allocation46_spill] sm:$0xff] }
 0x486   : > { %v5878_v26 = vpop.eup %5877  ;;  %v3792_v37 = vpack.c.b16 %v3791_v9, %v3790_v20  ;;  %v3165_v45 = vpop.xlane.xlu2 %3164  ;;  %v5486_v55 = vunpack.i.h.bf16 %v8462_v15  ;;  %v5485_v20 = vunpack.i.l.bf16 %v8462_v15  ;;  %v5265_v9 = vunpack.i.l.bf16 %v8461_v12 }
 0x487   : > { %v3162_v24 = vpop.xlane.xlu0 %3161  ;;  %4978 = vmatmul.msk.bf16.vlgmr.msrb.gmra.mxu2 %vm2655_vm3, %v3764_v58  ;;  %v5880_v49 = vpop.eup %5879  ;;  %v3328_v13 = vmul.f32 %v5878_v26, %v7755_v3  ;;  %5885 = vrcp.f32 %v3165_v45  ;;  %v4105_v2 = vpack.c.b16 %v4104_v40, %v4103_v27 }
 0x488   : > { %v7975_v57 = vpop.xlane.xlu1 %3176  ;;  %4005 = vmatpush.bf16.msrb.mxu2 %v3993_v30  ;;  %4979 = vmatmul.msk.bf16.vlgmr.msra.gmra.mxu3 %vm2655_vm3, %v3792_v37  ;;  %v3329_v16 = vmul.f32 %v5880_v49, %v7729_v11  ;;  %5887 = vrcp.f32 %v3162_v24  ;;  %v5882_v14 = vpop.eup %5881  ;;  %v1681_v37 = vpack.c.bf16 %v5266_v28, %v5266_v28  ;;  %v1675_v34 = vpack.c.bf16 %v5486_v55, %v5486_v55 }
 0x489   : > { %4033 = vmatpush.bf16.msra.mxu3 %v4021_v10  ;;  %v3392_v47 = vpack.c.bf16 %v3328_v13, %v3328_v13  ;;  %v8460_v10 = vld [vmem:[#allocation26_spill] sm:$0xff]  ;;  %v5884_v11 = vpop.eup %5883  ;;  %v3324_v26 = vmul.f32 %v5882_v14, %v7760_v4  ;;  %v1674_v21 = vpack.c.bf16 %v5485_v20, %v5485_v20 }
 0x48a   : > { %v3393_v42 = vpack.c.bf16 %v3329_v16, %v3329_v16  ;;  %v3330_v45 = vmul.f32 %v5884_v11, %v7757_v23 }
 0x48b   : > { %v3874_v46 = vunpack.c.l.b16 %v3392_v47  ;;  %v3388_v6 = vpack.c.bf16 %v3324_v26, %v3324_v26  ;;  %v4047_v40 = vunpack.c.l.b16 %v1674_v21 }
 0x48c   : > { %v3875_v58 = vunpack.c.l.b16 %v3393_v42  ;;  %v8463_v42 = vld [vmem:[#allocation35_spill] sm:$0xff]  ;;  %v3394_v23 = vpack.c.bf16 %v3330_v45, %v3330_v45 }
 0x48d   : > { %1604 = vrot.lane.b32.xlu1 %v8459_v39, %s6151_s26  ;;  %v5886_v30 = vpop.eup %5885  ;;  %v1680_v39 = vpack.c.bf16 %v5265_v9, %v5265_v9  ;;  %v5400_v14 = vunpack.i.l.bf16 %v8463_v42  ;;  %v3818_v55 = vunpack.c.l.b16 %v3388_v6 }
 0x48e   : > { %v3132_v53 = vpop.xlane.xlu2 %3131  ;;  %v5888_v24 = vpop.eup %5887  ;;  %v3876_v49 = vpack.c.b16 %v3875_v58, %v3874_v46  ;;  %v3337_v12 = vmul.f32 %v5886_v30, %v7774_v1  ;;  %v4048_v46 = vunpack.c.l.b16 %v1675_v34  ;;  %v3902_v9 = vunpack.c.l.b16 %v3394_v23 }
 0x48f   : > { %v3129_v44 = vpop.xlane.xlu0 %3128  ;;  %v3336_v28 = vmul.f32 %v5888_v24, %v7777_v32  ;;  %v4131_v15 = vunpack.c.l.b16 %v1680_v39 }
 0x490   : > { %v3147_v3 = vpop.xlane.xlu1 %3146  ;;  %5528 = vrot.lane.b32.xlu0 %v8460_v10, %s6151_s26  ;;  %5889 = vrcp.f32 %v3129_v44  ;;  %v4132_v44 = vunpack.c.l.b16 %v1681_v37  ;;  %v4049_v1 = vpack.c.b16 %v4048_v46, %v4047_v40 }
 0x491   : > { %5891 = vrcp.f32 %v3147_v3  ;;  %v5401_v3 = vunpack.i.h.bf16 %v8463_v42  ;;  %v3400_v26 = vpack.c.bf16 %v3336_v28, %v3336_v28 }
 0x492   : > { %v4133_v24 = vpack.c.b16 %v4132_v44, %v4131_v15  ;;  %v8465_v44 = vld [vmem:[#allocation48_spill] sm:$0xff] }
 0x493   : > { %v1687_v45 = vpack.c.bf16 %v5401_v3, %v5401_v3  ;;  %v3986_v21 = vunpack.c.l.b16 %v3400_v26  ;;  %v5526_v42 = vunpack.i.h.bf16 %v8465_v44  ;;  %v5525_v3 = vunpack.i.l.bf16 %v8465_v44 }
 0x495   : > { %v1677_v15 = vpack.c.bf16 %v5526_v42, %v5526_v42 }
 0x496   : > { %v5890_v13 = vpop.eup %5889  ;;  %v3186_v27 = vpop.xlane.xlu2 %3185 }
 0x497   : > { %v7992_v16 = vpop.xlane.xlu0 %3197  ;;  %v5892_v47 = vpop.eup %5891  ;;  %v3325_v61 = vmul.f32 %v5890_v13, %v7791_v29  ;;  %4982 = vmatmul.msk.bf16.vlgmr.msra.gmra.mxu2 %vm2655_vm3, %v3876_v49  ;;  %v1686_v49 = vpack.c.bf16 %v5400_v14, %v5400_v14 }
 0x498   : > { %v3168_v4 = vpop.xlane.xlu1 %3167  ;;  %v3331_v10 = vmul.f32 %v5892_v47, %v7793_v41  ;;  %4117 = vmatpush.bf16.msra.mxu2 %v4105_v2  ;;  %v3401_v41 = vpack.c.bf16 %v3337_v12, %v3337_v12  ;;  %v8464_v47 = vld [vmem:[#allocation29_spill] sm:$0xff] }
 0x499   : > { %v3389_v11 = vpack.c.bf16 %v3325_v61, %v3325_v61  ;;  %5893 = vrcp.f32 %v3168_v4  ;;  %v5311_v39 = vunpack.i.h.bf16 %v8464_v47  ;;  %v5310_v6 = vunpack.i.l.bf16 %v8464_v47 }
 0x49a   : > { %v3395_v29 = vpack.c.bf16 %v3331_v10, %v3331_v10  ;;  %5895 = vrcp.f32 %v3132_v53  ;;  %v3987_v34 = vunpack.c.l.b16 %v3401_v41  ;;  %v4216_v61 = vunpack.c.l.b16 %v1687_v45 }
 0x49b   : > { %v3819_v20 = vunpack.c.l.b16 %v3389_v11  ;;  %v4215_v4 = vunpack.c.l.b16 %v1686_v49  ;;  %v1683_v11 = vpack.c.bf16 %v5311_v39, %v5311_v39  ;;  %v1682_v46 = vpack.c.bf16 %v5310_v6, %v5310_v6 }
 0x49c   : > { %v3903_v58 = vunpack.c.l.b16 %v3395_v29  ;;  %v3988_v12 = vpack.c.b16 %v3987_v34, %v3986_v21  ;;  %v8466_v6 = vpack.c.b16 %v7946_v22, %v7943_v18 }
 0x49d   : > { %v3820_v37 = vpack.c.b16 %v3819_v20, %v3818_v55  ;;  %v4217_v40 = vpack.c.b16 %v4216_v61, %v4215_v4  ;;  %v1676_v55 = vpack.c.bf16 %v5525_v3, %v5525_v3  ;;  %v4159_v45 = vunpack.c.l.b16 %v1682_v46 }
 0x49e   : > { %v3904_v30 = vpack.c.b16 %v3903_v58, %v3902_v9  ;;  %v3201_v14 = vpop.xlane.xlu2 %3200 }
 0x49f   : > { %v3171_v32 = vpop.xlane.xlu0 %3170  ;;  %4980 = vmatmul.msk.bf16.vlgmr.msra.gmra.mxu0 %vm2655_vm3, %v3820_v37  ;;  %v5894_v2 = vpop.eup %5893  ;;  %v4160_v37 = vunpack.c.l.b16 %v1683_v11 }
 0x4a0   : > { %v3135_v13 = vpop.xlane.xlu1 %3134  ;;  %4061 = vmatpush.bf16.msra.mxu0 %v4049_v1  ;;  %5897 = vrcp.f32 %v3171_v32  ;;  %4983 = vmatmul.msk.bf16.vlgmr.msrb.gmra.mxu3 %vm2655_vm3, %v3904_v30  ;;  %v5896_v53 = vpop.eup %5895  ;;  %v3338_v23 = vmul.f32 %v5894_v2, %v7809_v43  ;;  %v4076_v1 = vunpack.c.l.b16 %v1677_v15 }
 0x4a1   : > { %5899 = vrcp.f32 %v3135_v13  ;;  %4145 = vmatpush.bf16.msrb.mxu3 %v4133_v24  ;;  %v3326_v10 = vmul.f32 %v5896_v53, %v7795_v5 }
 0x4a2   : > { %5901 = vrcp.f32 %v3186_v27  ;;  %v3402_v20 = vpack.c.bf16 %v3338_v23, %v3338_v23 }
 0x4a3   : > { %5903 = vrcp.f32 %v7975_v57  ;;  %v3390_v43 = vpack.c.bf16 %v3326_v10, %v3326_v10 }
 0x4a4   : > { %v4014_v30 = vunpack.c.l.b16 %v3402_v20 }
 0x4a5   : > { %v3846_v24 = vunpack.c.l.b16 %v3390_v43 }
 0x4a6   : > { %v5898_v28 = vpop.eup %5897  ;;  %v3192_v21 = vpop.xlane.xlu2 %3191 }
 0x4a7   : > { %v5900_v29 = vpop.eup %5899  ;;  %v3339_v9 = vmul.f32 %v5898_v28, %v7830_v63  ;;  %4986 = vmatmul.msk.bf16.vlgmr.msrb.gmra.mxu2 %vm2655_vm3, %v3988_v12  ;;  %v3156_v58 = vpop.xlane.xlu0 %3155  ;;  %v4075_v63 = vunpack.c.l.b16 %v1676_v55 }
 0x4a8   : > { %v3189_v27 = vpop.xlane.xlu1 %3188  ;;  %v3327_v5 = vmul.f32 %v5900_v29, %v7827_v31  ;;  %4229 = vmatpush.bf16.msrb.mxu2 %v4217_v40  ;;  %v5902_v41 = vpop.eup %5901  ;;  %v4161_v31 = vpack.c.b16 %v4160_v37, %v4159_v45 }
 0x4a9   : > { %v3403_v26 = vpack.c.bf16 %v3339_v9, %v3339_v9  ;;  %5905 = vrcp.f32 %v3189_v27  ;;  %v3344_v13 = vmul.f32 %v5902_v41, %v7812_v60  ;;  %v5904_v53 = vpop.eup %5903  ;;  %v4077_v39 = vpack.c.b16 %v4076_v1, %v4075_v63 }
 0x4aa   : > { %5907 = vrcp.f32 %v7959_v35  ;;  %v3391_v49 = vpack.c.bf16 %v3327_v5, %v3327_v5  ;;  %v3341_v42 = vmul.f32 %v5904_v53, %v7780_v48 }
 0x4ab   : > { %v4015_v32 = vunpack.c.l.b16 %v3403_v26  ;;  %v3408_v44 = vpack.c.bf16 %v3344_v13, %v3344_v13  ;;  %5909 = vrcp.f32 %v3156_v58  ;;  %v8032_v26 = vpop.f32.mrf.mxu2 }
 0x4ac   : > { %v3847_v57 = vunpack.c.l.b16 %v3391_v49  ;;  %5911 = vrcp.f32 %v3192_v21  ;;  %v3405_v10 = vpack.c.bf16 %v3341_v42, %v3341_v42 }
 0x4ad   : > { %v4016_v2 = vpack.c.b16 %v4015_v32, %v4014_v30  ;;  %v4098_v22 = vunpack.c.l.b16 %v3408_v44  ;;  %5913 = vrcp.f32 %v7992_v16  ;;  %v8036_v30 = vpop.f32.mrf.mxu0 }
 0x4ae   : > { %v3848_v34 = vpack.c.b16 %v3847_v57, %v3846_v24  ;;  %5915 = vrcp.f32 %v3201_v14  ;;  %v4043_v29 = vunpack.c.l.b16 %v3405_v10 }
 0x4af   : > { %v5906_v47 = vpop.eup %5905  ;;  %4984 = vmatmul.msk.bf16.vlgmr.msrb.gmra.mxu0 %vm2655_vm3, %v8466_v6  ;;  %v3210_v61 = vpop.xlane.xlu0 %3209 }
 0x4b0   : > { %v8019_v35 = vpop.xlane.xlu1 %3221  ;;  %v5908_v4 = vpop.eup %5907  ;;  %v3345_v60 = vmul.f32 %v5906_v47, %v7841_v7  ;;  %4173 = vmatpush.bf16.msrb.mxu0 %v4161_v31  ;;  %4981 = vmatmul.msk.bf16.vlgmr.msra.gmra.mxu1 %vm2655_vm3, %v3848_v34 }
 0x4b1   : > { %4987 = vmatmul.msk.bf16.vlgmr.msra.gmra.mxu3 %vm2655_vm3, %v4016_v2  ;;  %4089 = vmatpush.bf16.msra.mxu1 %v4077_v39  ;;  %v3340_v18 = vmul.f32 %v5908_v4, %v7745_v36  ;;  %v5910_v46 = vpop.eup %5909  ;;  %v8467_v36 = vld [vmem:[#allocation33_spill] sm:$0xff] }
 0x4b2   : > { %v3409_v3 = vpack.c.bf16 %v3345_v60, %v3345_v60  ;;  %v5912_v40 = vpop.eup %5911  ;;  %v5356_v15 = vunpack.i.h.bf16 %v8467_v36  ;;  %v5355_v55 = vunpack.i.l.bf16 %v8467_v36  ;;  %v3334_v16 = vmul.f32 %v5910_v46, %v7839_v51  ;;  %v8052_v46 = vpop.f32.mrf.mxu3 }
 0x4b3   : > { %v3404_v7 = vpack.c.bf16 %v3340_v18, %v3340_v18  ;;  %v5914_v9 = vpop.eup %5913  ;;  %v3346_v14 = vmul.f32 %v5912_v40, %v7844_v62 }
 0x4b4   : > { %v4099_v23 = vunpack.c.l.b16 %v3409_v3  ;;  %v5916_v58 = vpop.eup %5915  ;;  %v1685_v5 = vpack.c.bf16 %v5356_v15, %v5356_v15  ;;  %v1684_v41 = vpack.c.bf16 %v5355_v55, %v5355_v55  ;;  %v3398_v45 = vpack.c.bf16 %v3334_v16, %v3334_v16 }
 0x4b5   : > { %v4042_v20 = vunpack.c.l.b16 %v3404_v7  ;;  %v3410_v51 = vpack.c.bf16 %v3346_v14, %v3346_v14  ;;  %v3349_v24 = vmul.f32 %v5916_v58, %v7824_v17  ;;  %v3348_v53 = vmul.f32 %v5914_v9, %v7805_v0  ;;  %v8044_v0 = vpop.f32.mrf.mxu2  ;;  %v8056_v9 = vpop.f32.mrf.mxu1 }
 0x4b6   : > { %v4100_v12 = vpack.c.b16 %v4099_v23, %v4098_v22  ;;  %v4188_v57 = vunpack.c.l.b16 %v1685_v5  ;;  %v4187_v2 = vunpack.c.l.b16 %v1684_v41  ;;  %v8468_v23 = vld [vmem:[#allocation41_spill] sm:$0xff] }
 0x4b7   : > { %v3159_v28 = vpop.xlane.xlu2 %3158  ;;  %v4044_v27 = vpack.c.b16 %v4043_v29, %v4042_v20  ;;  %v4126_v47 = vunpack.c.l.b16 %v3410_v51  ;;  %v3413_v6 = vpack.c.bf16 %v3349_v24, %v3349_v24  ;;  %v3412_v60 = vpack.c.bf16 %v3348_v53, %v3348_v53 }
 0x4b8   : > { %v3195_v11 = vpop.xlane.xlu1 %3194  ;;  %5917 = vrcp.f32 %v3159_v28  ;;  %4990 = vmatmul.msk.bf16.vlgmr.msra.gmra.mxu2 %vm2655_vm3, %v4100_v12  ;;  %v3225_v48 = vpop.xlane.xlu0 %3224  ;;  %v4189_v4 = vpack.c.b16 %v4188_v57, %v4187_v2  ;;  %v5446_v10 = vunpack.i.h.bf16 %v8468_v23 }
 0x4b9   : > { %5919 = vrcp.f32 %v3195_v11  ;;  %v4155_v18 = vunpack.c.l.b16 %v3413_v6  ;;  %v8048_v12 = vpop.f32.mrf.mxu0 }
 0x4ba   : > { %5921 = vrcp.f32 %v3210_v61  ;;  %v1690_v36 = vpack.c.bf16 %v5446_v10, %v5446_v10  ;;  %v8065_v57 = vpop.f32.mrf.mxu3 }
 0x4bc   : > { %v4271_v5 = vunpack.c.l.b16 %v1690_v36 }
 0x4bd   : > { %v8058_v14 = vpop.f32.mrf.mxu2  ;;  %v8068_v2 = vpop.f32.mrf.mxu1 }
 0x4be   : > { %v5918_v43 = vpop.eup %5917 }
 0x4bf   : > { %v5920_v37 = vpop.eup %5919  ;;  %v3335_v49 = vmul.f32 %v5918_v43, %v7879_v19  ;;  %4988 = vmatmul.msk.bf16.vlgmr.msra.gmra.mxu0 %vm2655_vm3, %v4044_v27  ;;  %v3213_v1 = vpop.xlane.xlu2 %3212  ;;  %v3958_v19 = vunpack.c.l.b16 %v3398_v45 }
 0x4c0   : > { %v5922_v63 = vpop.eup %5921  ;;  %v3347_v62 = vmul.f32 %v5920_v37, %v7872_v25  ;;  %5923 = vrcp.f32 %v3213_v1  ;;  %v3180_v32 = vpop.xlane.xlu0 %3179 }
 0x4c1   : > { %v3399_v13 = vpack.c.bf16 %v3335_v49, %v3335_v49  ;;  %v3352_v34 = vmul.f32 %v5922_v63, %v7863_v50  ;;  %5925 = vrcp.f32 %v3180_v32  ;;  %v8062_v41 = vpop.f32.mrf.mxu0 }
 0x4c2   : > { %v3411_v31 = vpack.c.bf16 %v3347_v62, %v3347_v62  ;;  %5927 = vrcp.f32 %v3225_v48  ;;  %v8075_v6 = vpop.f32.mrf.mxu3 }
 0x4c3   : > { %v3959_v21 = vunpack.c.l.b16 %v3399_v13  ;;  %v3416_v17 = vpack.c.bf16 %v3352_v34, %v3352_v34 }
 0x4c4   : > { %v4127_v39 = vunpack.c.l.b16 %v3411_v31 }
 0x4c5   : > { %v3960_v61 = vpack.c.b16 %v3959_v21, %v3958_v19  ;;  %v4210_v7 = vunpack.c.l.b16 %v3416_v17  ;;  %v8070_v53 = vpop.f32.mrf.mxu2 }
 0x4c6   : > { %v5924_v25 = vpop.eup %5923  ;;  %v4128_v44 = vpack.c.b16 %v4127_v39, %v4126_v47  ;;  %v8469_v47 = vld [vmem:[#allocation40_spill] sm:$0xff] }
 0x4c7   : > { %v3353_v42 = vmul.f32 %v5924_v25, %v7890_v56  ;;  %v3183_v3 = vpop.xlane.xlu2 %3182  ;;  %4985 = vmatmul.msk.bf16.vlgmr.msrb.gmra.mxu1 %vm2655_vm3, %v3960_v61  ;;  %v5926_v50 = vpop.eup %5925  ;;  %v4154_v56 = vunpack.c.l.b16 %v3412_v60  ;;  %v8470_v61 = vld [vmem:[#allocation39_spill] sm:$0xff] }
 0x4c8   : > { %4991 = vmatmul.msk.bf16.vlgmr.msrb.gmra.mxu3 %vm2655_vm3, %v4128_v44  ;;  %4201 = vmatpush.bf16.msrb.mxu1 %v4189_v4  ;;  %5929 = vrcp.f32 %v3183_v3  ;;  %v3342_v11 = vmul.f32 %v5926_v50, %v7892_v54  ;;  %v5928_v29 = vpop.eup %5927  ;;  %v3216_v15 = vpop.xlane.xlu1 %3215 }
 0x4c9   : > { %v3417_v22 = vpack.c.bf16 %v3353_v42, %v3353_v42  ;;  %5931 = vrcp.f32 %v8019_v35  ;;  %v4156_v48 = vpack.c.b16 %v4155_v18, %v4154_v56  ;;  %v3357_v43 = vmul.f32 %v5928_v29, %v7875_v59  ;;  %v8072_v31 = vpop.f32.mrf.mxu0  ;;  %v8079_v60 = vpop.f32.mrf.mxu1 }
 0x4ca   : > { %v3406_v54 = vpack.c.bf16 %v3342_v11, %v3342_v11 }
 0x4cb   : > { %v4211_v28 = vunpack.c.l.b16 %v3417_v22  ;;  %v3421_v62 = vpack.c.bf16 %v3357_v43, %v3357_v43  ;;  %v8084_v22 = vpop.f32.mrf.mxu3 }
 0x4cc   : > { %v4070_v1 = vunpack.c.l.b16 %v3406_v54  ;;  %v5445_v54 = vunpack.i.l.bf16 %v8468_v23 }
 0x4cd   : > { %v4212_v40 = vpack.c.b16 %v4211_v28, %v4210_v7  ;;  %v4267_v59 = vunpack.c.l.b16 %v3421_v62 }
 0x4ce   : > { %v3219_v55 = vpop.xlane.xlu0 %3218  ;;  %v5930_v20 = vpop.eup %5929 }
 0x4cf   : > { %4992 = vmatmul.msk.bf16.vlgmr.msrb.gmra.mxu0 %vm2655_vm3, %v4156_v48  ;;  %v1609_v16 = vpop.permute.xlu2 %1608  ;;  %4994 = vmatmul.msk.bf16.vlgmr.msrb.gmra.mxu2 %vm2655_vm3, %v4212_v40  ;;  %v5932_v35 = vpop.eup %5931  ;;  %v3343_v58 = vmul.f32 %v5930_v20, %v7901_v33 }
 0x4d0   : > { %v1691_v27 = vpack.c.bf16 %v1609_v16, %v1609_v16  ;;  %v3356_v49 = vmul.f32 %v5932_v35, %v7856_v8 }
 0x4d1   : > { %v3407_v37 = vpack.c.bf16 %v3343_v58, %v3343_v58  ;;  %v8086_v7 = vpop.f32.mrf.mxu1 }
 0x4d2   : > { %v4272_v45 = vunpack.c.l.b16 %v1691_v27  ;;  %v3420_v33 = vpack.c.bf16 %v3356_v49, %v3356_v49  ;;  %v8471_v27 = vld [vmem:[#allocation31_spill] sm:$0xff] }
 0x4d3   : > { %v4071_v63 = vunpack.c.l.b16 %v3407_v37 }
 0x4d4   : > { %v4273_v51 = vpack.c.b16 %v4272_v45, %v4271_v5  ;;  %v4266_v8 = vunpack.c.l.b16 %v3420_v33  ;;  %v8472_v45 = vld [vmem:[#allocation22_spill] sm:$0xff] }
 0x4d5   : > { %v4072_v32 = vpack.c.b16 %v4071_v63, %v4070_v1  ;;  %v1688_v1 = vpack.c.bf16 %v5445_v54, %v5445_v54 }
 0x4d6   : > { %v3204_v24 = vpop.xlane.xlu1 %3203  ;;  %4285 = vmatpush.bf16.msra.mxu0 %v4273_v51  ;;  %v3207_v13 = vpop.xlane.xlu0 %3206  ;;  %v4268_v34 = vpack.c.b16 %v4267_v59, %v4266_v8 }
 0x4d7   : > { %5933 = vrcp.f32 %v3204_v24  ;;  %4989 = vmatmul.msk.bf16.vlgmr.msra.gmra.mxu1 %vm2655_vm3, %v4072_v32  ;;  %v4243_v33 = vunpack.c.l.b16 %v1688_v1 }
 0x4d8   : > { %5935 = vrcp.f32 %v3207_v13 }
 0x4d9   : > { %5937 = vrcp.f32 %v3219_v55 }
 0x4da   : > { %5939 = vrcp.f32 %v3216_v15 }
 0x4dd   : > { %v5934_v19 = vpop.eup %5933 }
 0x4de   : > { %v5936_v21 = vpop.eup %5935  ;;  %v3350_v39 = vmul.f32 %v5934_v19, %v8469_v47 }
 0x4df   : > { %v3351_v25 = vmul.f32 %v5936_v21, %v8470_v61  ;;  %4996 = vmatmul.msk.bf16.vlgmr.msra.gmra.mxu0 %vm2655_vm3, %v4268_v34  ;;  %v5938_v20 = vpop.eup %5937 }
 0x4e0   : > { %v3414_v4 = vpack.c.bf16 %v3350_v39, %v3350_v39  ;;  %v5940_v35 = vpop.eup %5939  ;;  %v3355_v43 = vmul.f32 %v5938_v20, %v8471_v27 }
 0x4e1   : > { %v3415_v44 = vpack.c.bf16 %v3351_v25, %v3351_v25  ;;  %v3354_v55 = vmul.f32 %v5940_v35, %v8472_v45 }
 0x4e2   : > { %v4182_v17 = vunpack.c.l.b16 %v3414_v4  ;;  %v3671_v42 = vpop.f32.mrf.mxu2  ;;  %v3419_v63 = vpack.c.bf16 %v3355_v43, %v3355_v43 }
 0x4e3   : > { %v4183_v3 = vunpack.c.l.b16 %v3415_v44  ;;  %v3418_v23 = vpack.c.bf16 %v3354_v55, %v3354_v55 }
 0x4e4   : > { %v8081_v50 = vpop.f32.mrf.mxu0  ;;  %v4239_v34 = vunpack.c.l.b16 %v3419_v63 }
 0x4e5   : > { %v4184_v18 = vpack.c.b16 %v4183_v3, %v4182_v17  ;;  %v4238_v25 = vunpack.c.l.b16 %v3418_v23 }
 0x4e7   : > { %4993 = vmatmul.msk.bf16.vlgmr.msrb.gmra.mxu1 %vm2655_vm3, %v4184_v18  ;;  %v3228_v36 = vpop.xlane.xlu1 %3227  ;;  %v4240_v17 = vpack.c.b16 %v4239_v34, %v4238_v25 }
 0x4ea   : > { %v3673_v10 = vpop.f32.mrf.mxu2 }
 0x4eb   : > { %v5532_v56 = vpack.i.bf16 %v3673_v10, %v3671_v42 }
 0x4ec   : > { %v8088_v28 = vpop.f32.mrf.mxu0 }
 0x4ed   : > { %v5637_v11 = vpack.i.bf16 %v8088_v28, %v8081_v50  ;;  %5533 = vrot.lane.b32.xlu0 %v5532_v56, %s6151_s26  ;;  %v5065_v50 = vld [vmem:[#allocation8 + $0x18] sm:$0xff] }
 0x4ef   : > { %v3231_v40 = vpop.xlane.xlu0 %3230 }
 0x4f0   : > { %5941 = vrcp.f32 %v3231_v40 }
 0x4f1   : > { %v3699_v48 = vpop.f32.mrf.mxu3  ;;  %5943 = vrcp.f32 %v3228_v36 }
 0x4f4   : > { %v3755_v29 = vpop.f32.mrf.mxu1 }
 0x4f6   : > { %v5942_v5 = vpop.eup %5941 }
 0x4f7   : > { %v5944_v15 = vpop.eup %5943  ;;  %v3359_v51 = vmul.f32 %v5942_v5, %v7962_v52 }
 0x4f8   : > { %v3358_v24 = vmul.f32 %v5944_v15, %v7955_v38 }
 0x4f9   : > { %v3701_v16 = vpop.f32.mrf.mxu3  ;;  %v3423_v21 = vpack.c.bf16 %v3359_v51, %v3359_v51 }
 0x4fa   : > { %v5537_v58 = vpack.i.bf16 %v3701_v16, %v3699_v48  ;;  %v3422_v4 = vpack.c.bf16 %v3358_v24, %v3358_v24 }
 0x4fb   : > { %v4295_v42 = vunpack.c.l.b16 %v3423_v21 }
 0x4fc   : > { %v3757_v37 = vpop.f32.mrf.mxu1  ;;  %5538 = vrot.lane.b32.xlu0 %v5537_v58, %s6151_s26  ;;  %v4294_v18 = vunpack.c.l.b16 %v3422_v4 }
 0x4fd   : > { %v5542_v49 = vpack.i.bf16 %v3757_v37, %v3755_v29 }
 0x4fe   : > { %v4296_v10 = vpack.c.b16 %v4295_v42, %v4294_v18 }
 0x4ff   : > { %5543 = vrot.lane.b32.xlu2 %v5542_v49, %s6151_s26  ;;  %v1605_v62 = vpop.permute.xlu1 %1604 }
 0x500   : > { %v1689_v32 = vpack.c.bf16 %v1605_v62, %v1605_v62 }
 0x502   : > { %v5529_v13 = vpop.permute.xlu0 %5528  ;;  %v4244_v59 = vunpack.c.l.b16 %v1689_v32 }
 0x503   : > { %v5531_v8 = vunpack.i.h.bf16 %v5529_v13  ;;  %v5530_v19 = vunpack.i.l.bf16 %v5529_v13 }
 0x504   : > { %v4245_v47 = vpack.c.b16 %v4244_v59, %v4243_v33 }
 0x505   : > { %v1693_v39 = vpack.c.bf16 %v5531_v8, %v5531_v8  ;;  %v1692_v61 = vpack.c.bf16 %v5530_v19, %v5530_v19 }
 0x506   : > { %4257 = vmatpush.bf16.msra.mxu3 %v4245_v47 }
 0x507   : > { %v4300_v52 = vunpack.c.l.b16 %v1693_v39  ;;  %v4299_v44 = vunpack.c.l.b16 %v1692_v61 }
 0x509   : > { %v4301_v3 = vpack.c.b16 %v4300_v52, %v4299_v44  ;;  %4995 = vmatmul.msk.bf16.vlgmr.msra.gmra.mxu3 %vm2655_vm3, %v4240_v17  ;;  %v5069_v17 = vld [vmem:[#allocation8 + $0x38] sm:$0xff] }
 0x50a   : > { %v3783_v38 = vpop.f32.mrf.mxu2  ;;  %4638 = vmatpush.bf16.msrb.mxu0 %v5069_v17  ;;  %5072 = vmatpush.bf16.msra.mxu2 %v5069_v17 }
 0x50b   : > { %4313 = vmatpush.bf16.msra.mxu1 %v4301_v3  ;;  %v3811_v40 = vpop.f32.mrf.mxu3  ;;  %5073 = vmatpush.bf16.msrb.mxu3 %v5069_v17 }
 0x50e   : > { %4997 = vmatmul.msk.bf16.vlgmr.msra.gmra.mxu1 %vm2655_vm3, %v4296_v10 }
 0x512   : > { %v3785_v56 = vpop.f32.mrf.mxu2 }
 0x513   : > { %v5547_v48 = vpack.i.bf16 %v3785_v56, %v3783_v38  ;;  %v3813_v20 = vpop.f32.mrf.mxu3  ;;  %v5068_v56 = vld [vmem:[#allocation8 + $0x30] sm:$0xff] }
 0x514   : > { %v5602_v19 = vpack.i.bf16 %v3813_v20, %v3811_v40  ;;  %4639 = vmatpush.bf16.msrb.mxu0 %v5068_v56  ;;  %5074 = vmatpush.bf16.msra.mxu2 %v5068_v56 }
 0x515   : > { %5548 = vrot.lane.b32.xlu0 %v5547_v48, %s6151_s26  ;;  %5075 = vmatpush.bf16.msrb.mxu3 %v5068_v56 }
 0x51a   : > { %v3895_v29 = vpop.f32.mrf.mxu2 }
 0x51c   : > { %v3839_v36 = vpop.f32.mrf.mxu0 }
 0x522   : > { %v3897_v16 = vpop.f32.mrf.mxu2 }
 0x523   : > { %v5552_v35 = vpack.i.bf16 %v3897_v16, %v3895_v29  ;;  %v3923_v58 = vpop.f32.mrf.mxu3  ;;  %v5066_v16 = vld [vmem:[#allocation8 + $0x20] sm:$0xff] }
 0x524   : > { %v3841_v54 = vpop.f32.mrf.mxu0 }
 0x525   : > { %5553 = vrot.lane.b32.xlu1 %v5552_v35, %s6153_s7  ;;  %v5557_v43 = vpack.i.bf16 %v3841_v54, %v3839_v36  ;;  %v5067_v36 = vld [vmem:[#allocation8 + $0x28] sm:$0xff] }
 0x526   : > { %4640 = vmatpush.bf16.msrb.mxu0 %v5067_v36  ;;  %5076 = vmatpush.bf16.msra.mxu2 %v5067_v36 }
 0x527   : > { %5077 = vmatpush.bf16.msrb.mxu3 %v5067_v36 }
 0x52a   : > { %v4007_v27 = vpop.f32.mrf.mxu2  ;;  %4641 = vmatpush.bf16.msrb.mxu0 %v5066_v16  ;;  %5078 = vmatpush.bf16.msra.mxu2 %v5066_v16 }
 0x52b   : > { %v3925_v37 = vpop.f32.mrf.mxu3  ;;  %5079 = vmatpush.bf16.msrb.mxu3 %v5066_v16 }
 0x52c   : > { %v8104_v5 = vpop.f32.mrf.mxu0  ;;  %v5567_v49 = vpack.i.bf16 %v3925_v37, %v3923_v58  ;;  %v5063_v58 = vld [vmem:[#allocation8 + $0x8] sm:$0xff] }
 0x52d   : > { %5558 = vrot.lane.b32.xlu1 %v5557_v43, %s6151_s26  ;;  %v3867_v45 = vpop.f32.mrf.mxu1 }
 0x52e   : > { %4642 = vmatpush.bf16.msrb.mxu0 %v5065_v50  ;;  %5080 = vmatpush.bf16.msra.mxu2 %v5065_v50 }
 0x52f   : > { %5081 = vmatpush.bf16.msrb.mxu3 %v5065_v50 }
 0x532   : > { %v4009_v55 = vpop.f32.mrf.mxu2 }
 0x533   : > { %v5562_v15 = vpack.i.bf16 %v4009_v55, %v4007_v27  ;;  %v5062_v27 = vld [vmem:[#allocation8] sm:$0xff] }
 0x534   : > { %v8107_v1 = vpop.f32.mrf.mxu0  ;;  %v4035_v39 = vpop.f32.mrf.mxu3 }
 0x535   : > { %v5642_v63 = vpack.i.bf16 %v8107_v1, %v8104_v5  ;;  %5563 = vrot.lane.b32.xlu2 %v5562_v15, %s6153_s7  ;;  %5568 = vrot.lane.b32.xlu1 %v5567_v49, %s6153_s7  ;;  %v3869_v62 = vpop.f32.mrf.mxu1 }
 0x536   : > { %v5607_v3 = vpack.i.bf16 %v3869_v62, %v3867_v45 }
 0x53b   : > { %v4119_v51 = vpop.f32.mrf.mxu2 }
 0x53c   : > { %v4063_v32 = vpop.f32.mrf.mxu0  ;;  %v4037_v42 = vpop.f32.mrf.mxu3 }
 0x53d   : > { %v5617_v43 = vpack.i.bf16 %v4037_v42, %v4035_v39 }
 0x543   : > { %v4121_v23 = vpop.f32.mrf.mxu2 }
 0x544   : > { %v5572_v24 = vpack.i.bf16 %v4121_v23, %v4119_v51  ;;  %v4065_v13 = vpop.f32.mrf.mxu0  ;;  %v3979_v33 = vpop.f32.mrf.mxu1 }
 0x545   : > { %v5582_v59 = vpack.i.bf16 %v4065_v13, %v4063_v32 }
 0x546   : > { %5573 = vrot.lane.b32.xlu2 %v5572_v24, %s6152_s30 }
 0x547   : > { %5583 = vrot.lane.b32.xlu0 %v5582_v59, %s6153_s7 }
 0x54b   : > { %v4147_v10 = vpop.f32.mrf.mxu3 }
 0x54c   : > { %v3981_v8 = vpop.f32.mrf.mxu1  ;;  %v8117_v4 = vpop.f32.mrf.mxu0 }
 0x54d   : > { %v5577_v34 = vpack.i.bf16 %v3981_v8, %v3979_v33 }
 0x54f   : > { %5603 = vrot.lane.b32.xlu0 %v5602_v19, %s6151_s26  ;;  %5578 = vrot.lane.b32.xlu2 %v5577_v34, %s6153_s7 }
 0x552   : > { %v4231_v21 = vpop.f32.mrf.mxu2 }
 0x553   : > { %v4149_v20 = vpop.f32.mrf.mxu3 }
 0x554   : > { %v4091_v47 = vpop.f32.mrf.mxu1  ;;  %v4177_v38 = vpop.f32.mrf.mxu0  ;;  %v5597_v35 = vpack.i.bf16 %v4149_v20, %v4147_v10 }
 0x555   : > { %v5647_v24 = vpack.i.bf16 %v4177_v38, %v8117_v4 }
 0x559   : > { %v5544_v55 = vpop.permute.xlu2 %5543 }
 0x55a   : > { %v4233_v61 = vpop.f32.mrf.mxu2  ;;  %v5546_v17 = vunpack.i.h.bf16 %v5544_v55  ;;  %v5545_v42 = vunpack.i.l.bf16 %v5544_v55 }
 0x55b   : > { %v5587_v25 = vpack.i.bf16 %v4233_v61, %v4231_v21 }
 0x55c   : > { %v4093_v52 = vpop.f32.mrf.mxu1  ;;  %v4287_v29 = vpop.f32.mrf.mxu0  ;;  %v4519_v38 = vsel %vm1704_vm2, %v8068_v2, %v5546_v17  ;;  %v4518_v10 = vsel %vm1704_vm2, %v8056_v9, %v5545_v42 }
 0x55d   : > { %5588 = vrot.lane.b32.xlu1 %v5587_v25, %s6152_s30  ;;  %v5622_v44 = vpack.i.bf16 %v4093_v52, %v4091_v47 }
 0x55f   : > { %5623 = vrot.lane.b32.xlu0 %v5622_v44, %s6153_s7  ;;  %v5534_v23 = vpop.permute.xlu0 %5533 }
 0x560   : > { %v5536_v33 = vunpack.i.h.bf16 %v5534_v23  ;;  %v5535_v59 = vunpack.i.l.bf16 %v5534_v23 }
 0x562   : > { %v4513_v34 = vsel %vm1704_vm2, %v8044_v0, %v5536_v33  ;;  %v4512_v47 = vsel %vm1704_vm2, %v8032_v26, %v5535_v59 }
 0x564   : > { %v4203_v18 = vpop.f32.mrf.mxu1  ;;  %v4289_v28 = vpop.f32.mrf.mxu0 }
 0x565   : > { %5608 = vrot.lane.b32.xlu1 %v5607_v3, %s6151_s26  ;;  %v5612_v54 = vpack.i.bf16 %v4289_v28, %v4287_v29 }
 0x567   : > { %5638 = vrot.lane.b32.xlu0 %v5637_v11, %s6151_s26  ;;  %v5064_v11 = vld [vmem:[#allocation8 + $0x10] sm:$0xff] }
 0x568   : > { %4643 = vmatpush.bf16.msrb.mxu0 %v5064_v11  ;;  %5082 = vmatpush.bf16.msra.mxu2 %v5064_v11 }
 0x569   : > { %5083 = vmatpush.bf16.msrb.mxu3 %v5064_v11 }
 0x56c   : > { %v4205_v48 = vpop.f32.mrf.mxu1  ;;  %4644 = vmatpush.bf16.msrb.mxu0 %v5063_v58  ;;  %5084 = vmatpush.bf16.msra.mxu2 %v5063_v58 }
 0x56d   : > { %v5592_v40 = vpack.i.bf16 %v4205_v48, %v4203_v18  ;;  %5085 = vmatpush.bf16.msrb.mxu3 %v5063_v58 }
 0x56e   : > { %v5539_v44 = vpop.permute.xlu0 %5538 }
 0x56f   : > { %5593 = vrot.lane.b32.xlu2 %v5592_v40, %s6152_s30  ;;  %v5541_v28 = vunpack.i.h.bf16 %v5539_v44  ;;  %v5540_v11 = vunpack.i.l.bf16 %v5539_v44 }
 0x570   : > { %4645 = vmatpush.bf16.msrb.mxu0 %v5062_v27  ;;  %5086 = vmatpush.bf16.msra.mxu2 %v5062_v27 }
 0x571   : > { %5087 = vmatpush.bf16.msrb.mxu3 %v5062_v27  ;;  %v4515_v9 = vsel %vm1704_vm2, %v8065_v57, %v5541_v28  ;;  %v4514_v27 = vsel %vm1704_vm2, %v8052_v46, %v5540_v11 }
 0x577   : > { %5598 = vrot.lane.b32.xlu2 %v5597_v35, %s6152_s30 }
 0x57f   : > { %5613 = vrot.lane.b32.xlu2 %v5612_v54, %s6152_s30 }
 0x587   : > { %5618 = vrot.lane.b32.xlu2 %v5617_v43, %s6153_s7  ;;  %v5549_v20 = vpop.permute.xlu0 %5548 }
 0x58b   : > { %v4315_v37 = vpop.f32.mrf.mxu1 }
 0x58c   : > { %v4259_v45 = vpop.f32.mrf.mxu3 }
 0x58f   : > { %v8132_v32 = vpop.permute.xlu2 %5563 }
 0x590   : > { %v5565_v57 = vunpack.i.l.bf16 %v8132_v32 }
 0x593   : > { %v4317_v49 = vpop.f32.mrf.mxu1 }
 0x594   : > { %v5632_v15 = vpack.i.bf16 %v4317_v49, %v4315_v37  ;;  %v4261_v51 = vpop.f32.mrf.mxu3 }
 0x595   : > { %v5627_v62 = vpack.i.bf16 %v4261_v51, %v4259_v45  ;;  %v5551_v45 = vunpack.i.h.bf16 %v5549_v20  ;;  %v5550_v51 = vunpack.i.l.bf16 %v5549_v20 }
 0x596   : > { %5633 = vrot.lane.b32.xlu2 %v5632_v15, %s6152_s30 }
 0x597   : > { %5628 = vrot.lane.b32.xlu1 %v5627_v62, %s6152_s30  ;;  %v5554_v13 = vpop.permute.xlu1 %5553  ;;  %v5566_v62 = vunpack.i.h.bf16 %v8132_v32 }
 0x598   : > { %v5556_v8 = vunpack.i.h.bf16 %v5554_v13  ;;  %v5555_v19 = vunpack.i.l.bf16 %v5554_v13 }
 0x59a   : > { %v4529_v25 = vsel %vm4528_vm5, %v4512_v47, %v5555_v19  ;;  %v4530_v4 = vsel %vm4528_vm5, %v4513_v34, %v5556_v8  ;;  %v4521_v47 = vsel %vm1704_vm2, %v8070_v53, %v5551_v45 }
 0x59e   : > { %5648 = vrot.lane.b32.xlu2 %v5647_v24, %s6152_s30 }
 0x59f   : > { %5643 = vrot.lane.b32.xlu1 %v5642_v63, %s6153_s7  ;;  %v5559_v63 = vpop.permute.xlu1 %5558  ;;  %s6085_s7 = scalar_lea.hbm %s8269_s6, 256 }
 0x5a0   : > { %v5574_v21 = vpop.permute.xlu2 %5573  ;;  %v5561_v33 = vunpack.i.h.bf16 %v5559_v63  ;;  %v5560_v46 = vunpack.i.l.bf16 %v5559_v63  ;;  %p6087_p10 = scmp.lt.s32.totalorder %s6085_s7, %s6081_s8 }
 0x5a1   : > { %v5576_v39 = vunpack.i.h.bf16 %v5574_v21  ;;  %v5575_v61 = vunpack.i.l.bf16 %v5574_v21 }
 0x5a2   : > { %v4525_v32 = vsel %vm1704_vm2, %v8072_v31, %v5561_v33  ;;  %p6088_p2 = por %p6087_p10, %p6086_p9 }
 0x5a3   : > { %v4546_v52 = vsel %vm4545_vm4, %v4529_v25, %v5575_v61  ;;  %v4547_v5 = vsel %vm4545_vm4, %v4530_v4, %v5576_v39  ;;  %v4520_v39 = vsel %vm1704_vm2, %v8058_v14, %v5550_v51  ;;  %v4538_v25 = vsel %vm4528_vm5, %v4521_v47, %v5566_v62 }
 0x5a4   : > { %v4562_v1 = vpack.c.bf16 %v4547_v5, %v4546_v52  ;;  %v4537_v61 = vsel %vm4528_vm5, %v4520_v39, %v5565_v57  ;;  %v4524_v4 = vsel %vm1704_vm2, %v8062_v41, %v5560_v46  ;;  %p6089_p11 = pnand %p6088_p2, %p6084_p8 }
 0x5a6   : > { %4646 = vmatmul.bf16.vlgmr.msrb.gmra.mxu0 %v4562_v1 }
 0x5a7   : > { %v5569_v40 = vpop.permute.xlu1 %5568 }
 0x5a8   : > { %v5571_v54 = vunpack.i.h.bf16 %v5569_v40  ;;  %v5570_v2 = vunpack.i.l.bf16 %v5569_v40 }
 0x5a9   : > { %v5579_v0 = vpop.permute.xlu2 %5578 }
 0x5aa   : > { %v5581_v3 = vunpack.i.h.bf16 %v5579_v0  ;;  %v5580_v26 = vunpack.i.l.bf16 %v5579_v0  ;;  %v4531_v55 = vsel %vm4528_vm5, %v4514_v27, %v5570_v2  ;;  %v4532_v49 = vsel %vm4528_vm5, %v4515_v9, %v5571_v54 }
 0x5ac   : > { %v4536_v29 = vsel %vm4528_vm5, %v4519_v38, %v5581_v3  ;;  %v4535_v36 = vsel %vm4528_vm5, %v4518_v10, %v5580_v26 }
 0x5b9   : > { %v5584_v23 = vpop.permute.xlu0 %5583 }
 0x5ba   : > { %v5586_v34 = vunpack.i.h.bf16 %v5584_v23  ;;  %v5585_v21 = vunpack.i.l.bf16 %v5584_v23 }
 0x5bc   : > { %v4542_v0 = vsel %vm4528_vm5, %v4525_v32, %v5586_v34  ;;  %v4541_v14 = vsel %vm4528_vm5, %v4524_v4, %v5585_v21 }
 0x5c1   : > { %v5604_v41 = vpop.permute.xlu0 %5603 }
 0x5c2   : > { %v5606_v2 = vunpack.i.h.bf16 %v5604_v41 }
 0x5c4   : > { %v4523_v27 = vsel %vm1704_vm2, %v8084_v22, %v5606_v2 }
 0x5c9   : > { %v5594_v18 = vpop.permute.xlu2 %5593 }
 0x5ca   : > { %v5596_v56 = vunpack.i.h.bf16 %v5594_v18  ;;  %v5595_v48 = vunpack.i.l.bf16 %v5594_v18 }
 0x5cc   : > { %v4553_v16 = vsel %vm4545_vm4, %v4536_v29, %v5596_v56  ;;  %v4552_v35 = vsel %vm4545_vm4, %v4535_v36, %v5595_v48 }
 0x5cd   : > { %v4565_v50 = vpack.c.bf16 %v4553_v16, %v4552_v35 }
 0x5cf   : > { %4661 = vmatmul.bf16.vlgmr.msra.gmra.mxu2 %v4565_v50  ;;  %v5589_v15 = vpop.permute.xlu1 %5588 }
 0x5d0   : > { %v5591_v8 = vunpack.i.h.bf16 %v5589_v15  ;;  %v5590_v19 = vunpack.i.l.bf16 %v5589_v15 }
 0x5d1   : > { %v5599_v58 = vpop.permute.xlu2 %5598  ;;  %v5624_v10 = vpop.permute.xlu0 %5623 }
 0x5d2   : > { %v5601_v43 = vunpack.i.h.bf16 %v5599_v58  ;;  %v5600_v37 = vunpack.i.l.bf16 %v5599_v58  ;;  %v4554_v63 = vsel %vm4545_vm4, %v4537_v61, %v5590_v19  ;;  %v4555_v53 = vsel %vm4545_vm4, %v4538_v25, %v5591_v8  ;;  %v5654_v25 = vld [vmem:[%s8268_s5] ss:$0 sm:$0xff] }
 0x5d3   : > { %v4566_v31 = vpack.c.bf16 %v4555_v53, %v4554_v63  ;;  %v5626_v40 = vunpack.i.h.bf16 %v5624_v10  ;;  %v5625_v29 = vunpack.i.l.bf16 %v5624_v10 }
 0x5d4   : > { %v4548_v24 = vsel %vm4545_vm4, %v4531_v55, %v5600_v37  ;;  %v4549_v13 = vsel %vm4545_vm4, %v4532_v49, %v5601_v43 }
 0x5d5   : > { %v4563_v59 = vpack.c.bf16 %v4549_v13, %v4548_v24 }
 0x5d7   : > { %4651 = vmatmul.bf16.gmra.mxu0 %v4563_v59  ;;  %v5609_v3 = vpop.permute.xlu1 %5608 }
 0x5d8   : > { %v5611_v18 = vunpack.i.h.bf16 %v5609_v3  ;;  %v5610_v38 = vunpack.i.l.bf16 %v5609_v3 }
 0x5d9   : > { %v5614_v52 = vpop.permute.xlu2 %5613  ;;  %v5639_v15 = vpop.permute.xlu0 %5638 }
 0x5da   : > { %v5616_v5 = vunpack.i.h.bf16 %v5614_v52  ;;  %v5615_v1 = vunpack.i.l.bf16 %v5614_v52  ;;  %v4527_v56 = vsel %vm1704_vm2, %v8086_v7, %v5611_v18  ;;  %v4526_v48 = vsel %vm1704_vm2, %v8079_v60, %v5610_v38 }
 0x5db   : > { %v4543_v35 = vsel %vm4528_vm5, %v4526_v48, %v5625_v29  ;;  %v4544_v50 = vsel %vm4528_vm5, %v4527_v56, %v5626_v40  ;;  %v5605_v7 = vunpack.i.l.bf16 %v5604_v41  ;;  %v5641_v24 = vunpack.i.h.bf16 %v5639_v15 }
 0x5dc   : > { %v4558_v44 = vsel %vm4545_vm4, %v4541_v14, %v5615_v1  ;;  %v4559_v17 = vsel %vm4545_vm4, %v4542_v0, %v5616_v5  ;;  %v5640_v13 = vunpack.i.l.bf16 %v5639_v15 }
 0x5dd   : > { %v4568_v42 = vpack.c.bf16 %v4559_v17, %v4558_v44  ;;  %v4522_v43 = vsel %vm1704_vm2, %v8075_v6, %v5605_v7  ;;  %v4517_v46 = vsel %vm1704_vm2, %v8048_v12, %v5641_v24 }
 0x5de   : > { %v4516_v59 = vsel %vm1704_vm2, %v8036_v30, %v5640_v13 }
 0x5df   : > { %4666 = vmatmul.bf16.gmra.mxu2 %v4566_v31  ;;  %4676 = vmatmul.bf16.vlgmr.msrb.gmra.mxu3 %v4568_v42 }
 0x5e1   : > { %v5619_v26 = vpop.permute.xlu2 %5618 }
 0x5e2   : > { %v5621_v58 = vunpack.i.h.bf16 %v5619_v26  ;;  %v5620_v9 = vunpack.i.l.bf16 %v5619_v26 }
 0x5e4   : > { %v4539_v55 = vsel %vm4528_vm5, %v4522_v43, %v5620_v9  ;;  %v4540_v49 = vsel %vm4528_vm5, %v4523_v27, %v5621_v58 }
 0x5f0   : > { %v5634_v36 = vpop.permute.xlu2 %5633 }
 0x5f1   : > { %v5636_v20 = vunpack.i.h.bf16 %v5634_v36  ;;  %v5635_v16 = vunpack.i.l.bf16 %v5634_v36 }
 0x5f3   : > { %v4560_v28 = vsel %vm4545_vm4, %v4543_v35, %v5635_v16  ;;  %v4561_v11 = vsel %vm4545_vm4, %v4544_v50, %v5636_v20 }
 0x5f4   : > { %v4569_v54 = vpack.c.bf16 %v4561_v11, %v4560_v28 }
 0x5f6   : > { %4681 = vmatmul.bf16.gmra.mxu3 %v4569_v54 }
 0x5f8   : > { %v5649_v57 = vpop.permute.xlu2 %5648 }
 0x5f9   : > { %v5651_v8 = vunpack.i.h.bf16 %v5649_v57  ;;  %v5650_v19 = vunpack.i.l.bf16 %v5649_v57 }
 0x609   : > { %v5629_v60 = vpop.permute.xlu1 %5628 }
 0x60a   : > { %v5631_v37 = vunpack.i.h.bf16 %v5629_v60  ;;  %v5630_v45 = vunpack.i.l.bf16 %v5629_v60 }
 0x60c   : > { %v4556_v51 = vsel %vm4545_vm4, %v4539_v55, %v5630_v45  ;;  %v4557_v62 = vsel %vm4545_vm4, %v4540_v49, %v5631_v37 }
 0x60d   : > { %v4567_v23 = vpack.c.bf16 %v4557_v62, %v4556_v51 }
 0x60f   : > { %4671 = vmatmul.bf16.gmra.mxu2 %v4567_v23 }
 0x611   : > { %v5644_v22 = vpop.permute.xlu1 %5643 }
 0x612   : > { %v5646_v33 = vunpack.i.h.bf16 %v5644_v22  ;;  %v5645_v6 = vunpack.i.l.bf16 %v5644_v22 }
 0x614   : > { %v4533_v34 = vsel %vm4528_vm5, %v4516_v59, %v5645_v6  ;;  %v4534_v21 = vsel %vm4528_vm5, %v4517_v46, %v5646_v33 }
 0x615   : > { %v4550_v47 = vsel %vm4545_vm4, %v4533_v34, %v5650_v19  ;;  %v4551_v39 = vsel %vm4545_vm4, %v4534_v21, %v5651_v8 }
 0x616   : > { %v4564_v61 = vpack.c.bf16 %v4551_v39, %v4550_v47 }
 0x618   : > { %4656 = vmatmul.bf16.gmra.mxu0 %v4564_v61 }
 0x623   : > { %v4647_v12 = vpop.f32.mrf.mxu0 }
 0x624   : > { %v4648_v32 = vadd.f32 %v5654_v25, %v4647_v12 }
 0x626   : > { %4687 = vst [vmem:[%s8211_s19] sm:$0xff] %v4648_v32 }
 0x62b   : > { %v4649_v30 = vpop.f32.mrf.mxu0 }
 0x62c   : > { %v4650_v4 = vadd.f32 %v5654_v25, %v4649_v30 }
 0x62e   : > { %4688 = vst [vmem:[%s8211_s19 + $0x8] sm:$0xff] %v4650_v4 }
 0x652   : > { %v4662_v52 = vpop.f32.mrf.mxu2 }
 0x653   : > { %v4663_v5 = vadd.f32 %v5654_v25, %v4662_v52 }
 0x654   : > { %v4652_v1 = vpop.f32.mrf.mxu0 }
 0x655   : > { %4693 = vst [vmem:[%s8211_s19 + $0x30] sm:$0xff] %v4663_v5  ;;  %v4653_v63 = vadd.f32 %v5654_v25, %v4652_v1 }
 0x657   : > { %4689 = vst [vmem:[%s8211_s19 + $0x10] sm:$0xff] %v4653_v63 }
 0x65a   : > { %v4664_v53 = vpop.f32.mrf.mxu2 }
 0x65b   : > { %v4665_v0 = vadd.f32 %v5654_v25, %v4664_v53 }
 0x65c   : > { %v4654_v14 = vpop.f32.mrf.mxu0 }
 0x65d   : > { %4694 = vst [vmem:[%s8211_s19 + $0x38] sm:$0xff] %v4665_v0  ;;  %v4655_v44 = vadd.f32 %v5654_v25, %v4654_v14 }
 0x65f   : > { %4690 = vst [vmem:[%s8211_s19 + $0x18] sm:$0xff] %v4655_v44 }
 0x662   : > { %v4667_v17 = vpop.f32.mrf.mxu2  ;;  %v4677_v42 = vpop.f32.mrf.mxu3 }
 0x663   : > { %v4668_v31 = vadd.f32 %v5654_v25, %v4667_v17  ;;  %v4678_v41 = vadd.f32 %v5654_v25, %v4677_v42 }
 0x665   : > { %4695 = vst [vmem:[%s8211_s19 + $0x40] sm:$0xff] %v4668_v31 }
 0x666   : > { %4699 = vst [vmem:[%s8211_s19 + $0x60] sm:$0xff] %v4678_v41 }
 0x66a   : > { %v4669_v3 = vpop.f32.mrf.mxu2  ;;  %v4679_v26 = vpop.f32.mrf.mxu3 }
 0x66b   : > { %v4670_v18 = vadd.f32 %v5654_v25, %v4669_v3  ;;  %v4680_v38 = vadd.f32 %v5654_v25, %v4679_v26 }
 0x66d   : > { %4696 = vst [vmem:[%s8211_s19 + $0x48] sm:$0xff] %v4670_v18 }
 0x66e   : > { %4700 = vst [vmem:[%s8211_s19 + $0x68] sm:$0xff] %v4680_v38 }
 0x679   : > { %v4682_v10 = vpop.f32.mrf.mxu3 }
 0x67a   : > { %v4683_v56 = vadd.f32 %v5654_v25, %v4682_v10 }
 0x67c   : > { %4701 = vst [vmem:[%s8211_s19 + $0x70] sm:$0xff] %v4683_v56 }
 0x681   : > { %v4684_v48 = vpop.f32.mrf.mxu3 }
 0x682   : > { %v4685_v40 = vadd.f32 %v5654_v25, %v4684_v48 }
 0x684   : > { %4702 = vst [vmem:[%s8211_s19 + $0x78] sm:$0xff] %v4685_v40 }
 0x692   : > { %v4672_v29 = vpop.f32.mrf.mxu2 }
 0x693   : > { %v4673_v36 = vadd.f32 %v5654_v25, %v4672_v29 }
 0x695   : > { %4697 = vst [vmem:[%s8211_s19 + $0x50] sm:$0xff] %v4673_v36  ;;  %v4657_v20 = vpop.f32.mrf.mxu0 }
 0x696   : > { %v4658_v16 = vadd.f32 %v5654_v25, %v4657_v20 }
 0x698   : > { %4691 = vst [vmem:[%s8211_s19 + $0x20] sm:$0xff] %v4658_v16 }
 0x69a   : > { %v4674_v35 = vpop.f32.mrf.mxu2 }
 0x69b   : > { %v4675_v50 = vadd.f32 %v5654_v25, %v4674_v35 }
 0x69d   : > { %4698 = vst [vmem:[%s8211_s19 + $0x58] sm:$0xff] %v4675_v50  ;;  %v4659_v28 = vpop.f32.mrf.mxu0 }
 0x69e   : > { %v4660_v11 = vadd.f32 %v5654_v25, %v4659_v28 }
 0x6a0   : > { %4692 = vst [vmem:[%s8211_s19 + $0x28] sm:$0xff] %v4660_v11 }
 0x6a1   : > { %6092 = shalt.err (!%p6089_p11)
}
 0x6a2   : > { %s6154_s16 = smov 128   ;;  %s6155_s19 = smov 8  }
 0x6a3   : > { %5102 = dma.vmem_to_hbm [thread:$0]  (%p6274_p7), %s4718_s12, 2048, %s4720_s17, %s4704_s25, %s6154_s16, %s6154_s16, %s6155_s19  }
 0x6a4 PF: > { %s4734_s20 = sand.u32 1, %s6127_s21   ;;  %p8473_p12 = scmp.ge.s32.totalorder %s6139_s24, 2 }
 0x6a5   : > { %s4735_s14 = scalar_lea.sflag [#allocation4], %s4734_s20 }
 0x6a6   : > { %p5119_p13 = pnand %p8473_p12, %p6226_p6 }
 0x6a8   : > { %p5120_p0 = pneg %p5119_p13 }
 0x6aa   : > { %6122 = dma.done.wait (%p5120_p0), %s4735_s14, 2048  }
 0x6ab   : > { %6124 = vsyncadd (%p5120_p0), %s4735_s14, 4294965248  ;;  %p21_p3 = scmp.ge.s32.totalorder %s6260_s10, 4   ;;  %s8474_s21 = smov %s6131_s22 }
 0x6ac   : > { %s8475_s22 = smov %s6135_s23  ;;  %s8476_s23 = smov %s6270_s13 }
 0x6ad   : > { %s8477_s24 = smov %s6260_s10  ;;  %23 = sbr.rel (!%p21_p3) target bundleno = 7 (0x7), region = 101 }
 0x6b2   :  { %4741 = vsyncpa [#allocation3], 1 }
 0x6b3   :  { %4743 = vsyncpa [#allocation3 + $0x1], 1 }
 0x6b4   :  { %4744 = vsyncpa [#allocation6], 1 }
 0x6b5   :  { %4745 = vsyncpa [#allocation9], 1 }
 0x6b6   :  { %4746 = vsyncpa [#allocation4], 1 }
 0x6b7   :  { %4748 = vsyncpa [#allocation4 + $0x1], 1 }

</bundles_post_ra>
